<compile_context>
chip_gen: v7x
topology: tpu7x:2x2x1
jax: 0.10.0
libtpu: 0.0.40
codegen_flags: <defaults>
</compile_context>

<pallas_src>
import math

import jax
import jax.numpy as jnp
from jax.experimental import pallas as pl
from jax.experimental.pallas import tpu as pltpu

# ----------------------- small synthetic hyper-parameters -----------------------
B, S, H = 2, 16, 32          # batch, sequence, hidden
BS = B * S                   # batch folded into the sublane dim
NUM_LAYERS = 2
NUM_HEADS = 4
HEAD_DIM = H // NUM_HEADS
INTER = 64                   # FFN intermediate size
VOCAB = 50
NUM_CLASSES = 2
PAD_ID = 1
LN_EPS = 1e-5
NEG_INF = -1e9
LANE = 128                   # lane width of the packed slabs / output

# ----- packed-slab row layout (all slabs are (rows, 128) f32) -----
# wmat: per layer [wqkv (H rows) | wo (H) | w1 (H) | w2 (INTER)], then [wd (H) | wc (H)]
MAT_ROWS_PER_LAYER = 3 * H + INTER          # 160
MAT_CLS = NUM_LAYERS * MAT_ROWS_PER_LAYER   # 320
MAT_ROWS = MAT_CLS + 2 * H                  # 384
# wvec: [ln_emb_g, ln_emb_b] + per layer [bqkv, bo, ln1_g, ln1_b, b1, b2, ln2_g, ln2_b]
#       + [bd, bc_pad]
VEC_ROWS_PER_LAYER = 8
VEC_CLS = 2 + NUM_LAYERS * VEC_ROWS_PER_LAYER   # 18
VEC_ROWS = VEC_CLS + 2                          # 20


# ----------------------------- in-kernel helpers --------------------------------
def _layer_norm(x, g, b):
    mu = jnp.mean(x, axis=-1, keepdims=True)
    var = jnp.mean((x - mu) ** 2, axis=-1, keepdims=True)
    return (x - mu) * jax.lax.rsqrt(var + LN_EPS) * g + b


def _gelu(x):
    # tanh-approx gelu (TODO(synk): exact erf gelu in camembert)
    c = math.sqrt(2.0 / math.pi)
    return 0.5 * x * (1.0 + jnp.tanh(c * (x + 0.044715 * x * x * x)))


# ----------------------------------- kernel -------------------------------------
def qualifier_kernel(acts_ref, wmat_ref, wvec_ref, out_ref):
    # one dense (32,128) load; carve activations / bias / pool weights from the value
    acts = acts_ref[...]
    x = acts[:, 0:H]                      # (BS, H) embeddings (pre-LN)
    bias = acts[:, H:2 * H]               # (BS, BS) block-diagonal + key-padding bias

    # embedding LayerNorm (dropout = identity in eval mode)
    h = _layer_norm(x, wvec_ref[0:1, 0:H], wvec_ref[1:2, 0:H])

    for l in range(NUM_LAYERS):
        mb = l * MAT_ROWS_PER_LAYER
        vb = 2 + l * VEC_ROWS_PER_LAYER

        # ---- fused QKV projection: one (BS,H)@(H,3H) MXU pass (1/sqrt(hd) folded in) ----
        qkv = (jnp.dot(h, wmat_ref[mb:mb + H, 0:3 * H],
                       preferred_element_type=jnp.float32)
               + wvec_ref[vb:vb + 1, 0:3 * H])                     # (BS, 3H)

        # ---- per-head scores / softmax / context (bias added directly, no broadcast) ----
        ctx_parts = []
        for hh in range(NUM_HEADS):
            q = qkv[:, hh * HEAD_DIM:(hh + 1) * HEAD_DIM]
            k = qkv[:, H + hh * HEAD_DIM:H + (hh + 1) * HEAD_DIM]
            v = qkv[:, 2 * H + hh * HEAD_DIM:2 * H + (hh + 1) * HEAD_DIM]
            s = jnp.einsum("qd,kd->qk", q, k,
                           preferred_element_type=jnp.float32) + bias
            m = jnp.max(s, axis=-1, keepdims=True)
            p = jnp.exp(s - m)
            p = p * pl.reciprocal(jnp.sum(p, axis=-1, keepdims=True), approx=True)
            ctx_parts.append(jnp.dot(p, v, preferred_element_type=jnp.float32))
        ctx = jnp.concatenate(ctx_parts, axis=-1)                  # (BS, H)

        # ---- output projection + head sum fused into one 32-deep contraction ----
        attn = (jnp.dot(ctx, wmat_ref[mb + H:mb + 2 * H, 0:H],
                        preferred_element_type=jnp.float32)
                + wvec_ref[vb + 1:vb + 2, 0:H])

        # post-LN residual
        h = _layer_norm(attn + h, wvec_ref[vb + 2:vb + 3, 0:H],
                        wvec_ref[vb + 3:vb + 4, 0:H])

        # ---- feed-forward ----
        inter = _gelu(jnp.dot(h, wmat_ref[mb + 2 * H:mb + 3 * H, 0:INTER],
                              preferred_element_type=jnp.float32)
                      + wvec_ref[vb + 4:vb + 5, 0:INTER])
        ff = (jnp.dot(inter, wmat_ref[mb + 3 * H:mb + 3 * H + INTER, 0:H],
                      preferred_element_type=jnp.float32)
              + wvec_ref[vb + 5:vb + 6, 0:H])
        h = _layer_norm(ff + h, wvec_ref[vb + 6:vb + 7, 0:H],
                        wvec_ref[vb + 7:vb + 8, 0:H])

    # ---- Pooler(mode='mean') over [span_start, span_end): one (B,BS)@(BS,H) matmul ----
    pool_w = acts[0:B, 2 * H:2 * H + BS]                           # (B, BS)
    pooled = jnp.dot(pool_w, h, preferred_element_type=jnp.float32)

    # ---- RobertaClassificationHead: dropout -> dense -> tanh -> dropout -> out_proj ----
    z = jnp.tanh(jnp.dot(pooled, wmat_ref[MAT_CLS:MAT_CLS + H, 0:H],
                         preferred_element_type=jnp.float32)
                 + wvec_ref[VEC_CLS:VEC_CLS + 1, 0:H])
    # out_proj padded to 128 lanes (padding lanes carry NEG_INF bias -> exp underflows to 0)
    logits_wide = (jnp.dot(z, wmat_ref[MAT_CLS + H:MAT_CLS + 2 * H, 0:LANE],
                           preferred_element_type=jnp.float32)
                   + wvec_ref[VEC_CLS + 1:VEC_CLS + 2, 0:LANE])    # (B, 128)
    m = jnp.max(logits_wide, axis=-1, keepdims=True)
    e = jnp.exp(logits_wide - m)
    probs_wide = e / jnp.sum(e, axis=-1, keepdims=True)            # exact divide for probs

    # single lane-dense store: rows 0..B-1 = logits, rows B..2B-1 = probs
    out_ref[...] = jnp.concatenate([logits_wide, probs_wide], axis=0)


# ------------------------------ host-side weight prep -----------------------------
def _prepare_weights(params):
    """Pack all weights into two lane-dense (rows, 128) f32 slabs."""
    scale = 1.0 / math.sqrt(HEAD_DIM)
    wmat = jnp.zeros((MAT_ROWS, LANE), jnp.float32)
    wvec = jnp.zeros((VEC_ROWS, LANE), jnp.float32)

    wvec = wvec.at[0, 0:H].set(params["ln_emb_g"][0])
    wvec = wvec.at[1, 0:H].set(params["ln_emb_b"][0])

    for l in range(NUM_LAYERS):
        mb = l * MAT_ROWS_PER_LAYER
        vb = 2 + l * VEC_ROWS_PER_LAYER
        wqkv = jnp.concatenate(
            [params["wq"][l] * scale, params["wk"][l], params["wv"][l]], axis=1)   # (H, 3H)
        bqkv = jnp.concatenate(
            [params["bq"][l] * scale, params["bk"][l], params["bv"][l]], axis=1)   # (1, 3H)
        wmat = wmat.at[mb:mb + H, 0:3 * H].set(wqkv)
        wmat = wmat.at[mb + H:mb + 2 * H, 0:H].set(params["wo"][l])
        wmat = wmat.at[mb + 2 * H:mb + 3 * H, 0:INTER].set(params["w1"][l])
        wmat = wmat.at[mb + 3 * H:mb + 3 * H + INTER, 0:H].set(params["w2"][l])
        wvec = wvec.at[vb, 0:3 * H].set(bqkv[0])
        wvec = wvec.at[vb + 1, 0:H].set(params["bo"][l, 0])
        wvec = wvec.at[vb + 2, 0:H].set(params["ln1_g"][l, 0])
        wvec = wvec.at[vb + 3, 0:H].set(params["ln1_b"][l, 0])
        wvec = wvec.at[vb + 4, 0:INTER].set(params["b1"][l, 0])
        wvec = wvec.at[vb + 5, 0:H].set(params["b2"][l, 0])
        wvec = wvec.at[vb + 6, 0:H].set(params["ln2_g"][l, 0])
        wvec = wvec.at[vb + 7, 0:H].set(params["ln2_b"][l, 0])

    wmat = wmat.at[MAT_CLS:MAT_CLS + H, 0:H].set(params["wd"])
    wmat = wmat.at[MAT_CLS + H:MAT_CLS + 2 * H, 0:NUM_CLASSES].set(params["wc"])
    wvec = wvec.at[VEC_CLS, 0:H].set(params["bd"][0])
    wvec = wvec.at[VEC_CLS + 1].set(jnp.full((LANE,), NEG_INF, jnp.float32))
    wvec = wvec.at[VEC_CLS + 1, 0:NUM_CLASSES].set(params["bc"][0])
    return wmat, wvec


# ---------------------------------- wrapper --------------------------------------
@jax.jit
def qualifier_forward(params, input_ids, attention_mask, span_start, span_end):
    """Returns (logits, preds, probs) like QualifierModelv2.forward."""
    # --- glue: embedding gathers (RoBERTa-style position ids) ---
    mask_i = (input_ids != PAD_ID).astype(jnp.int32)
    position_ids = jnp.cumsum(mask_i, axis=-1) * mask_i + PAD_ID
    x_emb = (params["word_emb"][input_ids]
             + params["pos_emb"][position_ids]
             + params["type_emb"][0][None, None, :])                    # (B, S, H)
    x_flat = x_emb.reshape(BS, H).astype(jnp.float32)

    # --- glue: block-diagonal (batch isolation) + key-padding additive bias ---
    row_id = jnp.arange(BS, dtype=jnp.int32) // S
    same_row = row_id[:, None] == row_id[None, :]
    key_ok = attention_mask.reshape(BS).astype(jnp.bool_)
    att_bias = jnp.where(same_row & key_ok[None, :], 0.0, NEG_INF).astype(jnp.float32)

    # --- glue: span-mean pooling weights (Pooler(mode='mean') with (begin, end)) ---
    pos = jnp.arange(S, dtype=jnp.int32)[None, :]
    begins = jnp.maximum(span_start.reshape(B, 1).astype(jnp.int32), 0)
    ends = jnp.maximum(span_end.reshape(B, 1).astype(jnp.int32), 0)
    span_mask = ((pos >= begins) & (pos < ends)).astype(jnp.float32)        # (B, S)
    count = jnp.maximum(jnp.sum(span_mask, axis=-1, keepdims=True), 1.0)
    w = span_mask / count                                                   # (B, S)
    pool_w = (jnp.eye(B, dtype=jnp.float32)[:, :, None] * w[None, :, :]).reshape(B, BS)

    # --- pack the runtime data into one lane-dense (BS, 128) slab ---
    acts = jnp.zeros((BS, LANE), jnp.float32)
    acts = acts.at[:, 0:H].set(x_flat)
    acts = acts.at[:, H:2 * H].set(att_bias)
    acts = acts.at[0:B, 2 * H:2 * H + BS].set(pool_w)

    wmat, wvec = _prepare_weights(params)

    vmem = pl.BlockSpec(memory_space=pltpu.MemorySpace.VMEM)
    out = pl.pallas_call(
        qualifier_kernel,
        out_shape=jax.ShapeDtypeStruct((2 * B, LANE), jnp.float32),
        in_specs=[vmem, vmem, vmem],       # 3 whole-array VMEM operands, no grid / no pipelining
        out_specs=vmem,
    )(acts, wmat, wvec)

    logits = out[0:B, :NUM_CLASSES]            # matches .squeeze(1) in torch
    probs = out[B:2 * B, :NUM_CLASSES]
    preds = jnp.argmax(probs, axis=-1)         # int32 (torch returns int64)
    return logits, preds, probs


# ------------------------------ parameter init ------------------------------------
def init_params(key):
    keys = iter(jax.random.split(key, 64))

    def nrm(shape, scale=0.02):
        return (scale * jax.random.normal(next(keys), shape)).astype(jnp.float32)

    L = NUM_LAYERS
    p = {
        "word_emb": nrm((VOCAB, H)),
        "pos_emb": nrm((S + 4, H)),
        "type_emb": nrm((1, H)),
        "ln_emb_g": jnp.ones((1, H), jnp.float32),
        "ln_emb_b": jnp.zeros((1, H), jnp.float32),
        "wq": nrm((L, H, H)), "bq": nrm((L, 1, H)),
        "wk": nrm((L, H, H)), "bk": nrm((L, 1, H)),
        "wv": nrm((L, H, H)), "bv": nrm((L, 1, H)),
        "wo": nrm((L, H, H)), "bo": nrm((L, 1, H)),
        "ln1_g": jnp.ones((L, 1, H), jnp.float32),
        "ln1_b": jnp.zeros((L, 1, H), jnp.float32),
        "w1": nrm((L, H, INTER)), "b1": nrm((L, 1, INTER)),
        "w2": nrm((L, INTER, H)), "b2": nrm((L, 1, H)),
        "ln2_g": jnp.ones((L, 1, H), jnp.float32),
        "ln2_b": jnp.zeros((L, 1, H), jnp.float32),
        "wd": nrm((H, H)), "bd": nrm((1, H)),
        "wc": nrm((H, NUM_CLASSES)), "bc": nrm((1, NUM_CLASSES)),
    }
    return p


# ----------------------------------- main ------------------------------------------
if __name__ == "__main__":
    key = jax.random.PRNGKey(0)
    k_par, k_ids = jax.random.split(key)
    params = init_params(k_par)

    input_ids = jax.random.randint(k_ids, (B, S), 2, VOCAB, dtype=jnp.int32)
    # second sequence padded on the last 4 positions
    pad_cols = jnp.arange(S) >= (S - 4)
    input_ids = input_ids.at[1].set(jnp.where(pad_cols, PAD_ID, input_ids[1]))
    attention_mask = jnp.stack(
        [jnp.ones((S,), jnp.int32), (~pad_cols).astype(jnp.int32)], axis=0)

    span_start = jnp.array([[1], [2]], dtype=jnp.int32)   # (B, 1)
    span_end = jnp.array([[5], [7]], dtype=jnp.int32)     # (B, 1)

    logits, preds, probs = qualifier_forward(
        params, input_ids, attention_mask, span_start, span_end)
    jax.block_until_ready((logits, preds, probs))

    assert logits.shape == (B, NUM_CLASSES)
    assert probs.shape == (B, NUM_CLASSES)
    assert preds.shape == (B,)
    print("KERNEL_OK")
</pallas_src>

<mosaic_0001>
module attributes {stable_mosaic.version = 11 : i64} {
  func.func @qualifier_kernel(%arg0: memref<32x128xf32, #tpu.memory_space<vmem>>, %arg1: memref<384x128xf32, #tpu.memory_space<vmem>>, %arg2: memref<20x128xf32, #tpu.memory_space<vmem>>, %arg3: memref<4x128xf32, #tpu.memory_space<vmem>>) attributes {dimension_semantics = [], scalar_prefetch = 0 : i64, scratch_operands = 0 : i64, tpu.core_type = #tpu.core_type<tc>} {
    %c0 = arith.constant 0 : index
    %c0_0 = arith.constant 0 : index
    %0 = vector.load %arg0[%c0, %c0_0] : memref<32x128xf32, #tpu.memory_space<vmem>>, vector<32x128xf32>
    %1 = vector.extract_strided_slice %0 {offsets = [0, 0], sizes = [32, 32], strides = [1, 1]} : vector<32x128xf32> to vector<32x32xf32>
    %2 = vector.extract_strided_slice %0 {offsets = [0, 32], sizes = [32, 32], strides = [1, 1]} : vector<32x128xf32> to vector<32x32xf32>
    %c0_1 = arith.constant 0 : index
    %c0_2 = arith.constant 0 : index
    %3 = vector.load %arg2[%c0_1, %c0_2] : memref<20x128xf32, #tpu.memory_space<vmem>>, vector<1x32xf32>
    %c1 = arith.constant 1 : index
    %c0_3 = arith.constant 0 : index
    %4 = vector.load %arg2[%c1, %c0_3] : memref<20x128xf32, #tpu.memory_space<vmem>>, vector<1x32xf32>
    %cst = arith.constant dense<0.000000e+00> : vector<32xf32>
    %5 = vector.multi_reduction <add>, %1, %cst [1] : vector<32x32xf32> to vector<32xf32>
    %6 = vector.shape_cast %5 : vector<32xf32> to vector<32x1xf32>
    %cst_4 = arith.constant 3.200000e+01 : f32
    %7 = vector.broadcast %cst_4 : f32 to vector<32x1xf32>
    %8 = arith.divf %6, %7 : vector<32x1xf32>
    %9 = vector.broadcast %8 : vector<32x1xf32> to vector<32x32xf32>
    %10 = arith.subf %1, %9 : vector<32x32xf32>
    %11 = arith.mulf %10, %10 : vector<32x32xf32>
    %cst_5 = arith.constant dense<0.000000e+00> : vector<32xf32>
    %12 = vector.multi_reduction <add>, %11, %cst_5 [1] : vector<32x32xf32> to vector<32xf32>
    %13 = vector.shape_cast %12 : vector<32xf32> to vector<32x1xf32>
    %cst_6 = arith.constant 3.200000e+01 : f32
    %14 = vector.broadcast %cst_6 : f32 to vector<32x1xf32>
    %15 = arith.divf %13, %14 : vector<32x1xf32>
    %16 = vector.broadcast %8 : vector<32x1xf32> to vector<32x32xf32>
    %17 = arith.subf %1, %16 : vector<32x32xf32>
    %cst_7 = arith.constant 9.99999974E-6 : f32
    %18 = vector.broadcast %cst_7 : f32 to vector<32x1xf32>
    %19 = arith.addf %15, %18 : vector<32x1xf32>
    %20 = math.rsqrt %19 : vector<32x1xf32>
    %21 = vector.broadcast %20 : vector<32x1xf32> to vector<32x32xf32>
    %22 = arith.mulf %17, %21 : vector<32x32xf32>
    %23 = vector.broadcast %3 : vector<1x32xf32> to vector<32x32xf32>
    %24 = arith.mulf %22, %23 : vector<32x32xf32>
    %25 = vector.broadcast %4 : vector<1x32xf32> to vector<32x32xf32>
    %26 = arith.addf %24, %25 : vector<32x32xf32>
    %c0_8 = arith.constant 0 : index
    %c0_9 = arith.constant 0 : index
    %27 = vector.load %arg1[%c0_8, %c0_9] : memref<384x128xf32, #tpu.memory_space<vmem>>, vector<32x96xf32>
    %cst_10 = arith.constant dense<0.000000e+00> : vector<32x96xf32>
    %28 = tpu.matmul %26, %27, %cst_10 {dimension_numbers = #tpu.dot_dimension_numbers<[1], [0], [0], [1], [0, 0, 1, 1], [], []>} : vector<32x32xf32>, vector<32x96xf32>, vector<32x96xf32> -> vector<32x96xf32>
    %c2 = arith.constant 2 : index
    %c0_11 = arith.constant 0 : index
    %29 = vector.load %arg2[%c2, %c0_11] : memref<20x128xf32, #tpu.memory_space<vmem>>, vector<1x96xf32>
    %30 = vector.broadcast %29 : vector<1x96xf32> to vector<32x96xf32>
    %31 = arith.addf %28, %30 : vector<32x96xf32>
    %32 = vector.extract_strided_slice %31 {offsets = [0, 0], sizes = [32, 8], strides = [1, 1]} : vector<32x96xf32> to vector<32x8xf32>
    %33 = vector.extract_strided_slice %31 {offsets = [0, 32], sizes = [32, 8], strides = [1, 1]} : vector<32x96xf32> to vector<32x8xf32>
    %34 = vector.extract_strided_slice %31 {offsets = [0, 64], sizes = [32, 8], strides = [1, 1]} : vector<32x96xf32> to vector<32x8xf32>
    "tpu.trace_start"() <{level = 10 : i32, message = "qd,kd->qk"}> : () -> ()
    %cst_12 = arith.constant dense<0.000000e+00> : vector<32x32xf32>
    %35 = tpu.matmul %32, %33, %cst_12 {dimension_numbers = #tpu.dot_dimension_numbers<[1], [1], [0], [0], [0, 0, 1, 0], [], []>} : vector<32x8xf32>, vector<32x8xf32>, vector<32x32xf32> -> vector<32x32xf32>
    "tpu.trace_stop"() : () -> ()
    %36 = arith.addf %35, %2 : vector<32x32xf32>
    %cst_13 = arith.constant dense<0xFF800000> : vector<32xf32>
    %37 = vector.multi_reduction <maximumf>, %36, %cst_13 [1] : vector<32x32xf32> to vector<32xf32>
    %38 = vector.shape_cast %37 : vector<32xf32> to vector<32x1xf32>
    %39 = vector.broadcast %38 : vector<32x1xf32> to vector<32x32xf32>
    %40 = arith.subf %36, %39 : vector<32x32xf32>
    %41 = math.exp %40 : vector<32x32xf32>
    %cst_14 = arith.constant dense<0.000000e+00> : vector<32xf32>
    %42 = vector.multi_reduction <add>, %41, %cst_14 [1] : vector<32x32xf32> to vector<32xf32>
    %43 = vector.shape_cast %42 : vector<32xf32> to vector<32x1xf32>
    %44 = tpu.reciprocal %43 {approx = true} : vector<32x1xf32> -> vector<32x1xf32>
    %45 = vector.broadcast %44 : vector<32x1xf32> to vector<32x32xf32>
    %46 = arith.mulf %41, %45 : vector<32x32xf32>
    %cst_15 = arith.constant dense<0.000000e+00> : vector<32x8xf32>
    %47 = tpu.matmul %46, %34, %cst_15 {dimension_numbers = #tpu.dot_dimension_numbers<[1], [0], [0], [1], [0, 0, 1, 1], [], []>} : vector<32x32xf32>, vector<32x8xf32>, vector<32x8xf32> -> vector<32x8xf32>
    %48 = vector.extract_strided_slice %31 {offsets = [0, 8], sizes = [32, 8], strides = [1, 1]} : vector<32x96xf32> to vector<32x8xf32>
    %49 = vector.extract_strided_slice %31 {offsets = [0, 40], sizes = [32, 8], strides = [1, 1]} : vector<32x96xf32> to vector<32x8xf32>
    %50 = vector.extract_strided_slice %31 {offsets = [0, 72], sizes = [32, 8], strides = [1, 1]} : vector<32x96xf32> to vector<32x8xf32>
    "tpu.trace_start"() <{level = 10 : i32, message = "qd,kd->qk"}> : () -> ()
    %cst_16 = arith.constant dense<0.000000e+00> : vector<32x32xf32>
    %51 = tpu.matmul %48, %49, %cst_16 {dimension_numbers = #tpu.dot_dimension_numbers<[1], [1], [0], [0], [0, 0, 1, 0], [], []>} : vector<32x8xf32>, vector<32x8xf32>, vector<32x32xf32> -> vector<32x32xf32>
    "tpu.trace_stop"() : () -> ()
    %52 = arith.addf %51, %2 : vector<32x32xf32>
    %cst_17 = arith.constant dense<0xFF800000> : vector<32xf32>
    %53 = vector.multi_reduction <maximumf>, %52, %cst_17 [1] : vector<32x32xf32> to vector<32xf32>
    %54 = vector.shape_cast %53 : vector<32xf32> to vector<32x1xf32>
    %55 = vector.broadcast %54 : vector<32x1xf32> to vector<32x32xf32>
    %56 = arith.subf %52, %55 : vector<32x32xf32>
    %57 = math.exp %56 : vector<32x32xf32>
    %cst_18 = arith.constant dense<0.000000e+00> : vector<32xf32>
    %58 = vector.multi_reduction <add>, %57, %cst_18 [1] : vector<32x32xf32> to vector<32xf32>
    %59 = vector.shape_cast %58 : vector<32xf32> to vector<32x1xf32>
    %60 = tpu.reciprocal %59 {approx = true} : vector<32x1xf32> -> vector<32x1xf32>
    %61 = vector.broadcast %60 : vector<32x1xf32> to vector<32x32xf32>
    %62 = arith.mulf %57, %61 : vector<32x32xf32>
    %cst_19 = arith.constant dense<0.000000e+00> : vector<32x8xf32>
    %63 = tpu.matmul %62, %50, %cst_19 {dimension_numbers = #tpu.dot_dimension_numbers<[1], [0], [0], [1], [0, 0, 1, 1], [], []>} : vector<32x32xf32>, vector<32x8xf32>, vector<32x8xf32> -> vector<32x8xf32>
    %64 = vector.extract_strided_slice %31 {offsets = [0, 16], sizes = [32, 8], strides = [1, 1]} : vector<32x96xf32> to vector<32x8xf32>
    %65 = vector.extract_strided_slice %31 {offsets = [0, 48], sizes = [32, 8], strides = [1, 1]} : vector<32x96xf32> to vector<32x8xf32>
    %66 = vector.extract_strided_slice %31 {offsets = [0, 80], sizes = [32, 8], strides = [1, 1]} : vector<32x96xf32> to vector<32x8xf32>
    "tpu.trace_start"() <{level = 10 : i32, message = "qd,kd->qk"}> : () -> ()
    %cst_20 = arith.constant dense<0.000000e+00> : vector<32x32xf32>
    %67 = tpu.matmul %64, %65, %cst_20 {dimension_numbers = #tpu.dot_dimension_numbers<[1], [1], [0], [0], [0, 0, 1, 0], [], []>} : vector<32x8xf32>, vector<32x8xf32>, vector<32x32xf32> -> vector<32x32xf32>
    "tpu.trace_stop"() : () -> ()
    %68 = arith.addf %67, %2 : vector<32x32xf32>
    %cst_21 = arith.constant dense<0xFF800000> : vector<32xf32>
    %69 = vector.multi_reduction <maximumf>, %68, %cst_21 [1] : vector<32x32xf32> to vector<32xf32>
    %70 = vector.shape_cast %69 : vector<32xf32> to vector<32x1xf32>
    %71 = vector.broadcast %70 : vector<32x1xf32> to vector<32x32xf32>
    %72 = arith.subf %68, %71 : vector<32x32xf32>
    %73 = math.exp %72 : vector<32x32xf32>
    %cst_22 = arith.constant dense<0.000000e+00> : vector<32xf32>
    %74 = vector.multi_reduction <add>, %73, %cst_22 [1] : vector<32x32xf32> to vector<32xf32>
    %75 = vector.shape_cast %74 : vector<32xf32> to vector<32x1xf32>
    %76 = tpu.reciprocal %75 {approx = true} : vector<32x1xf32> -> vector<32x1xf32>
    %77 = vector.broadcast %76 : vector<32x1xf32> to vector<32x32xf32>
    %78 = arith.mulf %73, %77 : vector<32x32xf32>
    %cst_23 = arith.constant dense<0.000000e+00> : vector<32x8xf32>
    %79 = tpu.matmul %78, %66, %cst_23 {dimension_numbers = #tpu.dot_dimension_numbers<[1], [0], [0], [1], [0, 0, 1, 1], [], []>} : vector<32x32xf32>, vector<32x8xf32>, vector<32x8xf32> -> vector<32x8xf32>
    %80 = vector.extract_strided_slice %31 {offsets = [0, 24], sizes = [32, 8], strides = [1, 1]} : vector<32x96xf32> to vector<32x8xf32>
    %81 = vector.extract_strided_slice %31 {offsets = [0, 56], sizes = [32, 8], strides = [1, 1]} : vector<32x96xf32> to vector<32x8xf32>
    %82 = vector.extract_strided_slice %31 {offsets = [0, 88], sizes = [32, 8], strides = [1, 1]} : vector<32x96xf32> to vector<32x8xf32>
    "tpu.trace_start"() <{level = 10 : i32, message = "qd,kd->qk"}> : () -> ()
    %cst_24 = arith.constant dense<0.000000e+00> : vector<32x32xf32>
    %83 = tpu.matmul %80, %81, %cst_24 {dimension_numbers = #tpu.dot_dimension_numbers<[1], [1], [0], [0], [0, 0, 1, 0], [], []>} : vector<32x8xf32>, vector<32x8xf32>, vector<32x32xf32> -> vector<32x32xf32>
    "tpu.trace_stop"() : () -> ()
    %84 = arith.addf %83, %2 : vector<32x32xf32>
    %cst_25 = arith.constant dense<0xFF800000> : vector<32xf32>
    %85 = vector.multi_reduction <maximumf>, %84, %cst_25 [1] : vector<32x32xf32> to vector<32xf32>
    %86 = vector.shape_cast %85 : vector<32xf32> to vector<32x1xf32>
    %87 = vector.broadcast %86 : vector<32x1xf32> to vector<32x32xf32>
    %88 = arith.subf %84, %87 : vector<32x32xf32>
    %89 = math.exp %88 : vector<32x32xf32>
    %cst_26 = arith.constant dense<0.000000e+00> : vector<32xf32>
    %90 = vector.multi_reduction <add>, %89, %cst_26 [1] : vector<32x32xf32> to vector<32xf32>
    %91 = vector.shape_cast %90 : vector<32xf32> to vector<32x1xf32>
    %92 = tpu.reciprocal %91 {approx = true} : vector<32x1xf32> -> vector<32x1xf32>
    %93 = vector.broadcast %92 : vector<32x1xf32> to vector<32x32xf32>
    %94 = arith.mulf %89, %93 : vector<32x32xf32>
    %cst_27 = arith.constant dense<0.000000e+00> : vector<32x8xf32>
    %95 = tpu.matmul %94, %82, %cst_27 {dimension_numbers = #tpu.dot_dimension_numbers<[1], [0], [0], [1], [0, 0, 1, 1], [], []>} : vector<32x32xf32>, vector<32x8xf32>, vector<32x8xf32> -> vector<32x8xf32>
    %96 = tpu.concatenate %47, %63, %79, %95 in 1 : vector<32x8xf32>, vector<32x8xf32>, vector<32x8xf32>, vector<32x8xf32> -> vector<32x32xf32>
    %c32 = arith.constant 32 : index
    %c0_28 = arith.constant 0 : index
    %97 = vector.load %arg1[%c32, %c0_28] : memref<384x128xf32, #tpu.memory_space<vmem>>, vector<32x32xf32>
    %cst_29 = arith.constant dense<0.000000e+00> : vector<32x32xf32>
    %98 = tpu.matmul %96, %97, %cst_29 {dimension_numbers = #tpu.dot_dimension_numbers<[1], [0], [0], [1], [0, 0, 1, 1], [], []>} : vector<32x32xf32>, vector<32x32xf32>, vector<32x32xf32> -> vector<32x32xf32>
    %c3 = arith.constant 3 : index
    %c0_30 = arith.constant 0 : index
    %99 = vector.load %arg2[%c3, %c0_30] : memref<20x128xf32, #tpu.memory_space<vmem>>, vector<1x32xf32>
    %100 = vector.broadcast %99 : vector<1x32xf32> to vector<32x32xf32>
    %101 = arith.addf %98, %100 : vector<32x32xf32>
    %102 = arith.addf %101, %26 : vector<32x32xf32>
    %c4 = arith.constant 4 : index
    %c0_31 = arith.constant 0 : index
    %103 = vector.load %arg2[%c4, %c0_31] : memref<20x128xf32, #tpu.memory_space<vmem>>, vector<1x32xf32>
    %c5 = arith.constant 5 : index
    %c0_32 = arith.constant 0 : index
    %104 = vector.load %arg2[%c5, %c0_32] : memref<20x128xf32, #tpu.memory_space<vmem>>, vector<1x32xf32>
    %cst_33 = arith.constant dense<0.000000e+00> : vector<32xf32>
    %105 = vector.multi_reduction <add>, %102, %cst_33 [1] : vector<32x32xf32> to vector<32xf32>
    %106 = vector.shape_cast %105 : vector<32xf32> to vector<32x1xf32>
    %cst_34 = arith.constant 3.200000e+01 : f32
    %107 = vector.broadcast %cst_34 : f32 to vector<32x1xf32>
    %108 = arith.divf %106, %107 : vector<32x1xf32>
    %109 = vector.broadcast %108 : vector<32x1xf32> to vector<32x32xf32>
    %110 = arith.subf %102, %109 : vector<32x32xf32>
    %111 = arith.mulf %110, %110 : vector<32x32xf32>
    %cst_35 = arith.constant dense<0.000000e+00> : vector<32xf32>
    %112 = vector.multi_reduction <add>, %111, %cst_35 [1] : vector<32x32xf32> to vector<32xf32>
    %113 = vector.shape_cast %112 : vector<32xf32> to vector<32x1xf32>
    %cst_36 = arith.constant 3.200000e+01 : f32
    %114 = vector.broadcast %cst_36 : f32 to vector<32x1xf32>
    %115 = arith.divf %113, %114 : vector<32x1xf32>
    %116 = vector.broadcast %108 : vector<32x1xf32> to vector<32x32xf32>
    %117 = arith.subf %102, %116 : vector<32x32xf32>
    %cst_37 = arith.constant 9.99999974E-6 : f32
    %118 = vector.broadcast %cst_37 : f32 to vector<32x1xf32>
    %119 = arith.addf %115, %118 : vector<32x1xf32>
    %120 = math.rsqrt %119 : vector<32x1xf32>
    %121 = vector.broadcast %120 : vector<32x1xf32> to vector<32x32xf32>
    %122 = arith.mulf %117, %121 : vector<32x32xf32>
    %123 = vector.broadcast %103 : vector<1x32xf32> to vector<32x32xf32>
    %124 = arith.mulf %122, %123 : vector<32x32xf32>
    %125 = vector.broadcast %104 : vector<1x32xf32> to vector<32x32xf32>
    %126 = arith.addf %124, %125 : vector<32x32xf32>
    %c64 = arith.constant 64 : index
    %c0_38 = arith.constant 0 : index
    %127 = vector.load %arg1[%c64, %c0_38] : memref<384x128xf32, #tpu.memory_space<vmem>>, vector<32x64xf32>
    %cst_39 = arith.constant dense<0.000000e+00> : vector<32x64xf32>
    %128 = tpu.matmul %126, %127, %cst_39 {dimension_numbers = #tpu.dot_dimension_numbers<[1], [0], [0], [1], [0, 0, 1, 1], [], []>} : vector<32x32xf32>, vector<32x64xf32>, vector<32x64xf32> -> vector<32x64xf32>
    %c6 = arith.constant 6 : index
    %c0_40 = arith.constant 0 : index
    %129 = vector.load %arg2[%c6, %c0_40] : memref<20x128xf32, #tpu.memory_space<vmem>>, vector<1x64xf32>
    %130 = vector.broadcast %129 : vector<1x64xf32> to vector<32x64xf32>
    %131 = arith.addf %128, %130 : vector<32x64xf32>
    %cst_41 = arith.constant 5.000000e-01 : f32
    %132 = vector.broadcast %cst_41 : f32 to vector<32x64xf32>
    %133 = arith.mulf %132, %131 : vector<32x64xf32>
    %cst_42 = arith.constant 4.471500e-02 : f32
    %134 = vector.broadcast %cst_42 : f32 to vector<32x64xf32>
    %135 = arith.mulf %134, %131 : vector<32x64xf32>
    %136 = arith.mulf %135, %131 : vector<32x64xf32>
    %137 = arith.mulf %136, %131 : vector<32x64xf32>
    %138 = arith.addf %131, %137 : vector<32x64xf32>
    %cst_43 = arith.constant 0.797884583 : f32
    %139 = vector.broadcast %cst_43 : f32 to vector<32x64xf32>
    %140 = arith.mulf %139, %138 : vector<32x64xf32>
    %141 = math.tanh %140 : vector<32x64xf32>
    %cst_44 = arith.constant 1.000000e+00 : f32
    %142 = vector.broadcast %cst_44 : f32 to vector<32x64xf32>
    %143 = arith.addf %142, %141 : vector<32x64xf32>
    %144 = arith.mulf %133, %143 : vector<32x64xf32>
    %c96 = arith.constant 96 : index
    %c0_45 = arith.constant 0 : index
    %145 = vector.load %arg1[%c96, %c0_45] : memref<384x128xf32, #tpu.memory_space<vmem>>, vector<64x32xf32>
    %cst_46 = arith.constant dense<0.000000e+00> : vector<32x32xf32>
    %146 = tpu.matmul %144, %145, %cst_46 {dimension_numbers = #tpu.dot_dimension_numbers<[1], [0], [0], [1], [0, 0, 1, 1], [], []>} : vector<32x64xf32>, vector<64x32xf32>, vector<32x32xf32> -> vector<32x32xf32>
    %c7 = arith.constant 7 : index
    %c0_47 = arith.constant 0 : index
    %147 = vector.load %arg2[%c7, %c0_47] : memref<20x128xf32, #tpu.memory_space<vmem>>, vector<1x32xf32>
    %148 = vector.broadcast %147 : vector<1x32xf32> to vector<32x32xf32>
    %149 = arith.addf %146, %148 : vector<32x32xf32>
    %150 = arith.addf %149, %126 : vector<32x32xf32>
    %c8 = arith.constant 8 : index
    %c0_48 = arith.constant 0 : index
    %151 = vector.load %arg2[%c8, %c0_48] : memref<20x128xf32, #tpu.memory_space<vmem>>, vector<1x32xf32>
    %c9 = arith.constant 9 : index
    %c0_49 = arith.constant 0 : index
    %152 = vector.load %arg2[%c9, %c0_49] : memref<20x128xf32, #tpu.memory_space<vmem>>, vector<1x32xf32>
    %cst_50 = arith.constant dense<0.000000e+00> : vector<32xf32>
    %153 = vector.multi_reduction <add>, %150, %cst_50 [1] : vector<32x32xf32> to vector<32xf32>
    %154 = vector.shape_cast %153 : vector<32xf32> to vector<32x1xf32>
    %cst_51 = arith.constant 3.200000e+01 : f32
    %155 = vector.broadcast %cst_51 : f32 to vector<32x1xf32>
    %156 = arith.divf %154, %155 : vector<32x1xf32>
    %157 = vector.broadcast %156 : vector<32x1xf32> to vector<32x32xf32>
    %158 = arith.subf %150, %157 : vector<32x32xf32>
    %159 = arith.mulf %158, %158 : vector<32x32xf32>
    %cst_52 = arith.constant dense<0.000000e+00> : vector<32xf32>
    %160 = vector.multi_reduction <add>, %159, %cst_52 [1] : vector<32x32xf32> to vector<32xf32>
    %161 = vector.shape_cast %160 : vector<32xf32> to vector<32x1xf32>
    %cst_53 = arith.constant 3.200000e+01 : f32
    %162 = vector.broadcast %cst_53 : f32 to vector<32x1xf32>
    %163 = arith.divf %161, %162 : vector<32x1xf32>
    %164 = vector.broadcast %156 : vector<32x1xf32> to vector<32x32xf32>
    %165 = arith.subf %150, %164 : vector<32x32xf32>
    %cst_54 = arith.constant 9.99999974E-6 : f32
    %166 = vector.broadcast %cst_54 : f32 to vector<32x1xf32>
    %167 = arith.addf %163, %166 : vector<32x1xf32>
    %168 = math.rsqrt %167 : vector<32x1xf32>
    %169 = vector.broadcast %168 : vector<32x1xf32> to vector<32x32xf32>
    %170 = arith.mulf %165, %169 : vector<32x32xf32>
    %171 = vector.broadcast %151 : vector<1x32xf32> to vector<32x32xf32>
    %172 = arith.mulf %170, %171 : vector<32x32xf32>
    %173 = vector.broadcast %152 : vector<1x32xf32> to vector<32x32xf32>
    %174 = arith.addf %172, %173 : vector<32x32xf32>
    %c160 = arith.constant 160 : index
    %c0_55 = arith.constant 0 : index
    %175 = vector.load %arg1[%c160, %c0_55] : memref<384x128xf32, #tpu.memory_space<vmem>>, vector<32x96xf32>
    %cst_56 = arith.constant dense<0.000000e+00> : vector<32x96xf32>
    %176 = tpu.matmul %174, %175, %cst_56 {dimension_numbers = #tpu.dot_dimension_numbers<[1], [0], [0], [1], [0, 0, 1, 1], [], []>} : vector<32x32xf32>, vector<32x96xf32>, vector<32x96xf32> -> vector<32x96xf32>
    %c10 = arith.constant 10 : index
    %c0_57 = arith.constant 0 : index
    %177 = vector.load %arg2[%c10, %c0_57] : memref<20x128xf32, #tpu.memory_space<vmem>>, vector<1x96xf32>
    %178 = vector.broadcast %177 : vector<1x96xf32> to vector<32x96xf32>
    %179 = arith.addf %176, %178 : vector<32x96xf32>
    %180 = vector.extract_strided_slice %179 {offsets = [0, 0], sizes = [32, 8], strides = [1, 1]} : vector<32x96xf32> to vector<32x8xf32>
    %181 = vector.extract_strided_slice %179 {offsets = [0, 32], sizes = [32, 8], strides = [1, 1]} : vector<32x96xf32> to vector<32x8xf32>
    %182 = vector.extract_strided_slice %179 {offsets = [0, 64], sizes = [32, 8], strides = [1, 1]} : vector<32x96xf32> to vector<32x8xf32>
    "tpu.trace_start"() <{level = 10 : i32, message = "qd,kd->qk"}> : () -> ()
    %cst_58 = arith.constant dense<0.000000e+00> : vector<32x32xf32>
    %183 = tpu.matmul %180, %181, %cst_58 {dimension_numbers = #tpu.dot_dimension_numbers<[1], [1], [0], [0], [0, 0, 1, 0], [], []>} : vector<32x8xf32>, vector<32x8xf32>, vector<32x32xf32> -> vector<32x32xf32>
    "tpu.trace_stop"() : () -> ()
    %184 = arith.addf %183, %2 : vector<32x32xf32>
    %cst_59 = arith.constant dense<0xFF800000> : vector<32xf32>
    %185 = vector.multi_reduction <maximumf>, %184, %cst_59 [1] : vector<32x32xf32> to vector<32xf32>
    %186 = vector.shape_cast %185 : vector<32xf32> to vector<32x1xf32>
    %187 = vector.broadcast %186 : vector<32x1xf32> to vector<32x32xf32>
    %188 = arith.subf %184, %187 : vector<32x32xf32>
    %189 = math.exp %188 : vector<32x32xf32>
    %cst_60 = arith.constant dense<0.000000e+00> : vector<32xf32>
    %190 = vector.multi_reduction <add>, %189, %cst_60 [1] : vector<32x32xf32> to vector<32xf32>
    %191 = vector.shape_cast %190 : vector<32xf32> to vector<32x1xf32>
    %192 = tpu.reciprocal %191 {approx = true} : vector<32x1xf32> -> vector<32x1xf32>
    %193 = vector.broadcast %192 : vector<32x1xf32> to vector<32x32xf32>
    %194 = arith.mulf %189, %193 : vector<32x32xf32>
    %cst_61 = arith.constant dense<0.000000e+00> : vector<32x8xf32>
    %195 = tpu.matmul %194, %182, %cst_61 {dimension_numbers = #tpu.dot_dimension_numbers<[1], [0], [0], [1], [0, 0, 1, 1], [], []>} : vector<32x32xf32>, vector<32x8xf32>, vector<32x8xf32> -> vector<32x8xf32>
    %196 = vector.extract_strided_slice %179 {offsets = [0, 8], sizes = [32, 8], strides = [1, 1]} : vector<32x96xf32> to vector<32x8xf32>
    %197 = vector.extract_strided_slice %179 {offsets = [0, 40], sizes = [32, 8], strides = [1, 1]} : vector<32x96xf32> to vector<32x8xf32>
    %198 = vector.extract_strided_slice %179 {offsets = [0, 72], sizes = [32, 8], strides = [1, 1]} : vector<32x96xf32> to vector<32x8xf32>
    "tpu.trace_start"() <{level = 10 : i32, message = "qd,kd->qk"}> : () -> ()
    %cst_62 = arith.constant dense<0.000000e+00> : vector<32x32xf32>
    %199 = tpu.matmul %196, %197, %cst_62 {dimension_numbers = #tpu.dot_dimension_numbers<[1], [1], [0], [0], [0, 0, 1, 0], [], []>} : vector<32x8xf32>, vector<32x8xf32>, vector<32x32xf32> -> vector<32x32xf32>
    "tpu.trace_stop"() : () -> ()
    %200 = arith.addf %199, %2 : vector<32x32xf32>
    %cst_63 = arith.constant dense<0xFF800000> : vector<32xf32>
    %201 = vector.multi_reduction <maximumf>, %200, %cst_63 [1] : vector<32x32xf32> to vector<32xf32>
    %202 = vector.shape_cast %201 : vector<32xf32> to vector<32x1xf32>
    %203 = vector.broadcast %202 : vector<32x1xf32> to vector<32x32xf32>
    %204 = arith.subf %200, %203 : vector<32x32xf32>
    %205 = math.exp %204 : vector<32x32xf32>
    %cst_64 = arith.constant dense<0.000000e+00> : vector<32xf32>
    %206 = vector.multi_reduction <add>, %205, %cst_64 [1] : vector<32x32xf32> to vector<32xf32>
    %207 = vector.shape_cast %206 : vector<32xf32> to vector<32x1xf32>
    %208 = tpu.reciprocal %207 {approx = true} : vector<32x1xf32> -> vector<32x1xf32>
    %209 = vector.broadcast %208 : vector<32x1xf32> to vector<32x32xf32>
    %210 = arith.mulf %205, %209 : vector<32x32xf32>
    %cst_65 = arith.constant dense<0.000000e+00> : vector<32x8xf32>
    %211 = tpu.matmul %210, %198, %cst_65 {dimension_numbers = #tpu.dot_dimension_numbers<[1], [0], [0], [1], [0, 0, 1, 1], [], []>} : vector<32x32xf32>, vector<32x8xf32>, vector<32x8xf32> -> vector<32x8xf32>
    %212 = vector.extract_strided_slice %179 {offsets = [0, 16], sizes = [32, 8], strides = [1, 1]} : vector<32x96xf32> to vector<32x8xf32>
    %213 = vector.extract_strided_slice %179 {offsets = [0, 48], sizes = [32, 8], strides = [1, 1]} : vector<32x96xf32> to vector<32x8xf32>
    %214 = vector.extract_strided_slice %179 {offsets = [0, 80], sizes = [32, 8], strides = [1, 1]} : vector<32x96xf32> to vector<32x8xf32>
    "tpu.trace_start"() <{level = 10 : i32, message = "qd,kd->qk"}> : () -> ()
    %cst_66 = arith.constant dense<0.000000e+00> : vector<32x32xf32>
    %215 = tpu.matmul %212, %213, %cst_66 {dimension_numbers = #tpu.dot_dimension_numbers<[1], [1], [0], [0], [0, 0, 1, 0], [], []>} : vector<32x8xf32>, vector<32x8xf32>, vector<32x32xf32> -> vector<32x32xf32>
    "tpu.trace_stop"() : () -> ()
    %216 = arith.addf %215, %2 : vector<32x32xf32>
    %cst_67 = arith.constant dense<0xFF800000> : vector<32xf32>
    %217 = vector.multi_reduction <maximumf>, %216, %cst_67 [1] : vector<32x32xf32> to vector<32xf32>
    %218 = vector.shape_cast %217 : vector<32xf32> to vector<32x1xf32>
    %219 = vector.broadcast %218 : vector<32x1xf32> to vector<32x32xf32>
    %220 = arith.subf %216, %219 : vector<32x32xf32>
    %221 = math.exp %220 : vector<32x32xf32>
    %cst_68 = arith.constant dense<0.000000e+00> : vector<32xf32>
    %222 = vector.multi_reduction <add>, %221, %cst_68 [1] : vector<32x32xf32> to vector<32xf32>
    %223 = vector.shape_cast %222 : vector<32xf32> to vector<32x1xf32>
    %224 = tpu.reciprocal %223 {approx = true} : vector<32x1xf32> -> vector<32x1xf32>
    %225 = vector.broadcast %224 : vector<32x1xf32> to vector<32x32xf32>
    %226 = arith.mulf %221, %225 : vector<32x32xf32>
    %cst_69 = arith.constant dense<0.000000e+00> : vector<32x8xf32>
    %227 = tpu.matmul %226, %214, %cst_69 {dimension_numbers = #tpu.dot_dimension_numbers<[1], [0], [0], [1], [0, 0, 1, 1], [], []>} : vector<32x32xf32>, vector<32x8xf32>, vector<32x8xf32> -> vector<32x8xf32>
    %228 = vector.extract_strided_slice %179 {offsets = [0, 24], sizes = [32, 8], strides = [1, 1]} : vector<32x96xf32> to vector<32x8xf32>
    %229 = vector.extract_strided_slice %179 {offsets = [0, 56], sizes = [32, 8], strides = [1, 1]} : vector<32x96xf32> to vector<32x8xf32>
    %230 = vector.extract_strided_slice %179 {offsets = [0, 88], sizes = [32, 8], strides = [1, 1]} : vector<32x96xf32> to vector<32x8xf32>
    "tpu.trace_start"() <{level = 10 : i32, message = "qd,kd->qk"}> : () -> ()
    %cst_70 = arith.constant dense<0.000000e+00> : vector<32x32xf32>
    %231 = tpu.matmul %228, %229, %cst_70 {dimension_numbers = #tpu.dot_dimension_numbers<[1], [1], [0], [0], [0, 0, 1, 0], [], []>} : vector<32x8xf32>, vector<32x8xf32>, vector<32x32xf32> -> vector<32x32xf32>
    "tpu.trace_stop"() : () -> ()
    %232 = arith.addf %231, %2 : vector<32x32xf32>
    %cst_71 = arith.constant dense<0xFF800000> : vector<32xf32>
    %233 = vector.multi_reduction <maximumf>, %232, %cst_71 [1] : vector<32x32xf32> to vector<32xf32>
    %234 = vector.shape_cast %233 : vector<32xf32> to vector<32x1xf32>
    %235 = vector.broadcast %234 : vector<32x1xf32> to vector<32x32xf32>
    %236 = arith.subf %232, %235 : vector<32x32xf32>
    %237 = math.exp %236 : vector<32x32xf32>
    %cst_72 = arith.constant dense<0.000000e+00> : vector<32xf32>
    %238 = vector.multi_reduction <add>, %237, %cst_72 [1] : vector<32x32xf32> to vector<32xf32>
    %239 = vector.shape_cast %238 : vector<32xf32> to vector<32x1xf32>
    %240 = tpu.reciprocal %239 {approx = true} : vector<32x1xf32> -> vector<32x1xf32>
    %241 = vector.broadcast %240 : vector<32x1xf32> to vector<32x32xf32>
    %242 = arith.mulf %237, %241 : vector<32x32xf32>
    %cst_73 = arith.constant dense<0.000000e+00> : vector<32x8xf32>
    %243 = tpu.matmul %242, %230, %cst_73 {dimension_numbers = #tpu.dot_dimension_numbers<[1], [0], [0], [1], [0, 0, 1, 1], [], []>} : vector<32x32xf32>, vector<32x8xf32>, vector<32x8xf32> -> vector<32x8xf32>
    %244 = tpu.concatenate %195, %211, %227, %243 in 1 : vector<32x8xf32>, vector<32x8xf32>, vector<32x8xf32>, vector<32x8xf32> -> vector<32x32xf32>
    %c192 = arith.constant 192 : index
    %c0_74 = arith.constant 0 : index
    %245 = vector.load %arg1[%c192, %c0_74] : memref<384x128xf32, #tpu.memory_space<vmem>>, vector<32x32xf32>
    %cst_75 = arith.constant dense<0.000000e+00> : vector<32x32xf32>
    %246 = tpu.matmul %244, %245, %cst_75 {dimension_numbers = #tpu.dot_dimension_numbers<[1], [0], [0], [1], [0, 0, 1, 1], [], []>} : vector<32x32xf32>, vector<32x32xf32>, vector<32x32xf32> -> vector<32x32xf32>
    %c11 = arith.constant 11 : index
    %c0_76 = arith.constant 0 : index
    %247 = vector.load %arg2[%c11, %c0_76] : memref<20x128xf32, #tpu.memory_space<vmem>>, vector<1x32xf32>
    %248 = vector.broadcast %247 : vector<1x32xf32> to vector<32x32xf32>
    %249 = arith.addf %246, %248 : vector<32x32xf32>
    %250 = arith.addf %249, %174 : vector<32x32xf32>
    %c12 = arith.constant 12 : index
    %c0_77 = arith.constant 0 : index
    %251 = vector.load %arg2[%c12, %c0_77] : memref<20x128xf32, #tpu.memory_space<vmem>>, vector<1x32xf32>
    %c13 = arith.constant 13 : index
    %c0_78 = arith.constant 0 : index
    %252 = vector.load %arg2[%c13, %c0_78] : memref<20x128xf32, #tpu.memory_space<vmem>>, vector<1x32xf32>
    %cst_79 = arith.constant dense<0.000000e+00> : vector<32xf32>
    %253 = vector.multi_reduction <add>, %250, %cst_79 [1] : vector<32x32xf32> to vector<32xf32>
    %254 = vector.shape_cast %253 : vector<32xf32> to vector<32x1xf32>
    %cst_80 = arith.constant 3.200000e+01 : f32
    %255 = vector.broadcast %cst_80 : f32 to vector<32x1xf32>
    %256 = arith.divf %254, %255 : vector<32x1xf32>
    %257 = vector.broadcast %256 : vector<32x1xf32> to vector<32x32xf32>
    %258 = arith.subf %250, %257 : vector<32x32xf32>
    %259 = arith.mulf %258, %258 : vector<32x32xf32>
    %cst_81 = arith.constant dense<0.000000e+00> : vector<32xf32>
    %260 = vector.multi_reduction <add>, %259, %cst_81 [1] : vector<32x32xf32> to vector<32xf32>
    %261 = vector.shape_cast %260 : vector<32xf32> to vector<32x1xf32>
    %cst_82 = arith.constant 3.200000e+01 : f32
    %262 = vector.broadcast %cst_82 : f32 to vector<32x1xf32>
    %263 = arith.divf %261, %262 : vector<32x1xf32>
    %264 = vector.broadcast %256 : vector<32x1xf32> to vector<32x32xf32>
    %265 = arith.subf %250, %264 : vector<32x32xf32>
    %cst_83 = arith.constant 9.99999974E-6 : f32
    %266 = vector.broadcast %cst_83 : f32 to vector<32x1xf32>
    %267 = arith.addf %263, %266 : vector<32x1xf32>
    %268 = math.rsqrt %267 : vector<32x1xf32>
    %269 = vector.broadcast %268 : vector<32x1xf32> to vector<32x32xf32>
    %270 = arith.mulf %265, %269 : vector<32x32xf32>
    %271 = vector.broadcast %251 : vector<1x32xf32> to vector<32x32xf32>
    %272 = arith.mulf %270, %271 : vector<32x32xf32>
    %273 = vector.broadcast %252 : vector<1x32xf32> to vector<32x32xf32>
    %274 = arith.addf %272, %273 : vector<32x32xf32>
    %c224 = arith.constant 224 : index
    %c0_84 = arith.constant 0 : index
    %275 = vector.load %arg1[%c224, %c0_84] : memref<384x128xf32, #tpu.memory_space<vmem>>, vector<32x64xf32>
    %cst_85 = arith.constant dense<0.000000e+00> : vector<32x64xf32>
    %276 = tpu.matmul %274, %275, %cst_85 {dimension_numbers = #tpu.dot_dimension_numbers<[1], [0], [0], [1], [0, 0, 1, 1], [], []>} : vector<32x32xf32>, vector<32x64xf32>, vector<32x64xf32> -> vector<32x64xf32>
    %c14 = arith.constant 14 : index
    %c0_86 = arith.constant 0 : index
    %277 = vector.load %arg2[%c14, %c0_86] : memref<20x128xf32, #tpu.memory_space<vmem>>, vector<1x64xf32>
    %278 = vector.broadcast %277 : vector<1x64xf32> to vector<32x64xf32>
    %279 = arith.addf %276, %278 : vector<32x64xf32>
    %cst_87 = arith.constant 5.000000e-01 : f32
    %280 = vector.broadcast %cst_87 : f32 to vector<32x64xf32>
    %281 = arith.mulf %280, %279 : vector<32x64xf32>
    %cst_88 = arith.constant 4.471500e-02 : f32
    %282 = vector.broadcast %cst_88 : f32 to vector<32x64xf32>
    %283 = arith.mulf %282, %279 : vector<32x64xf32>
    %284 = arith.mulf %283, %279 : vector<32x64xf32>
    %285 = arith.mulf %284, %279 : vector<32x64xf32>
    %286 = arith.addf %279, %285 : vector<32x64xf32>
    %cst_89 = arith.constant 0.797884583 : f32
    %287 = vector.broadcast %cst_89 : f32 to vector<32x64xf32>
    %288 = arith.mulf %287, %286 : vector<32x64xf32>
    %289 = math.tanh %288 : vector<32x64xf32>
    %cst_90 = arith.constant 1.000000e+00 : f32
    %290 = vector.broadcast %cst_90 : f32 to vector<32x64xf32>
    %291 = arith.addf %290, %289 : vector<32x64xf32>
    %292 = arith.mulf %281, %291 : vector<32x64xf32>
    %c256 = arith.constant 256 : index
    %c0_91 = arith.constant 0 : index
    %293 = vector.load %arg1[%c256, %c0_91] : memref<384x128xf32, #tpu.memory_space<vmem>>, vector<64x32xf32>
    %cst_92 = arith.constant dense<0.000000e+00> : vector<32x32xf32>
    %294 = tpu.matmul %292, %293, %cst_92 {dimension_numbers = #tpu.dot_dimension_numbers<[1], [0], [0], [1], [0, 0, 1, 1], [], []>} : vector<32x64xf32>, vector<64x32xf32>, vector<32x32xf32> -> vector<32x32xf32>
    %c15 = arith.constant 15 : index
    %c0_93 = arith.constant 0 : index
    %295 = vector.load %arg2[%c15, %c0_93] : memref<20x128xf32, #tpu.memory_space<vmem>>, vector<1x32xf32>
    %296 = vector.broadcast %295 : vector<1x32xf32> to vector<32x32xf32>
    %297 = arith.addf %294, %296 : vector<32x32xf32>
    %298 = arith.addf %297, %274 : vector<32x32xf32>
    %c16 = arith.constant 16 : index
    %c0_94 = arith.constant 0 : index
    %299 = vector.load %arg2[%c16, %c0_94] : memref<20x128xf32, #tpu.memory_space<vmem>>, vector<1x32xf32>
    %c17 = arith.constant 17 : index
    %c0_95 = arith.constant 0 : index
    %300 = vector.load %arg2[%c17, %c0_95] : memref<20x128xf32, #tpu.memory_space<vmem>>, vector<1x32xf32>
    %cst_96 = arith.constant dense<0.000000e+00> : vector<32xf32>
    %301 = vector.multi_reduction <add>, %298, %cst_96 [1] : vector<32x32xf32> to vector<32xf32>
    %302 = vector.shape_cast %301 : vector<32xf32> to vector<32x1xf32>
    %cst_97 = arith.constant 3.200000e+01 : f32
    %303 = vector.broadcast %cst_97 : f32 to vector<32x1xf32>
    %304 = arith.divf %302, %303 : vector<32x1xf32>
    %305 = vector.broadcast %304 : vector<32x1xf32> to vector<32x32xf32>
    %306 = arith.subf %298, %305 : vector<32x32xf32>
    %307 = arith.mulf %306, %306 : vector<32x32xf32>
    %cst_98 = arith.constant dense<0.000000e+00> : vector<32xf32>
    %308 = vector.multi_reduction <add>, %307, %cst_98 [1] : vector<32x32xf32> to vector<32xf32>
    %309 = vector.shape_cast %308 : vector<32xf32> to vector<32x1xf32>
    %cst_99 = arith.constant 3.200000e+01 : f32
    %310 = vector.broadcast %cst_99 : f32 to vector<32x1xf32>
    %311 = arith.divf %309, %310 : vector<32x1xf32>
    %312 = vector.broadcast %304 : vector<32x1xf32> to vector<32x32xf32>
    %313 = arith.subf %298, %312 : vector<32x32xf32>
    %cst_100 = arith.constant 9.99999974E-6 : f32
    %314 = vector.broadcast %cst_100 : f32 to vector<32x1xf32>
    %315 = arith.addf %311, %314 : vector<32x1xf32>
    %316 = math.rsqrt %315 : vector<32x1xf32>
    %317 = vector.broadcast %316 : vector<32x1xf32> to vector<32x32xf32>
    %318 = arith.mulf %313, %317 : vector<32x32xf32>
    %319 = vector.broadcast %299 : vector<1x32xf32> to vector<32x32xf32>
    %320 = arith.mulf %318, %319 : vector<32x32xf32>
    %321 = vector.broadcast %300 : vector<1x32xf32> to vector<32x32xf32>
    %322 = arith.addf %320, %321 : vector<32x32xf32>
    %323 = vector.extract_strided_slice %0 {offsets = [0, 64], sizes = [2, 32], strides = [1, 1]} : vector<32x128xf32> to vector<2x32xf32>
    %cst_101 = arith.constant dense<0.000000e+00> : vector<2x32xf32>
    %324 = tpu.matmul %323, %322, %cst_101 {dimension_numbers = #tpu.dot_dimension_numbers<[1], [0], [0], [1], [0, 0, 1, 1], [], []>} : vector<2x32xf32>, vector<32x32xf32>, vector<2x32xf32> -> vector<2x32xf32>
    %c320 = arith.constant 320 : index
    %c0_102 = arith.constant 0 : index
    %325 = vector.load %arg1[%c320, %c0_102] : memref<384x128xf32, #tpu.memory_space<vmem>>, vector<32x32xf32>
    %cst_103 = arith.constant dense<0.000000e+00> : vector<2x32xf32>
    %326 = tpu.matmul %324, %325, %cst_103 {dimension_numbers = #tpu.dot_dimension_numbers<[1], [0], [0], [1], [0, 0, 1, 1], [], []>} : vector<2x32xf32>, vector<32x32xf32>, vector<2x32xf32> -> vector<2x32xf32>
    %c18 = arith.constant 18 : index
    %c0_104 = arith.constant 0 : index
    %327 = vector.load %arg2[%c18, %c0_104] : memref<20x128xf32, #tpu.memory_space<vmem>>, vector<1x32xf32>
    %328 = vector.broadcast %327 : vector<1x32xf32> to vector<2x32xf32>
    %329 = arith.addf %326, %328 : vector<2x32xf32>
    %330 = math.tanh %329 : vector<2x32xf32>
    %c352 = arith.constant 352 : index
    %c0_105 = arith.constant 0 : index
    %331 = vector.load %arg1[%c352, %c0_105] : memref<384x128xf32, #tpu.memory_space<vmem>>, vector<32x128xf32>
    %cst_106 = arith.constant dense<0.000000e+00> : vector<2x128xf32>
    %332 = tpu.matmul %330, %331, %cst_106 {dimension_numbers = #tpu.dot_dimension_numbers<[1], [0], [0], [1], [0, 0, 1, 1], [], []>} : vector<2x32xf32>, vector<32x128xf32>, vector<2x128xf32> -> vector<2x128xf32>
    %c19 = arith.constant 19 : index
    %c0_107 = arith.constant 0 : index
    %333 = vector.load %arg2[%c19, %c0_107] : memref<20x128xf32, #tpu.memory_space<vmem>>, vector<1x128xf32>
    %334 = vector.broadcast %333 : vector<1x128xf32> to vector<2x128xf32>
    %335 = arith.addf %332, %334 : vector<2x128xf32>
    %cst_108 = arith.constant dense<0xFF800000> : vector<2xf32>
    %336 = vector.multi_reduction <maximumf>, %335, %cst_108 [1] : vector<2x128xf32> to vector<2xf32>
    %337 = vector.shape_cast %336 : vector<2xf32> to vector<2x1xf32>
    %338 = vector.broadcast %337 : vector<2x1xf32> to vector<2x128xf32>
    %339 = arith.subf %335, %338 : vector<2x128xf32>
    %340 = math.exp %339 : vector<2x128xf32>
    %cst_109 = arith.constant dense<0.000000e+00> : vector<2xf32>
    %341 = vector.multi_reduction <add>, %340, %cst_109 [1] : vector<2x128xf32> to vector<2xf32>
    %342 = vector.shape_cast %341 : vector<2xf32> to vector<2x1xf32>
    %343 = vector.broadcast %342 : vector<2x1xf32> to vector<2x128xf32>
    %344 = arith.divf %340, %343 : vector<2x128xf32>
    %345 = tpu.concatenate %335, %344 in 0 : vector<2x128xf32>, vector<2x128xf32> -> vector<4x128xf32>
    %c0_110 = arith.constant 0 : index
    %c0_111 = arith.constant 0 : index
    %346 = vector.load %arg3[%c0_110, %c0_111] : memref<4x128xf32, #tpu.memory_space<vmem>>, vector<4x128xf32>
    tpu.vector_store %arg3[%c0_110, %c0_111], %345 {strides = array<i32>} : memref<4x128xf32, #tpu.memory_space<vmem>>, vector<4x128xf32>,
    return
  }
}

</mosaic_0001>

<bundles_post_ra>
// kernel: qualifier_forward.1
= control target key start
LH: loop header
LB: loop body
LE: loop exit
PB: predicated region body
PF: predicated region fallthrough
CT: control target
= control target key end

     0   :  { %vm20_vm0 = vcmask 261120   ;;  %vm224_vm1 = vcmask 64512   ;;  %s5243_s7 = smov 96   ;;  %s5244_s8 = smov 64   ;;  %vm1341_vm3 = vcmask 130048   ;;  %vm1346_vm4 = vcmask 195584   ;;  %s6170_s0 = inlined_call_operand.vmem [shape: f32[32,128], index: 0, kind: input, shape index: {}]   ;;  %s6171_s1 = inlined_call_operand.vmem [shape: f32[384,128], index: 1, kind: input, shape index: {}]   ;;  %s6172_s2 = inlined_call_operand.vmem [shape: f32[20,128], index: 2, kind: input, shape index: {}]   ;;  %s6173_s3 = inlined_call_operand.vmem [shape: f32[4,128], index: 3, kind: output, shape index: {}]  }
   0x1   :  { %v5283_v0 = vld [vmem:[%s6170_s0] sm:$0xff]  ;;  %v5288_v1 = vld [vmem:[%s6170_s0 + $0x10] sm:$0xff]  ;;  %v5293_v2 = vld [vmem:[%s6170_s0 + $0x8] sm:$0xff]  ;;  %s5245_s9 = smov 88   ;;  %s5246_s10 = smov 120   ;;  %vm1686_vm5 = vcmask 523264  }
   0x2   :  { %v21_v3 = vsel %vm20_vm0, %v5283_v0, 0.0  ;;  %v27_v4 = vsel %vm20_vm0, %v5288_v1, 0.0  ;;  %v5302_v5 = vld [vmem:[%s6170_s0 + $0x18] sm:$0xff]  ;;  %v24_v6 = vsel %vm20_vm0, %v5293_v2, 0.0  ;;  %v90_v28 = vld [vmem:[%s6171_s1] sm:$0xff]  ;;  %v91_v29 = vld [vmem:[%s6171_s1 + $0x8] sm:$0xff] }
   0x3   :  { %22 = vadd.xlane.f32.xlu0 %v21_v3  ;;  %28 = vadd.xlane.f32.xlu1 %v27_v4  ;;  %v30_v7 = vsel %vm20_vm0, %v5302_v5, 0.0  ;;  %v92_v30 = vld [vmem:[%s6171_s1 + $0x10] sm:$0xff]  ;;  %v4617_v31 = vpack.c.bf16 %v91_v29, %v90_v28  ;;  %v93_v32 = vld [vmem:[%s6171_s1 + $0x18] sm:$0xff]  ;;  %v3866_v47 = vld [vmem:[%s6172_s2] ss:$0 sm:$0xff]  ;;  %s5247_s11 = smov 56  }
   0x4   :  { %v4621_v33 = vpack.c.bf16 %v93_v32, %v92_v30  ;;  %v3867_v49 = vld [vmem:[%s6172_s2 + $0x1] ss:$0 sm:$0xff]  ;;  %v3868_v3 = vld [vmem:[%s6172_s2 + $0x2] ss:$0 sm:$0xff]  ;;  %vm5385_vm2 = vmpackc.low %vm224_vm1, %vm224_vm1  ;;  %s5248_s12 = smov 80   ;;  %s5249_s13 = smov 112  }
   0x5   :  { %4618 = vmatprep.subr.bf16.mxu0 %v4617_v31  ;;  %s5250_s14 = smov 48   ;;  %s5251_s15 = smov 72   ;;  %vm5258_vm6 = vmmov 0   ;;  %vm3845_vm7 = vcmask 1041408  }
   0x6   :  { %4620 = vmatpush3.bf16.msra.mxu0 %v4617_v31  ;;  %s5252_s16 = smov 104   ;;  %s5253_s17 = smov 40  }
   0x7   :  { %25 = vadd.xlane.f32.xlu0 %v24_v6  ;;  %31 = vadd.xlane.f32.xlu1 %v30_v7  ;;  %s5254_s18 = smov 8   ;;  %s5255_s19 = smov 16  }
   0x8   :  { %4622 = vmatprep.subr.bf16.mxu0 %v4621_v33  ;;  %s5256_s28 = smov 24  }
   0xa   :  { %4624 = vmatpush3.bf16.msra.mxu0 %v4621_v33 }
  0x90   :  { %v23_v8 = vpop.xlane.xlu0 %22  ;;  %v29_v9 = vpop.xlane.xlu1 %28 }
  0x91   :  { %v34_v10 = vmul.f32 0.03125, %v23_v8  ;;  %v36_v11 = vmul.f32 0.03125, %v29_v9 }
  0x93   :  { %v38_v12 = vsub.f32 %v5283_v0, %v34_v10  ;;  %v40_v13 = vsub.f32 %v5288_v1, %v36_v11 }
  0x94   :  { %v26_v14 = vpop.xlane.xlu0 %25  ;;  %v32_v15 = vpop.xlane.xlu1 %31 }
  0x95   :  { %v35_v16 = vmul.f32 0.03125, %v26_v14  ;;  %v37_v17 = vmul.f32 0.03125, %v32_v15  ;;  %v42_v18 = vmul.f32 %v38_v12, %v38_v12  ;;  %v44_v19 = vmul.f32 %v40_v13, %v40_v13 }
  0x97   :  { %v39_v20 = vsub.f32 %v5293_v2, %v35_v16  ;;  %v41_v21 = vsub.f32 %v5302_v5, %v37_v17  ;;  %v46_v22 = vsel %vm20_vm0, %v42_v18, 0.0  ;;  %v52_v23 = vsel %vm20_vm0, %v44_v19, 0.0 }
  0x98   :  { %47 = vadd.xlane.f32.xlu0 %v46_v22 }
  0x99   :  { %v43_v24 = vmul.f32 %v39_v20, %v39_v20  ;;  %v45_v25 = vmul.f32 %v41_v21, %v41_v21 }
  0x9b   :  { %v49_v26 = vsel %vm20_vm0, %v43_v24, 0.0  ;;  %v55_v27 = vsel %vm20_vm0, %v45_v25, 0.0 }
  0x9c   :  { %53 = vadd.xlane.f32.xlu0 %v52_v23  ;;  %50 = vadd.xlane.f32.xlu1 %v49_v26 }
  0xa0   :  { %56 = vadd.xlane.f32.xlu1 %v55_v27 }
 0x125   :  { %v48_v34 = vpop.xlane.xlu0 %47 }
 0x126   :  { %v58_v35 = vmul.f32 0.03125, %v48_v34 }
 0x128   :  { %v62_v36 = vadd.f32 1e-05, %v58_v35 }
 0x129   :  { %v51_v37 = vpop.xlane.xlu1 %50  ;;  %v54_v38 = vpop.xlane.xlu0 %53 }
 0x12a   :  { %5052 = vrsqrt.f32 %v62_v36  ;;  %v59_v39 = vmul.f32 0.03125, %v51_v37  ;;  %v60_v40 = vmul.f32 0.03125, %v54_v38 }
 0x12c   :  { %v63_v41 = vadd.f32 1e-05, %v59_v39  ;;  %v64_v42 = vadd.f32 1e-05, %v60_v40 }
 0x12d   :  { %v57_v43 = vpop.xlane.xlu1 %56 }
 0x12e   :  { %5054 = vrsqrt.f32 %v63_v41  ;;  %v61_v44 = vmul.f32 0.03125, %v57_v43 }
 0x12f   :  { %5056 = vrsqrt.f32 %v64_v42 }
 0x130   :  { %v65_v45 = vadd.f32 1e-05, %v61_v44 }
 0x132   :  { %5058 = vrsqrt.f32 %v65_v45 }
 0x134   :  { %v5053_v46 = vpop.eup %5052 }
 0x135   :  { %v70_v48 = vmul.f32 %v5053_v46, %v38_v12 }
 0x137   :  { %v78_v50 = vmul.f32 %v3866_v47, %v70_v48 }
 0x138   :  { %v5055_v51 = vpop.eup %5054 }
 0x139   :  { %v5057_v52 = vpop.eup %5056  ;;  %v5334_v53 = vadd.f32 %v3867_v49, %v78_v50  ;;  %v71_v54 = vmul.f32 %v5055_v51, %v39_v20 }
 0x13a   :  { %v72_v55 = vmul.f32 %v5057_v52, %v40_v13 }
 0x13b   :  { %4240 = vmatprep.mubr.msk.f32.mxu0 %vm20_vm0, %v5334_v53  ;;  %v79_v56 = vmul.f32 %v3866_v47, %v71_v54 }
 0x13c   :  { %v5059_v57 = vpop.eup %5058  ;;  %v80_v58 = vmul.f32 %v3866_v47, %v72_v55 }
 0x13d   :  { %v5338_v59 = vadd.f32 %v3867_v49, %v79_v56  ;;  %v73_v60 = vmul.f32 %v5059_v57, %v41_v21 }
 0x13e   :  { %v5340_v61 = vadd.f32 %v3867_v49, %v80_v58 }
 0x13f   :  { %4241 = vmatmul.mubr.msk.f32.vlgmr.msra.gmra.mrb[0].mxu0 %vm20_vm0, %v5338_v59  ;;  %v81_v62 = vmul.f32 %v3866_v47, %v73_v60 }
 0x140   :  { %4243 = vmatprep.mubr.msk.f32.mxu0 %vm20_vm0, %v5340_v61 }
 0x141   :  { %v5346_v63 = vadd.f32 %v3867_v49, %v81_v62 }
 0x143   :  { %4244 = vmatmul.mubr.msk.f32.gmra.mrb[2].mxu0 %vm20_vm0, %v5346_v63 }
 0x212   :  { %v4242_v4 = vpop.f32.mrb[0].mxu0 }
 0x213   :  { %v5353_v6 = vadd.f32 %v4242_v4, %v3868_v3  ;;  %v177_v7 = vpop.f32.mrb[1].mxu0 }
 0x214   :  { %v5355_v8 = vadd.f32 %v3868_v3, %v177_v7 }
 0x216   :  { %v4245_v9 = vpop.f32.mrb[2].mxu0  ;;  %4254 = vmatprep.mubr.msk.f32.mxu1 %vm224_vm1, %v5355_v8  ;;  %v5361_v10 = vpack.i.bf16 %v5353_v6, %v5355_v8 }
 0x217   :  { %v5363_v11 = vadd.f32 %v4245_v9, %v3868_v3  ;;  %v187_v12 = vpop.f32.mrb[3].mxu0 }
 0x218   :  { %v5365_v13 = vadd.f32 %v3868_v3, %v187_v12  ;;  %4893 = vrot.lane.b32.xlu0 %v5361_v10, %s5243_s7 }
 0x21a   :  { %v5371_v14 = vpack.i.bf16 %v5363_v11, %v5365_v13 }
 0x21c   :  { %4898 = vrot.lane.b32.xlu1 %v5371_v14, %s5243_s7  ;;  %216 = vrot.lane.b32.xlu0 %v5288_v1, %s5243_s7 }
 0x220   :  { %212 = vrot.lane.b32.xlu1 %v5283_v0, %s5243_s7 }
 0x224   :  { %214 = vrot.lane.b32.xlu1 %v5293_v2, %s5243_s7 }
 0x228   :  { %218 = vrot.lane.b32.xlu1 %v5302_v5, %s5243_s7 }
 0x28a   :  { %v4894_v15 = vpop.permute.xlu0 %4893 }
 0x28b   :  { %v4896_v16 = vunpack.i.h.bf16 %v4894_v15  ;;  %v4895_v17 = vunpack.i.l.bf16 %v4894_v15 }
 0x28d   :  { %v4625_v19 = vpack.c.bf16 %v4896_v16, %v4895_v17 }
 0x28e   :  { %v4899_v1 = vpop.permute.xlu1 %4898  ;;  %v5410_v27 = vpop.permute.xlu0 %216 }
 0x28f   :  { %v4901_v20 = vunpack.i.h.bf16 %v4899_v1  ;;  %v4900_v21 = vunpack.i.l.bf16 %v4899_v1  ;;  %4627 = vmatprep.subr.msk.bf16.mxu1 %vm5385_vm2, %v4625_v19 }
 0x290   :  { %4630 = vmatpush3.bf16.xpose.msk.msra.mxu1 %vm5385_vm2, %v4625_v19 }
 0x291   :  { %v4631_v0 = vpack.c.bf16 %v4901_v20, %v4900_v21 }
 0x292   :  { %v5403_v2 = vpop.permute.xlu1 %212 }
 0x293   :  { %4633 = vmatprep.subr.msk.bf16.mxu1 %vm5385_vm2, %v4631_v0 }
 0x296   :  { %v5405_v5 = vpop.permute.xlu1 %214 }
 0x298   :  { %4636 = vmatpush3.bf16.xpose.msk.msra.mxu1 %vm5385_vm2, %v4631_v0 }
 0x29a   :  { %v5413_v30 = vpop.permute.xlu1 %218 }
 0x29f   :  { %4255 = vmatmul.mubr.msk.f32.vlgmr.msra.gmra.mrb[0].mxu1 %vm224_vm1, %v5353_v6 }
 0x2a0   :  { %4257 = vmatprep.mubr.msk.f32.mxu1 %vm224_vm1, %v5365_v13 }
 0x2a3   :  { %4258 = vmatmul.mubr.msk.f32.gmra.mrb[2].mxu1 %vm224_vm1, %v5363_v11 }
 0x372   :  { %v4256_v22 = vpop.f32.mrb[0].mxu1 }
 0x373   :  { %v313_v23 = vadd.f32 %v4256_v22, %v5405_v5  ;;  %v307_v24 = vpop.f32.mrb[1].mxu1 }
 0x374   :  { %v308_v25 = vadd.f32 %v307_v24, %v5403_v2 }
 0x375   :  { %v329_v26 = vsel %vm20_vm0, %v313_v23, -inf }
 0x376   :  { %330 = vmax.xlane.f32.xlu1 %v329_v26  ;;  %v4259_v28 = vpop.f32.mrb[2].mxu1  ;;  %v326_v29 = vsel %vm20_vm0, %v308_v25, -inf }
 0x377   :  { %v317_v31 = vpop.f32.mrb[3].mxu1  ;;  %327 = vmax.xlane.f32.xlu0 %v326_v29  ;;  %v323_v33 = vadd.f32 %v4259_v28, %v5413_v30 }
 0x378   :  { %v318_v32 = vadd.f32 %v317_v31, %v5410_v27 }
 0x379   :  { %v335_v35 = vsel %vm20_vm0, %v323_v33, -inf }
 0x37a   :  { %v332_v34 = vsel %vm20_vm0, %v318_v32, -inf }
 0x37b   :  { %333 = vmax.xlane.f32.xlu0 %v332_v34 }
 0x37f   :  { %336 = vmax.xlane.f32.xlu0 %v335_v35 }
 0x403   :  { %v331_v36 = vpop.xlane.xlu1 %330 }
 0x404   :  { %v339_v37 = vsub.f32 %v313_v23, %v331_v36  ;;  %v328_v38 = vpop.xlane.xlu0 %327 }
 0x405   :  { %v338_v39 = vsub.f32 %v308_v25, %v328_v38 }
 0x406   :  { %v344_v40 = vmul.f32 1.442695, %v339_v37 }
 0x407   :  { %v342_v41 = vmul.f32 1.442695, %v338_v39 }
 0x408   :  { %5060 = vpow2.f32 %v344_v40  ;;  %v334_v46 = vpop.xlane.xlu0 %333 }
 0x409   :  { %5062 = vpow2.f32 %v342_v41  ;;  %v340_v47 = vsub.f32 %v318_v32, %v334_v46 }
 0x40b   :  { %v346_v48 = vmul.f32 1.442695, %v340_v47 }
 0x40c   :  { %v337_v49 = vpop.xlane.xlu0 %336 }
 0x40d   :  { %v341_v50 = vsub.f32 %v323_v33, %v337_v49  ;;  %5064 = vpow2.f32 %v346_v48 }
 0x40f   :  { %v348_v51 = vmul.f32 1.442695, %v341_v50 }
 0x411   :  { %5066 = vpow2.f32 %v348_v51 }
 0x412   :  { %v5061_v42 = vpop.eup %5060 }
 0x413   :  { %v5063_v43 = vpop.eup %5062  ;;  %v353_v44 = vsel %vm20_vm0, %v5061_v42, 0.0 }
 0x414   :  { %354 = vadd.xlane.f32.xlu1 %v353_v44  ;;  %v350_v45 = vsel %vm20_vm0, %v5063_v43, 0.0 }
 0x415   :  { %351 = vadd.xlane.f32.xlu0 %v350_v45 }
 0x417   :  { %v5065_v52 = vpop.eup %5064 }
 0x418   :  { %v356_v54 = vsel %vm20_vm0, %v5065_v52, 0.0 }
 0x41b   :  { %v5067_v55 = vpop.eup %5066 }
 0x41c   :  { %v359_v56 = vsel %vm20_vm0, %v5067_v55, 0.0 }
 0x425   :  { %4908 = vrot.lane.b32.xlu1 %v5371_v14, %s5244_s8 }
 0x429   :  { %4913 = vrot.lane.b32.xlu1 %v5361_v10, %s5245_s9 }
 0x42b   :  { %4903 = vrot.lane.b32.xlu0 %v5361_v10, %s5244_s8 }
 0x42d   :  { %4918 = vrot.lane.b32.xlu1 %v5371_v14, %s5245_s9 }
 0x44a   :  { %357 = vadd.xlane.f32.xlu0 %v356_v54 }
 0x451   :  { %360 = vadd.xlane.f32.xlu1 %v359_v56 }
 0x460   :  { %479 = vrot.lane.b32.xlu0 %v5355_v8, %s5246_s10 }
 0x462   :  { %481 = vrot.lane.b32.xlu1 %v5353_v6, %s5246_s10 }
 0x464   :  { %483 = vrot.lane.b32.xlu0 %v5365_v13, %s5246_s10 }
 0x466   :  { %485 = vrot.lane.b32.xlu1 %v5363_v11, %s5246_s10 }
 0x4a1   :  { %v355_v57 = vpop.xlane.xlu1 %354 }
 0x4a2   :  { %v352_v58 = vpop.xlane.xlu0 %351 }
 0x4a3   :  { %5068 = vrcp.f32 %v352_v58 }
 0x4a4   :  { %5070 = vrcp.f32 %v355_v57 }
 0x4a5   :  { %v4909_v60 = vpop.permute.xlu1 %4908 }
 0x4a6   :  { %v4904_v62 = vpop.permute.xlu0 %4903  ;;  %v4911_v3 = vunpack.i.h.bf16 %v4909_v60  ;;  %v4910_v4 = vunpack.i.l.bf16 %v4909_v60 }
 0x4a7   :  { %v4906_v7 = vunpack.i.h.bf16 %v4904_v62  ;;  %v4905_v9 = vunpack.i.l.bf16 %v4904_v62 }
 0x4a8   :  { %v4641_v19 = vpack.c.bf16 %v4911_v3, %v4910_v4 }
 0x4a9   :  { %v4914_v12 = vpop.permute.xlu1 %4913  ;;  %v4637_v15 = vpack.c.bf16 %v4906_v7, %v4905_v9 }
 0x4aa   :  { %v4916_v16 = vunpack.i.h.bf16 %v4914_v12  ;;  %v4915_v17 = vunpack.i.l.bf16 %v4914_v12 }
 0x4ab   :  { %4638 = vmatprep.subr.bf16.mxu0 %v4637_v15 }
 0x4ac   :  { %4640 = vmatpush3.bf16.msra.mxu0 %v4637_v15  ;;  %v4645_v0 = vpack.c.bf16 %v4916_v16, %v4915_v17 }
 0x4ad   :  { %v5069_v1 = vpop.eup %5068  ;;  %4642 = vmatprep.subr.bf16.mxu0 %v4641_v19  ;;  %v4919_v23 = vpop.permute.xlu1 %4918 }
 0x4ae   :  { %v5071_v20 = vpop.eup %5070  ;;  %v366_v21 = vmul.f32 %v5069_v1, %v5063_v43  ;;  %v4921_v24 = vunpack.i.h.bf16 %v4919_v23  ;;  %v4920_v25 = vunpack.i.l.bf16 %v4919_v23 }
 0x4af   :  { %v367_v22 = vmul.f32 %v5071_v20, %v5061_v42 }
 0x4b0   :  { %4644 = vmatpush3.bf16.msra.mxu0 %v4641_v19  ;;  %4268 = vmatprep.mubr.msk.f32.mxu0 %vm20_vm0, %v366_v21  ;;  %v4651_v26 = vpack.c.bf16 %v4921_v24, %v4920_v25 }
 0x4b1   :  { %4647 = vmatprep.subr.msk.bf16.mxu0 %vm5385_vm2, %v4645_v0 }
 0x4b3   :  { %4269 = vmatmul.mubr.msk.f32.vlgmr.msra.gmra.mrb[4].mxu0 %vm20_vm0, %v367_v22 }
 0x4b9   :  { %4650 = vmatpush3.bf16.xpose.msk.msra.mxu0 %vm5385_vm2, %v4645_v0 }
 0x4ba   :  { %4653 = vmatprep.subr.msk.bf16.mxu0 %vm5385_vm2, %v4651_v26 }
 0x4c1   :  { %4656 = vmatpush3.bf16.xpose.msk.msra.mxu0 %vm5385_vm2, %v4651_v26 }
 0x4d7   :  { %v358_v28 = vpop.xlane.xlu0 %357 }
 0x4d8   :  { %5072 = vrcp.f32 %v358_v28 }
 0x4db   :  { %v480_v34 = vpop.permute.xlu0 %479 }
 0x4de   :  { %v361_v29 = vpop.xlane.xlu1 %360 }
 0x4df   :  { %5074 = vrcp.f32 %v361_v29  ;;  %v484_v37 = vpop.permute.xlu0 %483 }
 0x4e2   :  { %v5073_v31 = vpop.eup %5072  ;;  %v482_v36 = vpop.permute.xlu1 %481 }
 0x4e3   :  { %v368_v32 = vmul.f32 %v5073_v31, %v5065_v52 }
 0x4e5   :  { %4271 = vmatprep.mubr.msk.f32.mxu0 %vm20_vm0, %v368_v32 }
 0x4e6   :  { %v486_v38 = vpop.permute.xlu1 %485 }
 0x4e9   :  { %v5075_v33 = vpop.eup %5074 }
 0x4ea   :  { %v369_v35 = vmul.f32 %v5075_v33, %v5067_v55 }
 0x4ec   :  { %4272 = vmatmul.mubr.msk.f32.gmra.mrb[6].mxu0 %vm20_vm0, %v369_v35 }
 0x4ed   :  { %4282 = vmatprep.mubr.msk.f32.mxu0 %vm224_vm1, %v480_v34 }
 0x4f0   :  { %4283 = vmatmul.mubr.msk.f32.vlgmr.msra.gmra.mrb[8].mxu0 %vm224_vm1, %v482_v36 }
 0x4f1   :  { %4285 = vmatprep.mubr.msk.f32.mxu0 %vm224_vm1, %v484_v37 }
 0x4f4   :  { %4286 = vmatmul.mubr.msk.f32.gmra.mrb[10].mxu0 %vm224_vm1, %v486_v38 }
 0x586   :  { %v5455_v39 = vpop.f32.mrb[4].mxu0 }
 0x587   :  { %v5457_v40 = vpop.f32.mrb[5].mxu0 }
 0x5bf   :  { %v5459_v41 = vpop.f32.mrb[6].mxu0 }
 0x5c0   :  { %v5461_v42 = vpop.f32.mrb[7].mxu0 }
 0x5c3   :  { %v4284_v43 = vpop.f32.mrb[8].mxu0 }
 0x5c4   :  { %v583_v44 = vadd.f32 %v4284_v43, %v5405_v5  ;;  %v577_v45 = vpop.f32.mrb[9].mxu0 }
 0x5c5   :  { %v578_v46 = vadd.f32 %v577_v45, %v5403_v2 }
 0x5c6   :  { %v599_v47 = vsel %vm20_vm0, %v583_v44, -inf }
 0x5c7   :  { %600 = vmax.xlane.f32.xlu1 %v599_v47  ;;  %v4287_v48 = vpop.f32.mrb[10].mxu0  ;;  %v596_v49 = vsel %vm20_vm0, %v578_v46, -inf }
 0x5c8   :  { %v587_v50 = vpop.f32.mrb[11].mxu0  ;;  %597 = vmax.xlane.f32.xlu0 %v596_v49  ;;  %v593_v52 = vadd.f32 %v4287_v48, %v5413_v30 }
 0x5c9   :  { %v588_v51 = vadd.f32 %v587_v50, %v5410_v27 }
 0x5ca   :  { %v605_v55 = vsel %vm20_vm0, %v593_v52, -inf }
 0x5cb   :  { %v602_v54 = vsel %vm20_vm0, %v588_v51, -inf }
 0x5cc   :  { %603 = vmax.xlane.f32.xlu0 %v602_v54 }
 0x5d0   :  { %606 = vmax.xlane.f32.xlu0 %v605_v55 }
 0x654   :  { %v601_v56 = vpop.xlane.xlu1 %600 }
 0x655   :  { %v609_v57 = vsub.f32 %v583_v44, %v601_v56  ;;  %v598_v58 = vpop.xlane.xlu0 %597 }
 0x656   :  { %v608_v60 = vsub.f32 %v578_v46, %v598_v58 }
 0x657   :  { %v614_v62 = vmul.f32 1.442695, %v609_v57 }
 0x658   :  { %v612_v3 = vmul.f32 1.442695, %v608_v60 }
 0x659   :  { %5076 = vpow2.f32 %v614_v62  ;;  %v604_v15 = vpop.xlane.xlu0 %603 }
 0x65a   :  { %5078 = vpow2.f32 %v612_v3  ;;  %v610_v16 = vsub.f32 %v588_v51, %v604_v15 }
 0x65c   :  { %v616_v17 = vmul.f32 1.442695, %v610_v16 }
 0x65d   :  { %v607_v19 = vpop.xlane.xlu0 %606 }
 0x65e   :  { %v611_v1 = vsub.f32 %v593_v52, %v607_v19  ;;  %5080 = vpow2.f32 %v616_v17 }
 0x660   :  { %v618_v20 = vmul.f32 1.442695, %v611_v1 }
 0x662   :  { %5082 = vpow2.f32 %v618_v20 }
 0x663   :  { %v5077_v4 = vpop.eup %5076 }
 0x664   :  { %v5079_v7 = vpop.eup %5078  ;;  %v623_v9 = vsel %vm20_vm0, %v5077_v4, 0.0 }
 0x665   :  { %624 = vadd.xlane.f32.xlu1 %v623_v9  ;;  %v620_v12 = vsel %vm20_vm0, %v5079_v7, 0.0 }
 0x666   :  { %621 = vadd.xlane.f32.xlu0 %v620_v12 }
 0x668   :  { %v5081_v21 = vpop.eup %5080 }
 0x669   :  { %v626_v0 = vsel %vm20_vm0, %v5081_v21, 0.0 }
 0x66c   :  { %v5083_v22 = vpop.eup %5082 }
 0x66d   :  { %v629_v23 = vsel %vm20_vm0, %v5083_v22, 0.0 }
 0x676   :  { %4928 = vrot.lane.b32.xlu1 %v5371_v14, %s5247_s11 }
 0x67a   :  { %4933 = vrot.lane.b32.xlu1 %v5361_v10, %s5248_s12 }
 0x67c   :  { %4923 = vrot.lane.b32.xlu0 %v5361_v10, %s5247_s11 }
 0x67e   :  { %4938 = vrot.lane.b32.xlu1 %v5371_v14, %s5248_s12 }
 0x69b   :  { %627 = vadd.xlane.f32.xlu0 %v626_v0 }
 0x6a2   :  { %630 = vadd.xlane.f32.xlu1 %v629_v23 }
 0x6b1   :  { %749 = vrot.lane.b32.xlu0 %v5355_v8, %s5249_s13 }
 0x6b3   :  { %751 = vrot.lane.b32.xlu1 %v5353_v6, %s5249_s13 }
 0x6b5   :  { %753 = vrot.lane.b32.xlu0 %v5365_v13, %s5249_s13 }
 0x6b7   :  { %755 = vrot.lane.b32.xlu1 %v5363_v11, %s5249_s13 }
 0x6f2   :  { %v625_v24 = vpop.xlane.xlu1 %624 }
 0x6f3   :  { %v622_v25 = vpop.xlane.xlu0 %621 }
 0x6f4   :  { %5084 = vrcp.f32 %v622_v25 }
 0x6f5   :  { %5086 = vrcp.f32 %v625_v24 }
 0x6f6   :  { %v4929_v26 = vpop.permute.xlu1 %4928 }
 0x6f7   :  { %v4924_v28 = vpop.permute.xlu0 %4923  ;;  %v4931_v29 = vunpack.i.h.bf16 %v4929_v26  ;;  %v4930_v31 = vunpack.i.l.bf16 %v4929_v26 }
 0x6f8   :  { %v4926_v32 = vunpack.i.h.bf16 %v4924_v28  ;;  %v4925_v33 = vunpack.i.l.bf16 %v4924_v28 }
 0x6f9   :  { %v4661_v38 = vpack.c.bf16 %v4931_v29, %v4930_v31 }
 0x6fa   :  { %v4934_v34 = vpop.permute.xlu1 %4933  ;;  %v4657_v35 = vpack.c.bf16 %v4926_v32, %v4925_v33 }
 0x6fb   :  { %v4936_v36 = vunpack.i.h.bf16 %v4934_v34  ;;  %v4935_v37 = vunpack.i.l.bf16 %v4934_v34 }
 0x6fc   :  { %4658 = vmatprep.subr.bf16.mxu1 %v4657_v35 }
 0x6fd   :  { %4660 = vmatpush3.bf16.msra.mxu1 %v4657_v35  ;;  %v4665_v46 = vpack.c.bf16 %v4936_v36, %v4935_v37 }
 0x6fe   :  { %v5085_v43 = vpop.eup %5084  ;;  %4662 = vmatprep.subr.bf16.mxu1 %v4661_v38  ;;  %v4939_v48 = vpop.permute.xlu1 %4938 }
 0x6ff   :  { %v5087_v44 = vpop.eup %5086  ;;  %v636_v45 = vmul.f32 %v5085_v43, %v5079_v7  ;;  %v4941_v49 = vunpack.i.h.bf16 %v4939_v48  ;;  %v4940_v50 = vunpack.i.l.bf16 %v4939_v48 }
 0x700   :  { %v637_v47 = vmul.f32 %v5087_v44, %v5077_v4 }
 0x701   :  { %4664 = vmatpush3.bf16.msra.mxu1 %v4661_v38  ;;  %4296 = vmatprep.mubr.msk.f32.mxu1 %vm20_vm0, %v636_v45  ;;  %v4671_v51 = vpack.c.bf16 %v4941_v49, %v4940_v50 }
 0x702   :  { %4667 = vmatprep.subr.msk.bf16.mxu1 %vm5385_vm2, %v4665_v46 }
 0x704   :  { %4297 = vmatmul.mubr.msk.f32.vlgmr.msra.gmra.mrb[4].mxu1 %vm20_vm0, %v637_v47 }
 0x70a   :  { %4670 = vmatpush3.bf16.xpose.msk.msra.mxu1 %vm5385_vm2, %v4665_v46 }
 0x70b   :  { %4673 = vmatprep.subr.msk.bf16.mxu1 %vm5385_vm2, %v4671_v51 }
 0x712   :  { %4676 = vmatpush3.bf16.xpose.msk.msra.mxu1 %vm5385_vm2, %v4671_v51 }
 0x728   :  { %v628_v52 = vpop.xlane.xlu0 %627 }
 0x729   :  { %5088 = vrcp.f32 %v628_v52 }
 0x72c   :  { %v750_v58 = vpop.permute.xlu0 %749 }
 0x72f   :  { %v631_v54 = vpop.xlane.xlu1 %630 }
 0x730   :  { %5090 = vrcp.f32 %v631_v54  ;;  %v754_v3 = vpop.permute.xlu0 %753 }
 0x733   :  { %v5089_v55 = vpop.eup %5088  ;;  %v752_v62 = vpop.permute.xlu1 %751 }
 0x734   :  { %v638_v56 = vmul.f32 %v5089_v55, %v5081_v21 }
 0x736   :  { %4299 = vmatprep.mubr.msk.f32.mxu1 %vm20_vm0, %v638_v56 }
 0x737   :  { %v756_v4 = vpop.permute.xlu1 %755 }
 0x73a   :  { %v5091_v57 = vpop.eup %5090 }
 0x73b   :  { %v639_v60 = vmul.f32 %v5091_v57, %v5083_v22 }
 0x73d   :  { %4300 = vmatmul.mubr.msk.f32.gmra.mrb[6].mxu1 %vm20_vm0, %v639_v60 }
 0x73e   :  { %4310 = vmatprep.mubr.msk.f32.mxu1 %vm224_vm1, %v750_v58 }
 0x741   :  { %4311 = vmatmul.mubr.msk.f32.vlgmr.msra.gmra.mrb[8].mxu1 %vm224_vm1, %v752_v62 }
 0x742   :  { %4313 = vmatprep.mubr.msk.f32.mxu1 %vm224_vm1, %v754_v3 }
 0x745   :  { %4314 = vmatmul.mubr.msk.f32.gmra.mrb[10].mxu1 %vm224_vm1, %v756_v4 }
 0x7d7   :  { %v5507_v7 = vpop.f32.mrb[4].mxu1 }
 0x7d8   :  { %v5509_v9 = vpop.f32.mrb[5].mxu1 }
 0x810   :  { %v5511_v12 = vpop.f32.mrb[6].mxu1 }
 0x811   :  { %v5513_v15 = vpop.f32.mrb[7].mxu1 }
 0x814   :  { %v4312_v16 = vpop.f32.mrb[8].mxu1 }
 0x815   :  { %v853_v17 = vadd.f32 %v4312_v16, %v5405_v5  ;;  %v847_v19 = vpop.f32.mrb[9].mxu1 }
 0x816   :  { %v848_v1 = vadd.f32 %v847_v19, %v5403_v2 }
 0x817   :  { %v869_v20 = vsel %vm20_vm0, %v853_v17, -inf }
 0x818   :  { %870 = vmax.xlane.f32.xlu1 %v869_v20  ;;  %v4315_v21 = vpop.f32.mrb[10].mxu1  ;;  %v866_v0 = vsel %vm20_vm0, %v848_v1, -inf }
 0x819   :  { %v857_v22 = vpop.f32.mrb[11].mxu1  ;;  %867 = vmax.xlane.f32.xlu0 %v866_v0  ;;  %v863_v24 = vadd.f32 %v4315_v21, %v5413_v30 }
 0x81a   :  { %v858_v23 = vadd.f32 %v857_v22, %v5410_v27 }
 0x81b   :  { %v875_v26 = vsel %vm20_vm0, %v863_v24, -inf }
 0x81c   :  { %v872_v25 = vsel %vm20_vm0, %v858_v23, -inf }
 0x81d   :  { %873 = vmax.xlane.f32.xlu0 %v872_v25 }
 0x821   :  { %876 = vmax.xlane.f32.xlu0 %v875_v26 }
 0x8a5   :  { %v871_v28 = vpop.xlane.xlu1 %870 }
 0x8a6   :  { %v879_v29 = vsub.f32 %v853_v17, %v871_v28  ;;  %v868_v31 = vpop.xlane.xlu0 %867 }
 0x8a7   :  { %v878_v32 = vsub.f32 %v848_v1, %v868_v31 }
 0x8a8   :  { %v884_v33 = vmul.f32 1.442695, %v879_v29 }
 0x8a9   :  { %v882_v34 = vmul.f32 1.442695, %v878_v32 }
 0x8aa   :  { %5092 = vpow2.f32 %v884_v33  ;;  %v874_v43 = vpop.xlane.xlu0 %873 }
 0x8ab   :  { %5094 = vpow2.f32 %v882_v34  ;;  %v880_v44 = vsub.f32 %v858_v23, %v874_v43 }
 0x8ad   :  { %v886_v45 = vmul.f32 1.442695, %v880_v44 }
 0x8ae   :  { %v877_v46 = vpop.xlane.xlu0 %876 }
 0x8af   :  { %v881_v47 = vsub.f32 %v863_v24, %v877_v46  ;;  %5096 = vpow2.f32 %v886_v45 }
 0x8b1   :  { %v888_v48 = vmul.f32 1.442695, %v881_v47 }
 0x8b3   :  { %5098 = vpow2.f32 %v888_v48 }
 0x8b4   :  { %v5093_v35 = vpop.eup %5092 }
 0x8b5   :  { %v5095_v36 = vpop.eup %5094  ;;  %v893_v37 = vsel %vm20_vm0, %v5093_v35, 0.0 }
 0x8b6   :  { %894 = vadd.xlane.f32.xlu1 %v893_v37  ;;  %v890_v38 = vsel %vm20_vm0, %v5095_v36, 0.0 }
 0x8b7   :  { %891 = vadd.xlane.f32.xlu0 %v890_v38 }
 0x8b9   :  { %v5097_v49 = vpop.eup %5096 }
 0x8ba   :  { %v896_v50 = vsel %vm20_vm0, %v5097_v49, 0.0 }
 0x8bd   :  { %v5099_v51 = vpop.eup %5098 }
 0x8be   :  { %v899_v52 = vsel %vm20_vm0, %v5099_v51, 0.0 }
 0x8c7   :  { %4948 = vrot.lane.b32.xlu1 %v5371_v14, %s5250_s14 }
 0x8cb   :  { %4953 = vrot.lane.b32.xlu1 %v5361_v10, %s5251_s15 }
 0x8cd   :  { %4943 = vrot.lane.b32.xlu0 %v5361_v10, %s5250_s14 }
 0x8cf   :  { %4958 = vrot.lane.b32.xlu1 %v5371_v14, %s5251_s15 }
 0x8ec   :  { %897 = vadd.xlane.f32.xlu0 %v896_v50 }
 0x8f3   :  { %900 = vadd.xlane.f32.xlu1 %v899_v52 }
 0x902   :  { %1019 = vrot.lane.b32.xlu0 %v5355_v8, %s5252_s16 }
 0x904   :  { %1021 = vrot.lane.b32.xlu1 %v5353_v6, %s5252_s16 }
 0x906   :  { %1023 = vrot.lane.b32.xlu0 %v5365_v13, %s5252_s16 }
 0x908   :  { %1025 = vrot.lane.b32.xlu1 %v5363_v11, %s5252_s16 }
 0x943   :  { %v895_v54 = vpop.xlane.xlu1 %894 }
 0x944   :  { %v892_v55 = vpop.xlane.xlu0 %891 }
 0x945   :  { %5100 = vrcp.f32 %v892_v55 }
 0x946   :  { %5102 = vrcp.f32 %v895_v54 }
 0x947   :  { %v4949_v56 = vpop.permute.xlu1 %4948 }
 0x948   :  { %v4944_v57 = vpop.permute.xlu0 %4943  ;;  %v4951_v58 = vunpack.i.h.bf16 %v4949_v56  ;;  %v4950_v60 = vunpack.i.l.bf16 %v4949_v56 }
 0x949   :  { %v4946_v62 = vunpack.i.h.bf16 %v4944_v57  ;;  %v4945_v3 = vunpack.i.l.bf16 %v4944_v57 }
 0x94a   :  { %v4681_v17 = vpack.c.bf16 %v4951_v58, %v4950_v60 }
 0x94b   :  { %v4954_v8 = vpop.permute.xlu1 %4953  ;;  %v4677_v4 = vpack.c.bf16 %v4946_v62, %v4945_v3 }
 0x94c   :  { %v4956_v16 = vunpack.i.h.bf16 %v4954_v8  ;;  %v4955_v6 = vunpack.i.l.bf16 %v4954_v8 }
 0x94d   :  { %4678 = vmatprep.subr.bf16.mxu0 %v4677_v4 }
 0x94e   :  { %4680 = vmatpush3.bf16.msra.mxu0 %v4677_v4  ;;  %v4685_v1 = vpack.c.bf16 %v4956_v16, %v4955_v6 }
 0x94f   :  { %v5101_v13 = vpop.eup %5100  ;;  %4682 = vmatprep.subr.bf16.mxu0 %v4681_v17  ;;  %v4959_v21 = vpop.permute.xlu1 %4958 }
 0x950   :  { %v5103_v11 = vpop.eup %5102  ;;  %v906_v19 = vmul.f32 %v5101_v13, %v5095_v36  ;;  %v4961_v0 = vunpack.i.h.bf16 %v4959_v21  ;;  %v4960_v22 = vunpack.i.l.bf16 %v4959_v21 }
 0x951   :  { %v907_v20 = vmul.f32 %v5103_v11, %v5093_v35 }
 0x952   :  { %4684 = vmatpush3.bf16.msra.mxu0 %v4681_v17  ;;  %4324 = vmatprep.mubr.msk.f32.mxu0 %vm20_vm0, %v906_v19  ;;  %v4691_v23 = vpack.c.bf16 %v4961_v0, %v4960_v22 }
 0x953   :  { %4687 = vmatprep.subr.msk.bf16.mxu0 %vm5385_vm2, %v4685_v1 }
 0x955   :  { %4325 = vmatmul.mubr.msk.f32.vlgmr.msra.gmra.mrb[12].mxu0 %vm20_vm0, %v907_v20 }
 0x95b   :  { %4690 = vmatpush3.bf16.xpose.msk.msra.mxu0 %vm5385_vm2, %v4685_v1 }
 0x95c   :  { %4693 = vmatprep.subr.msk.bf16.mxu0 %vm5385_vm2, %v4691_v23 }
 0x963   :  { %4696 = vmatpush3.bf16.xpose.msk.msra.mxu0 %vm5385_vm2, %v4691_v23 }
 0x979   :  { %v898_v24 = vpop.xlane.xlu0 %897 }
 0x97a   :  { %5104 = vrcp.f32 %v898_v24 }
 0x97d   :  { %v1020_v31 = vpop.permute.xlu0 %1019 }
 0x980   :  { %v901_v25 = vpop.xlane.xlu1 %900 }
 0x981   :  { %5106 = vrcp.f32 %v901_v25  ;;  %v1024_v34 = vpop.permute.xlu0 %1023 }
 0x984   :  { %v5105_v26 = vpop.eup %5104  ;;  %v1022_v33 = vpop.permute.xlu1 %1021 }
 0x985   :  { %v908_v28 = vmul.f32 %v5105_v26, %v5097_v49 }
 0x987   :  { %4327 = vmatprep.mubr.msk.f32.mxu0 %vm20_vm0, %v908_v28 }
 0x988   :  { %v1026_v35 = vpop.permute.xlu1 %1025 }
 0x98b   :  { %v5107_v29 = vpop.eup %5106 }
 0x98c   :  { %v909_v32 = vmul.f32 %v5107_v29, %v5099_v51 }
 0x98e   :  { %4328 = vmatmul.mubr.msk.f32.gmra.mrb[14].mxu0 %vm20_vm0, %v909_v32 }
 0x98f   :  { %4338 = vmatprep.mubr.msk.f32.mxu0 %vm224_vm1, %v1020_v31 }
 0x992   :  { %4339 = vmatmul.mubr.msk.f32.vlgmr.msra.gmra.mrb[16].mxu0 %vm224_vm1, %v1022_v33 }
 0x993   :  { %4341 = vmatprep.mubr.msk.f32.mxu0 %vm224_vm1, %v1024_v34 }
 0x996   :  { %4342 = vmatmul.mubr.msk.f32.gmra.mrb[18].mxu0 %vm224_vm1, %v1026_v35 }
 0xa28   :  { %v4326_v36 = vpop.f32.mrb[12].mxu0 }
 0xa29   :  { %v1000_v37 = vpop.f32.mrb[13].mxu0 }
 0xa61   :  { %v5559_v38 = vpop.f32.mrb[14].mxu0 }
 0xa62   :  { %v5561_v43 = vpop.f32.mrb[15].mxu0 }
 0xa65   :  { %v4340_v44 = vpop.f32.mrb[16].mxu0 }
 0xa66   :  { %v1123_v45 = vadd.f32 %v4340_v44, %v5405_v5  ;;  %v1117_v46 = vpop.f32.mrb[17].mxu0 }
 0xa67   :  { %v1118_v47 = vadd.f32 %v1117_v46, %v5403_v2 }
 0xa68   :  { %v1139_v48 = vsel %vm20_vm0, %v1123_v45, -inf }
 0xa69   :  { %1140 = vmax.xlane.f32.xlu1 %v1139_v48  ;;  %v4343_v49 = vpop.f32.mrb[18].mxu0  ;;  %v1136_v50 = vsel %vm20_vm0, %v1118_v47, -inf  ;;  %v1352_v48 = vld [vmem:[%s6171_s1 + $0x28] sm:$0xff] }
 0xa6a   :  { %v1127_v51 = vpop.f32.mrb[19].mxu0  ;;  %1137 = vmax.xlane.f32.xlu0 %v1136_v50  ;;  %v1133_v54 = vadd.f32 %v4343_v49, %v5413_v30  ;;  %v1353_v49 = vld [vmem:[%s6171_s1 + $0x30] sm:$0xff] }
 0xa6b   :  { %v1128_v52 = vadd.f32 %v1127_v51, %v5410_v27  ;;  %v1354_v51 = vld [vmem:[%s6171_s1 + $0x38] sm:$0xff] }
 0xa6c   :  { %v1145_v56 = vsel %vm20_vm0, %v1133_v54, -inf }
 0xa6d   :  { %v1142_v55 = vsel %vm20_vm0, %v1128_v52, -inf }
 0xa6e   :  { %1143 = vmax.xlane.f32.xlu0 %v1142_v55 }
 0xa72   :  { %1146 = vmax.xlane.f32.xlu0 %v1145_v56 }
 0xaf6   :  { %v1141_v57 = vpop.xlane.xlu1 %1140 }
 0xaf7   :  { %v1149_v58 = vsub.f32 %v1123_v45, %v1141_v57  ;;  %v1138_v60 = vpop.xlane.xlu0 %1137 }
 0xaf8   :  { %v1148_v62 = vsub.f32 %v1118_v47, %v1138_v60  ;;  %v1351_v47 = vld [vmem:[%s6171_s1 + $0x20] sm:$0xff] }
 0xaf9   :  { %v1154_v3 = vmul.f32 1.442695, %v1149_v58  ;;  %v4705_v50 = vpack.c.bf16 %v1352_v48, %v1351_v47 }
 0xafa   :  { %v1152_v8 = vmul.f32 1.442695, %v1148_v62 }
 0xafb   :  { %5108 = vpow2.f32 %v1154_v3  ;;  %v1144_v4 = vpop.xlane.xlu0 %1143 }
 0xafc   :  { %5110 = vpow2.f32 %v1152_v8  ;;  %v1150_v16 = vsub.f32 %v1128_v52, %v1144_v4  ;;  %v4709_v52 = vpack.c.bf16 %v1354_v51, %v1353_v49 }
 0xafe   :  { %v1156_v6 = vmul.f32 1.442695, %v1150_v16 }
 0xaff   :  { %v1147_v17 = vpop.xlane.xlu0 %1146 }
 0xb00   :  { %5112 = vpow2.f32 %v1156_v6  ;;  %v1151_v13 = vsub.f32 %v1133_v54, %v1147_v17 }
 0xb02   :  { %v1158_v11 = vmul.f32 1.442695, %v1151_v13 }
 0xb04   :  { %5114 = vpow2.f32 %v1158_v11 }
 0xb05   :  { %v5109_v19 = vpop.eup %5108 }
 0xb06   :  { %v5111_v1 = vpop.eup %5110  ;;  %v1163_v20 = vsel %vm20_vm0, %v5109_v19, 0.0 }
 0xb07   :  { %1164 = vadd.xlane.f32.xlu1 %v1163_v20  ;;  %v1160_v21 = vsel %vm20_vm0, %v5111_v1, 0.0 }
 0xb08   :  { %1161 = vadd.xlane.f32.xlu0 %v1160_v21 }
 0xb0a   :  { %v5113_v0 = vpop.eup %5112 }
 0xb0b   :  { %v1166_v22 = vsel %vm20_vm0, %v5113_v0, 0.0 }
 0xb0c   :  { %1167 = vadd.xlane.f32.xlu0 %v1166_v22 }
 0xb0e   :  { %v5115_v23 = vpop.eup %5114 }
 0xb0f   :  { %v1169_v24 = vsel %vm20_vm0, %v5115_v23, 0.0 }
 0xb10   :  { %1170 = vadd.xlane.f32.xlu1 %v1169_v24 }
 0xb21   :  { %4968 = vrot.lane.b32.xlu1 %v5371_v14, %s5253_s17 }
 0xb22   :  { %4963 = vrot.lane.b32.xlu0 %v5361_v10, %s5253_s17 }
 0xb25   :  { %1293 = vrot.lane.b32.xlu1 %v5509_v9, %s5254_s18 }
 0xb26   :  { %1309 = vrot.lane.b32.xlu0 %v1000_v37, %s5255_s19 }
 0xb29   :  { %1295 = vrot.lane.b32.xlu1 %v5507_v7, %s5254_s18 }
 0xb2a   :  { %1297 = vrot.lane.b32.xlu0 %v5513_v15, %s5254_s18 }
 0xb2d   :  { %1311 = vrot.lane.b32.xlu1 %v4326_v36, %s5255_s19 }
 0xb31   :  { %1299 = vrot.lane.b32.xlu1 %v5511_v12, %s5254_s18 }
 0xb94   :  { %v1165_v10 = vpop.xlane.xlu1 %1164 }
 0xb95   :  { %v1162_v14 = vpop.xlane.xlu0 %1161 }
 0xb96   :  { %5116 = vrcp.f32 %v1162_v14 }
 0xb97   :  { %5118 = vrcp.f32 %v1165_v10 }
 0xb99   :  { %v1168_v25 = vpop.xlane.xlu0 %1167 }
 0xb9a   :  { %5120 = vrcp.f32 %v1168_v25 }
 0xb9d   :  { %v1171_v9 = vpop.xlane.xlu1 %1170  ;;  %v4964_v26 = vpop.permute.xlu0 %4963 }
 0xb9e   :  { %v4966_v28 = vunpack.i.h.bf16 %v4964_v26  ;;  %v4965_v29 = vunpack.i.l.bf16 %v4964_v26  ;;  %5122 = vrcp.f32 %v1171_v9 }
 0xba0   :  { %v5117_v7 = vpop.eup %5116  ;;  %v4697_v31 = vpack.c.bf16 %v4966_v28, %v4965_v29 }
 0xba1   :  { %v4969_v32 = vpop.permute.xlu1 %4968  ;;  %v1176_v15 = vmul.f32 %v5117_v7, %v5111_v1  ;;  %v5119_v35 = vpop.eup %5118 }
 0xba2   :  { %v4971_v33 = vunpack.i.h.bf16 %v4969_v32  ;;  %v4970_v34 = vunpack.i.l.bf16 %v4969_v32  ;;  %4698 = vmatprep.subr.bf16.mxu1 %v4697_v31  ;;  %v1177_v37 = vmul.f32 %v5119_v35, %v5109_v19  ;;  %v1310_v3 = vpop.permute.xlu0 %1309 }
 0xba3   :  { %4700 = vmatpush3.bf16.msra.mxu1 %v4697_v31  ;;  %4352 = vmatprep.mubr.msk.f32.mxu1 %vm20_vm0, %v1176_v15 }
 0xba4   :  { %v4701_v12 = vpack.c.bf16 %v4971_v33, %v4970_v34  ;;  %v5121_v36 = vpop.eup %5120 }
 0xba5   :  { %v1178_v45 = vmul.f32 %v5121_v36, %v5113_v0  ;;  %v1294_v58 = vpop.permute.xlu1 %1293 }
 0xba6   :  { %4702 = vmatprep.subr.bf16.mxu1 %v4701_v12  ;;  %v1298_v4 = vpop.permute.xlu0 %1297  ;;  %v1337_v16 = vsel %vm224_vm1, %v5457_v40, %v1294_v58 }
 0xba7   :  { %4704 = vmatpush3.bf16.msra.mxu1 %v4701_v12  ;;  %v1339_v20 = vsel %vm224_vm1, %v5461_v42, %v1298_v4  ;;  %v3921_v42 = vld [vmem:[%s6172_s2 + $0x3] ss:$0 sm:$0xff]  ;;  %v1533_v4 = vld [vmem:[%s6171_s1 + $0x50] sm:$0xff] }
 0xba8   :  { %v5123_v44 = vpop.eup %5122  ;;  %4706 = vmatprep.subr.bf16.mxu1 %v4705_v50 }
 0xba9   :  { %v1179_v46 = vmul.f32 %v5123_v44, %v5115_v23  ;;  %v1296_v60 = vpop.permute.xlu1 %1295 }
 0xbaa   :  { %4353 = vmatmul.mubr.msk.f32.vlgmr.msra.gmra.mrb[12].mxu1 %vm20_vm0, %v1177_v37  ;;  %v1338_v6 = vsel %vm224_vm1, %v5455_v39, %v1296_v60 }
 0xbab   :  { %4355 = vmatprep.mubr.msk.f32.mxu1 %vm20_vm0, %v1178_v45  ;;  %4708 = vmatpush3.bf16.msra.mxu1 %v4705_v50 }
 0xbac   :  { %4710 = vmatprep.subr.bf16.mxu1 %v4709_v52 }
 0xbad   :  { %v1312_v62 = vpop.permute.xlu1 %1311 }
 0xbae   :  { %4356 = vmatmul.mubr.msk.f32.gmra.mrb[14].mxu1 %vm20_vm0, %v1179_v46  ;;  %v1343_v13 = vsel %vm1341_vm3, %v1338_v6, %v1312_v62  ;;  %v1531_v62 = vld [vmem:[%s6171_s1 + $0x40] sm:$0xff] }
 0xbaf   :  { %4712 = vmatpush3.bf16.msra.mxu1 %v4709_v52 }
 0xbb1   :  { %v1300_v8 = vpop.permute.xlu1 %1299 }
 0xbb2   :  { %v1340_v39 = vsel %vm224_vm1, %v5459_v41, %v1300_v8 }
 0xc7d   :  { %v4354_v54 = vpop.f32.mrb[12].mxu1 }
 0xc7e   :  { %1327 = vrot.lane.b32.xlu1 %v4354_v54, %s5256_s28  ;;  %v1270_v55 = vpop.f32.mrb[13].mxu1 }
 0xc7f   :  { %1325 = vrot.lane.b32.xlu0 %v1270_v55, %s5256_s28 }
 0xc81   :  { %v4357_v56 = vpop.f32.mrb[14].mxu1 }
 0xc82   :  { %1315 = vrot.lane.b32.xlu1 %v5559_v38, %s5255_s19  ;;  %v1280_v57 = vpop.f32.mrb[15].mxu1 }
 0xc83   :  { %1313 = vrot.lane.b32.xlu0 %v5561_v43, %s5255_s19  ;;  %v1342_v43 = vsel %vm1341_vm3, %v1337_v16, %v1310_v3  ;;  %v1532_v3 = vld [vmem:[%s6171_s1 + $0x48] sm:$0xff]  ;;  %v1534_v16 = vld [vmem:[%s6171_s1 + $0x58] sm:$0xff] }
 0xc84   :  { %v4713_v8 = vpack.c.bf16 %v1532_v3, %v1531_v62 }
 0xc86   :  { %1331 = vrot.lane.b32.xlu1 %v4357_v56, %s5256_s28  ;;  %4714 = vmatprep.subr.bf16.mxu0 %v4713_v8 }
 0xc87   :  { %1329 = vrot.lane.b32.xlu0 %v1280_v57, %s5256_s28  ;;  %4716 = vmatpush3.bf16.msra.mxu0 %v4713_v8 }
 0xcf0   :  { %v1328_v38 = vpop.permute.xlu1 %1327 }
 0xcf1   :  { %v1326_v17 = vpop.permute.xlu0 %1325  ;;  %v1348_v19 = vsel %vm1346_vm4, %v1343_v13, %v1328_v38  ;;  %v4717_v38 = vpack.c.bf16 %v1534_v16, %v1533_v4 }
 0xcf2   :  { %v1347_v11 = vsel %vm1346_vm4, %v1342_v43, %v1326_v17 }
 0xcf3   :  { %4366 = vmatprep.mubr.msk.f32.mxu1 %vm20_vm0, %v1347_v11  ;;  %4718 = vmatprep.subr.bf16.mxu0 %v4717_v38 }
 0xcf4   :  { %v1316_v1 = vpop.permute.xlu1 %1315  ;;  %4367 = vmatmul.mubr.msk.f32.vlgmr.msra.gmra.mrb[16].mxu1 %vm20_vm0, %v1348_v19  ;;  %4720 = vmatpush3.bf16.msra.mxu0 %v4717_v38 }
 0xcf5   :  { %v1314_v40 = vpop.permute.xlu0 %1313  ;;  %v1345_v23 = vsel %vm1341_vm3, %v1340_v39, %v1316_v1 }
 0xcf6   :  { %v1344_v0 = vsel %vm1341_vm3, %v1339_v20, %v1314_v40 }
 0xcf8   :  { %v1332_v21 = vpop.permute.xlu1 %1331 }
 0xcf9   :  { %v1330_v22 = vpop.permute.xlu0 %1329  ;;  %v1350_v14 = vsel %vm1346_vm4, %v1345_v23, %v1332_v21 }
 0xcfa   :  { %v1349_v24 = vsel %vm1346_vm4, %v1344_v0, %v1330_v22  ;;  %v3926_v22 = vld [vmem:[%s6172_s2 + $0x4] ss:$0 sm:$0xff] }
 0xcfb   :  { %4369 = vmatprep.mubr.msk.f32.mxu1 %vm20_vm0, %v1349_v24 }
 0xcfc   :  { %4370 = vmatmul.mubr.msk.f32.gmra.mrb[18].mxu1 %vm20_vm0, %v1350_v14 }
 0xdc7   :  { %v4368_v10 = vpop.f32.mrb[16].mxu1 }
 0xdc8   :  { %v1444_v25 = vadd.f32 %v4368_v10, %v3921_v42  ;;  %v1438_v41 = vpop.f32.mrb[17].mxu1  ;;  %v3927_v10 = vld [vmem:[%s6172_s2 + $0x5] ss:$0 sm:$0xff] }
 0xdc9   :  { %v1439_v9 = vadd.f32 %v3921_v42, %v1438_v41 }
 0xdca   :  { %v1458_v26 = vadd.f32 %v1444_v25, %v5338_v59 }
 0xdcb   :  { %v1457_v28 = vadd.f32 %v1439_v9, %v5334_v53 }
 0xdcc   :  { %v1466_v29 = vsel %vm20_vm0, %v1458_v26, 0.0 }
 0xdcd   :  { %1467 = vadd.xlane.f32.xlu1 %v1466_v29  ;;  %v1463_v7 = vsel %vm20_vm0, %v1457_v28, 0.0 }
 0xdce   :  { %1464 = vadd.xlane.f32.xlu0 %v1463_v7 }
 0xdcf   :  { %v4371_v31 = vpop.f32.mrb[18].mxu1 }
 0xdd0   :  { %v1448_v32 = vpop.f32.mrb[19].mxu1  ;;  %v1454_v15 = vadd.f32 %v4371_v31, %v3921_v42 }
 0xdd1   :  { %v1449_v33 = vadd.f32 %v3921_v42, %v1448_v32 }
 0xdd2   :  { %v1460_v35 = vadd.f32 %v1454_v15, %v5346_v63 }
 0xdd3   :  { %v1459_v34 = vadd.f32 %v1449_v33, %v5340_v61 }
 0xdd4   :  { %v1472_v59 = vsel %vm20_vm0, %v1460_v35, 0.0 }
 0xdd5   :  { %v1469_v12 = vsel %vm20_vm0, %v1459_v34, 0.0 }
 0xdd6   :  { %1470 = vadd.xlane.f32.xlu0 %v1469_v12  ;;  %v1673_v12 = vld [vmem:[%s6171_s1 + $0x60] sm:$0xff] }
 0xdda   :  { %1473 = vadd.xlane.f32.xlu0 %v1472_v59 }
 0xe5a   :  { %v1468_v53 = vpop.xlane.xlu1 %1467 }
 0xe5b   :  { %v1476_v36 = vmul.f32 0.03125, %v1468_v53  ;;  %v1465_v37 = vpop.xlane.xlu0 %1464  ;;  %v1675_v53 = vld [vmem:[%s6171_s1 + $0x70] sm:$0xff] }
 0xe5c   :  { %v1475_v44 = vmul.f32 0.03125, %v1465_v37 }
 0xe5d   :  { %v1480_v45 = vsub.f32 %v1458_v26, %v1476_v36  ;;  %v1676_v36 = vld [vmem:[%s6171_s1 + $0x78] sm:$0xff] }
 0xe5e   :  { %v1479_v46 = vsub.f32 %v1457_v28, %v1475_v44  ;;  %v4725_v37 = vpack.c.bf16 %v1676_v36, %v1675_v53  ;;  %v1677_v44 = vld [vmem:[%s6171_s1 + $0x80] sm:$0xff] }
 0xe5f   :  { %v1484_v47 = vmul.f32 %v1480_v45, %v1480_v45 }
 0xe60   :  { %v1483_v48 = vmul.f32 %v1479_v46, %v1479_v46 }
 0xe61   :  { %v1490_v49 = vsel %vm20_vm0, %v1484_v47, 0.0  ;;  %v1679_v47 = vld [vmem:[%s6171_s1 + $0x90] sm:$0xff] }
 0xe62   :  { %1491 = vadd.xlane.f32.xlu1 %v1490_v49  ;;  %v1487_v61 = vsel %vm20_vm0, %v1483_v48, 0.0  ;;  %v1680_v48 = vld [vmem:[%s6171_s1 + $0x98] sm:$0xff] }
 0xe63   :  { %1488 = vadd.xlane.f32.xlu0 %v1487_v61  ;;  %v1471_v50 = vpop.xlane.xlu0 %1470  ;;  %v4733_v49 = vpack.c.bf16 %v1680_v48, %v1679_v47  ;;  %v3928_v61 = vld [vmem:[%s6172_s2 + $0x6] ss:$0 sm:$0xff] }
 0xe64   :  { %v1477_v63 = vmul.f32 0.03125, %v1471_v50 }
 0xe66   :  { %v1481_v51 = vsub.f32 %v1459_v34, %v1477_v63 }
 0xe67   :  { %v1474_v52 = vpop.xlane.xlu0 %1473 }
 0xe68   :  { %v1478_v54 = vmul.f32 0.03125, %v1474_v52  ;;  %v1485_v55 = vmul.f32 %v1481_v51, %v1481_v51 }
 0xe6a   :  { %v1482_v56 = vsub.f32 %v1460_v35, %v1478_v54  ;;  %v1493_v57 = vsel %vm20_vm0, %v1485_v55, 0.0  ;;  %v1674_v35 = vld [vmem:[%s6171_s1 + $0x68] sm:$0xff] }
 0xe6b   :  { %1494 = vadd.xlane.f32.xlu0 %v1493_v57  ;;  %v4721_v59 = vpack.c.bf16 %v1674_v35, %v1673_v12 }
 0xe6c   :  { %v1486_v58 = vmul.f32 %v1482_v56, %v1482_v56 }
 0xe6d   :  { %4722 = vmatprep.subr.bf16.mxu1 %v4721_v59 }
 0xe6e   :  { %v1496_v60 = vsel %vm20_vm0, %v1486_v58, 0.0  ;;  %4724 = vmatpush3.bf16.msra.mxu1 %v4721_v59  ;;  %v3933_v59 = vld [vmem:[%s6172_s2 + $0x7] ss:$0 sm:$0xff] }
 0xe6f   :  { %1497 = vadd.xlane.f32.xlu1 %v1496_v60  ;;  %4726 = vmatprep.subr.bf16.mxu1 %v4725_v37 }
 0xe72   :  { %4728 = vmatpush3.bf16.msra.mxu1 %v4725_v37 }
 0xeef   :  { %v1492_v6 = vpop.xlane.xlu1 %1491 }
 0xef0   :  { %v1500_v43 = vmul.f32 0.03125, %v1492_v6  ;;  %v1489_v17 = vpop.xlane.xlu0 %1488 }
 0xef1   :  { %v1499_v13 = vmul.f32 0.03125, %v1489_v17 }
 0xef2   :  { %v1504_v11 = vadd.f32 1e-05, %v1500_v43 }
 0xef3   :  { %v1503_v19 = vadd.f32 1e-05, %v1499_v13 }
 0xef4   :  { %5124 = vrsqrt.f32 %v1504_v11 }
 0xef5   :  { %5126 = vrsqrt.f32 %v1503_v19 }
 0xef8   :  { %v1495_v1 = vpop.xlane.xlu0 %1494 }
 0xef9   :  { %v1501_v40 = vmul.f32 0.03125, %v1495_v1 }
 0xefb   :  { %v1505_v20 = vadd.f32 1e-05, %v1501_v40 }
 0xefc   :  { %v1498_v21 = vpop.xlane.xlu1 %1497 }
 0xefd   :  { %5128 = vrsqrt.f32 %v1505_v20  ;;  %v1502_v39 = vmul.f32 0.03125, %v1498_v21 }
 0xefe   :  { %v5125_v0 = vpop.eup %5124 }
 0xeff   :  { %v5127_v23 = vpop.eup %5126  ;;  %v1512_v24 = vmul.f32 %v5125_v0, %v1480_v45  ;;  %v1506_v14 = vadd.f32 1e-05, %v1502_v39  ;;  %v1678_v45 = vld [vmem:[%s6171_s1 + $0x88] sm:$0xff] }
 0xf00   :  { %v1511_v42 = vmul.f32 %v5127_v23, %v1479_v46  ;;  %v4729_v46 = vpack.c.bf16 %v1678_v45, %v1677_v44 }
 0xf01   :  { %5130 = vrsqrt.f32 %v1506_v14  ;;  %v1520_v25 = vmul.f32 %v3926_v22, %v1512_v24 }
 0xf02   :  { %v1519_v41 = vmul.f32 %v3926_v22, %v1511_v42  ;;  %4730 = vmatprep.subr.bf16.mxu1 %v4729_v46 }
 0xf03   :  { %v5668_v26 = vadd.f32 %v3927_v10, %v1520_v25  ;;  %4732 = vmatpush3.bf16.msra.mxu1 %v4729_v46 }
 0xf04   :  { %v5666_v9 = vadd.f32 %v3927_v10, %v1519_v41  ;;  %4734 = vmatprep.subr.bf16.mxu1 %v4733_v49 }
 0xf06   :  { %4380 = vmatprep.mubr.msk.f32.mxu0 %vm20_vm0, %v5666_v9 }
 0xf07   :  { %v5129_v28 = vpop.eup %5128  ;;  %4381 = vmatmul.mubr.msk.f32.vlgmr.msra.gmra.mrb[20].mxu0 %vm20_vm0, %v5668_v26  ;;  %4736 = vmatpush3.bf16.msra.mxu1 %v4733_v49 }
 0xf08   :  { %v1513_v29 = vmul.f32 %v5129_v28, %v1481_v51 }
 0xf0a   :  { %v1521_v7 = vmul.f32 %v3926_v22, %v1513_v29 }
 0xf0b   :  { %v5131_v31 = vpop.eup %5130 }
 0xf0c   :  { %v5674_v32 = vadd.f32 %v3927_v10, %v1521_v7  ;;  %v1514_v15 = vmul.f32 %v5131_v31, %v1482_v56 }
 0xf0e   :  { %4383 = vmatprep.mubr.msk.f32.mxu0 %vm20_vm0, %v5674_v32  ;;  %v1522_v33 = vmul.f32 %v3926_v22, %v1514_v15 }
 0xf10   :  { %v5678_v34 = vadd.f32 %v3927_v10, %v1522_v33 }
 0xf12   :  { %4384 = vmatmul.mubr.msk.f32.gmra.mrb[22].mxu0 %vm20_vm0, %v5678_v34 }
 0xfda   :  { %v4382_v50 = vpop.f32.mrb[20].mxu0 }
 0xfdb   :  { %v1624_v63 = vadd.f32 %v4382_v50, %v3928_v61  ;;  %v1618_v51 = vpop.f32.mrb[21].mxu0 }
 0xfdc   :  { %v1619_v52 = vadd.f32 %v3928_v61, %v1618_v51 }
 0xfdd   :  { %v1642_v54 = vmul.f32 0.044715, %v1624_v63  ;;  %v1638_v10 = vmul.f32 0.5, %v1624_v63 }
 0xfde   :  { %v1641_v55 = vmul.f32 0.044715, %v1619_v52  ;;  %v1637_v14 = vmul.f32 0.5, %v1619_v52 }
 0xfdf   :  { %v1646_v56 = vmul.f32 %v1642_v54, %v1624_v63 }
 0xfe0   :  { %v1645_v57 = vmul.f32 %v1641_v55, %v1619_v52 }
 0xfe1   :  { %v1650_v58 = vmul.f32 %v1646_v56, %v1624_v63 }
 0xfe2   :  { %v1649_v60 = vmul.f32 %v1645_v57, %v1619_v52 }
 0xfe3   :  { %v1654_v62 = vadd.f32 %v1650_v58, %v1624_v63 }
 0xfe4   :  { %v1653_v3 = vadd.f32 %v1649_v60, %v1619_v52 }
 0xfe5   :  { %v1658_v8 = vmul.f32 0.7978846, %v1654_v62  ;;  %v4385_v4 = vpop.f32.mrb[22].mxu0 }
 0xfe6   :  { %v1634_v16 = vadd.f32 %v4385_v4, %v3928_v61  ;;  %v1628_v38 = vpop.f32.mrb[23].mxu0  ;;  %v1657_v6 = vmul.f32 0.7978846, %v1653_v3 }
 0xfe7   :  { %5132 = vtanh.f32 %v1658_v8  ;;  %v1629_v43 = vadd.f32 %v3928_v61, %v1628_v38 }
 0xfe8   :  { %v1644_v17 = vmul.f32 0.044715, %v1634_v16  ;;  %5134 = vtanh.f32 %v1657_v6  ;;  %v1640_v33 = vmul.f32 0.5, %v1634_v16 }
 0xfe9   :  { %v1643_v13 = vmul.f32 0.044715, %v1629_v43  ;;  %v1639_v31 = vmul.f32 0.5, %v1629_v43 }
 0xfea   :  { %v1648_v11 = vmul.f32 %v1644_v17, %v1634_v16 }
 0xfeb   :  { %v1647_v19 = vmul.f32 %v1643_v13, %v1629_v43 }
 0xfec   :  { %v1652_v1 = vmul.f32 %v1648_v11, %v1634_v16 }
 0xfed   :  { %v1651_v40 = vmul.f32 %v1647_v19, %v1629_v43 }
 0xfee   :  { %v1656_v20 = vadd.f32 %v1652_v1, %v1634_v16  ;;  %v1858_v1 = vld [vmem:[%s6171_s1 + $0xa0] sm:$0xff] }
 0xfef   :  { %v1655_v21 = vadd.f32 %v1651_v40, %v1629_v43  ;;  %v1859_v40 = vld [vmem:[%s6171_s1 + $0xa8] sm:$0xff] }
 0xff0   :  { %v1660_v39 = vmul.f32 0.7978846, %v1656_v20  ;;  %v4737_v20 = vpack.c.bf16 %v1859_v40, %v1858_v1 }
 0xff1   :  { %v5133_v0 = vpop.eup %5132  ;;  %v1659_v22 = vmul.f32 0.7978846, %v1655_v21  ;;  %v1860_v21 = vld [vmem:[%s6171_s1 + $0xb0] sm:$0xff] }
 0xff2   :  { %v5135_v23 = vpop.eup %5134  ;;  %v1666_v24 = vadd.f32 1.0, %v5133_v0  ;;  %5136 = vtanh.f32 %v1660_v39  ;;  %v1861_v39 = vld [vmem:[%s6171_s1 + $0xb8] sm:$0xff]  ;;  %4738 = vmatprep.subr.bf16.mxu0 %v4737_v20 }
 0xff3   :  { %v1665_v42 = vadd.f32 1.0, %v5135_v23  ;;  %5138 = vtanh.f32 %v1659_v22  ;;  %v4741_v0 = vpack.c.bf16 %v1861_v39, %v1860_v21  ;;  %4740 = vmatpush3.bf16.msra.mxu0 %v4737_v20 }
 0xff4   :  { %v1670_v41 = vmul.f32 %v1666_v24, %v1638_v10 }
 0xff5   :  { %v1669_v25 = vmul.f32 %v1665_v42, %v1637_v14  ;;  %4742 = vmatprep.subr.bf16.mxu0 %v4741_v0 }
 0xff7   :  { %4402 = vmatprep.mubr.msk.f32.mxu1 %vm1686_vm5, %v1669_v25  ;;  %4744 = vmatpush3.bf16.msra.mxu0 %v4741_v0 }
 0xff8   :  { %4403 = vmatmul.mubr.msk.f32.vlgmr.msra.gmra.mrb[20].mxu1 %vm1686_vm5, %v1670_v41 }
 0xffc   :  { %v5137_v28 = vpop.eup %5136 }
 0xffd   :  { %v5139_v29 = vpop.eup %5138  ;;  %v1668_v7 = vadd.f32 1.0, %v5137_v28 }
 0xffe   :  { %v1667_v15 = vadd.f32 1.0, %v5139_v29 }
 0xfff   :  { %v1672_v35 = vmul.f32 %v1668_v7, %v1640_v33  ;;  %v3938_v33 = vld [vmem:[%s6172_s2 + $0x8] ss:$0 sm:$0xff] }
0x1000   :  { %v1671_v12 = vmul.f32 %v1667_v15, %v1639_v31 }
0x1002   :  { %4405 = vmatprep.mubr.msk.f32.mxu1 %vm1686_vm5, %v1671_v12 }
0x1003   :  { %4406 = vmatmul.mubr.msk.f32.gmra.mrb[22].mxu1 %vm1686_vm5, %v1672_v35 }
0x10cb   :  { %v4404_v53 = vpop.f32.mrb[20].mxu1 }
0x10cc   :  { %v1771_v36 = vadd.f32 %v4404_v53, %v3933_v59  ;;  %v1765_v37 = vpop.f32.mrb[21].mxu1  ;;  %v3939_v53 = vld [vmem:[%s6172_s2 + $0x9] ss:$0 sm:$0xff] }
0x10cd   :  { %v1766_v44 = vadd.f32 %v3933_v59, %v1765_v37 }
0x10ce   :  { %v1785_v45 = vadd.f32 %v1771_v36, %v5668_v26 }
0x10cf   :  { %v1784_v46 = vadd.f32 %v1766_v44, %v5666_v9 }
0x10d0   :  { %v1793_v47 = vsel %vm20_vm0, %v1785_v45, 0.0 }
0x10d1   :  { %1794 = vadd.xlane.f32.xlu1 %v1793_v47  ;;  %v1790_v48 = vsel %vm20_vm0, %v1784_v46, 0.0 }
0x10d2   :  { %1791 = vadd.xlane.f32.xlu0 %v1790_v48 }
0x10d6   :  { %v4407_v49 = vpop.f32.mrb[22].mxu1 }
0x10d7   :  { %v1781_v61 = vadd.f32 %v4407_v49, %v3933_v59  ;;  %v1775_v50 = vpop.f32.mrb[23].mxu1 }
0x10d8   :  { %v1776_v63 = vadd.f32 %v3933_v59, %v1775_v50 }
0x10d9   :  { %v1787_v51 = vadd.f32 %v1781_v61, %v5678_v34 }
0x10da   :  { %v1786_v52 = vadd.f32 %v1776_v63, %v5674_v32 }
0x10db   :  { %v1799_v54 = vsel %vm20_vm0, %v1787_v51, 0.0 }
0x10dc   :  { %1800 = vadd.xlane.f32.xlu1 %v1799_v54  ;;  %v1796_v26 = vsel %vm20_vm0, %v1786_v52, 0.0 }
0x10dd   :  { %1797 = vadd.xlane.f32.xlu0 %v1796_v26 }
0x115e   :  { %v1795_v9 = vpop.xlane.xlu1 %1794 }
0x115f   :  { %v1803_v55 = vmul.f32 0.03125, %v1795_v9  ;;  %v1792_v56 = vpop.xlane.xlu0 %1791 }
0x1160   :  { %v1802_v57 = vmul.f32 0.03125, %v1792_v56 }
0x1161   :  { %v1807_v58 = vsub.f32 %v1785_v45, %v1803_v55 }
0x1162   :  { %v1806_v60 = vsub.f32 %v1784_v46, %v1802_v57 }
0x1163   :  { %v1811_v62 = vmul.f32 %v1807_v58, %v1807_v58 }
0x1164   :  { %v1810_v3 = vmul.f32 %v1806_v60, %v1806_v60 }
0x1165   :  { %v1817_v8 = vsel %vm20_vm0, %v1811_v62, 0.0 }
0x1166   :  { %1818 = vadd.xlane.f32.xlu1 %v1817_v8  ;;  %v1814_v34 = vsel %vm20_vm0, %v1810_v3, 0.0 }
0x1167   :  { %1815 = vadd.xlane.f32.xlu0 %v1814_v34 }
0x1169   :  { %v1801_v32 = vpop.xlane.xlu1 %1800 }
0x116a   :  { %v1805_v4 = vmul.f32 0.03125, %v1801_v32  ;;  %v1798_v16 = vpop.xlane.xlu0 %1797 }
0x116b   :  { %v1804_v38 = vmul.f32 0.03125, %v1798_v16 }
0x116c   :  { %v1809_v6 = vsub.f32 %v1787_v51, %v1805_v4 }
0x116d   :  { %v1808_v43 = vsub.f32 %v1786_v52, %v1804_v38  ;;  %v3940_v52 = vld [vmem:[%s6172_s2 + $0xa] ss:$0 sm:$0xff] }
0x116e   :  { %v1813_v17 = vmul.f32 %v1809_v6, %v1809_v6 }
0x116f   :  { %v1812_v13 = vmul.f32 %v1808_v43, %v1808_v43 }
0x1170   :  { %v1823_v11 = vsel %vm20_vm0, %v1813_v17, 0.0 }
0x1171   :  { %1824 = vadd.xlane.f32.xlu1 %v1823_v11  ;;  %v1820_v19 = vsel %vm20_vm0, %v1812_v13, 0.0 }
0x1172   :  { %1821 = vadd.xlane.f32.xlu0 %v1820_v19 }
0x11f3   :  { %v1819_v22 = vpop.xlane.xlu1 %1818 }
0x11f4   :  { %v1827_v23 = vmul.f32 0.03125, %v1819_v22  ;;  %v1816_v24 = vpop.xlane.xlu0 %1815 }
0x11f5   :  { %v1826_v14 = vmul.f32 0.03125, %v1816_v24 }
0x11f6   :  { %v1831_v42 = vadd.f32 1e-05, %v1827_v23 }
0x11f7   :  { %v1830_v10 = vadd.f32 1e-05, %v1826_v14 }
0x11f8   :  { %5140 = vrsqrt.f32 %v1831_v42 }
0x11f9   :  { %5142 = vrsqrt.f32 %v1830_v10 }
0x11fe   :  { %v1825_v25 = vpop.xlane.xlu1 %1824 }
0x11ff   :  { %v1829_v41 = vmul.f32 0.03125, %v1825_v25  ;;  %v1822_v28 = vpop.xlane.xlu0 %1821 }
0x1200   :  { %v1828_v29 = vmul.f32 0.03125, %v1822_v28 }
0x1201   :  { %v1833_v7 = vadd.f32 1e-05, %v1829_v41 }
0x1202   :  { %v5141_v31 = vpop.eup %5140  ;;  %v1832_v15 = vadd.f32 1e-05, %v1828_v29 }
0x1203   :  { %v5143_v12 = vpop.eup %5142  ;;  %v1839_v35 = vmul.f32 %v5141_v31, %v1807_v58  ;;  %5144 = vrsqrt.f32 %v1833_v7 }
0x1204   :  { %5146 = vrsqrt.f32 %v1832_v15  ;;  %v1838_v59 = vmul.f32 %v5143_v12, %v1806_v60 }
0x1205   :  { %v1847_v36 = vmul.f32 %v3938_v33, %v1839_v35 }
0x1206   :  { %v1846_v37 = vmul.f32 %v3938_v33, %v1838_v59 }
0x1207   :  { %v5748_v45 = vadd.f32 %v3939_v53, %v1847_v36 }
0x1208   :  { %v5746_v44 = vadd.f32 %v3939_v53, %v1846_v37 }
0x120a   :  { %4416 = vmatprep.mubr.msk.f32.mxu0 %vm20_vm0, %v5746_v44 }
0x120b   :  { %4417 = vmatmul.mubr.msk.f32.vlgmr.msra.gmra.mrb[24].mxu0 %vm20_vm0, %v5748_v45 }
0x120d   :  { %v5145_v46 = vpop.eup %5144 }
0x120e   :  { %v5147_v47 = vpop.eup %5146  ;;  %v1841_v48 = vmul.f32 %v5145_v46, %v1809_v6 }
0x120f   :  { %v1840_v49 = vmul.f32 %v5147_v47, %v1808_v43 }
0x1210   :  { %v1849_v61 = vmul.f32 %v3938_v33, %v1841_v48 }
0x1211   :  { %v1848_v50 = vmul.f32 %v3938_v33, %v1840_v49 }
0x1212   :  { %v5756_v51 = vadd.f32 %v3939_v53, %v1849_v61 }
0x1213   :  { %v5754_v63 = vadd.f32 %v3939_v53, %v1848_v50 }
0x1215   :  { %4419 = vmatprep.mubr.msk.f32.mxu0 %vm20_vm0, %v5754_v63 }
0x1216   :  { %4420 = vmatmul.mubr.msk.f32.gmra.mrb[26].mxu0 %vm20_vm0, %v5756_v51 }
0x12de   :  { %v4418_v54 = vpop.f32.mrb[24].mxu0 }
0x12df   :  { %v5765_v26 = vadd.f32 %v4418_v54, %v3940_v52  ;;  %v1945_v9 = vpop.f32.mrb[25].mxu0 }
0x12e0   :  { %v5767_v55 = vadd.f32 %v3940_v52, %v1945_v9 }
0x12e2   :  { %4430 = vmatprep.mubr.msk.f32.mxu0 %vm224_vm1, %v5767_v55  ;;  %v5773_v56 = vpack.i.bf16 %v5765_v26, %v5767_v55 }
0x12e4   :  { %4973 = vrot.lane.b32.xlu0 %v5773_v56, %s5243_s7 }
0x12e9   :  { %v4421_v57 = vpop.f32.mrb[26].mxu0 }
0x12ea   :  { %v5777_v58 = vadd.f32 %v4421_v57, %v3940_v52  ;;  %v1955_v60 = vpop.f32.mrb[27].mxu0 }
0x12eb   :  { %v5779_v62 = vadd.f32 %v3940_v52, %v1955_v60 }
0x12ed   :  { %v5783_v3 = vpack.i.bf16 %v5777_v58, %v5779_v62 }
0x12ef   :  { %4978 = vrot.lane.b32.xlu1 %v5783_v3, %s5243_s7 }
0x1356   :  { %v4974_v8 = vpop.permute.xlu0 %4973 }
0x1357   :  { %v4976_v34 = vunpack.i.h.bf16 %v4974_v8  ;;  %v4975_v32 = vunpack.i.l.bf16 %v4974_v8 }
0x1359   :  { %v4745_v4 = vpack.c.bf16 %v4976_v34, %v4975_v32 }
0x135b   :  { %4747 = vmatprep.subr.msk.bf16.mxu0 %vm5385_vm2, %v4745_v4 }
0x135c   :  { %4750 = vmatpush3.bf16.xpose.msk.msra.mxu0 %vm5385_vm2, %v4745_v4 }
0x1361   :  { %v4979_v16 = vpop.permute.xlu1 %4978 }
0x1362   :  { %v4981_v38 = vunpack.i.h.bf16 %v4979_v16  ;;  %v4980_v6 = vunpack.i.l.bf16 %v4979_v16 }
0x1364   :  { %v4751_v43 = vpack.c.bf16 %v4981_v38, %v4980_v6 }
0x1366   :  { %4753 = vmatprep.subr.msk.bf16.mxu0 %vm5385_vm2, %v4751_v43 }
0x1367   :  { %4756 = vmatpush3.bf16.xpose.msk.msra.mxu0 %vm5385_vm2, %v4751_v43 }
0x136e   :  { %4431 = vmatmul.mubr.msk.f32.vlgmr.msra.gmra.mrb[28].mxu0 %vm224_vm1, %v5765_v26 }
0x136f   :  { %4433 = vmatprep.mubr.msk.f32.mxu0 %vm224_vm1, %v5779_v62 }
0x1372   :  { %4434 = vmatmul.mubr.msk.f32.gmra.mrb[30].mxu0 %vm224_vm1, %v5777_v58 }
0x1441   :  { %v4432_v17 = vpop.f32.mrb[28].mxu0 }
0x1442   :  { %v2064_v13 = vadd.f32 %v4432_v17, %v5405_v5  ;;  %v2058_v11 = vpop.f32.mrb[29].mxu0 }
0x1443   :  { %v2059_v19 = vadd.f32 %v2058_v11, %v5403_v2 }
0x1444   :  { %v2080_v1 = vsel %vm20_vm0, %v2064_v13, -inf }
0x1445   :  { %2081 = vmax.xlane.f32.xlu0 %v2080_v1  ;;  %v4435_v40 = vpop.f32.mrb[30].mxu0  ;;  %v2077_v20 = vsel %vm20_vm0, %v2059_v19, -inf }
0x1446   :  { %v2074_v21 = vadd.f32 %v4435_v40, %v5413_v30  ;;  %v2068_v39 = vpop.f32.mrb[31].mxu0  ;;  %2078 = vmax.xlane.f32.xlu1 %v2077_v20 }
0x1447   :  { %v2069_v0 = vadd.f32 %v2068_v39, %v5410_v27 }
0x1448   :  { %v2086_v22 = vsel %vm20_vm0, %v2074_v21, -inf }
0x1449   :  { %v2083_v23 = vsel %vm20_vm0, %v2069_v0, -inf }
0x144a   :  { %2084 = vmax.xlane.f32.xlu0 %v2083_v23  ;;  %2087 = vmax.xlane.f32.xlu1 %v2086_v22 }
0x14d2   :  { %v2082_v24 = vpop.xlane.xlu0 %2081 }
0x14d3   :  { %v2090_v14 = vsub.f32 %v2064_v13, %v2082_v24  ;;  %v2079_v42 = vpop.xlane.xlu1 %2078 }
0x14d4   :  { %v2089_v10 = vsub.f32 %v2059_v19, %v2079_v42 }
0x14d5   :  { %v2095_v25 = vmul.f32 1.442695, %v2090_v14 }
0x14d6   :  { %v2093_v41 = vmul.f32 1.442695, %v2089_v10 }
0x14d7   :  { %5148 = vpow2.f32 %v2095_v25  ;;  %v2085_v15 = vpop.xlane.xlu0 %2084  ;;  %v2088_v35 = vpop.xlane.xlu1 %2087 }
0x14d8   :  { %5150 = vpow2.f32 %v2093_v41  ;;  %v2091_v33 = vsub.f32 %v2069_v0, %v2085_v15  ;;  %v2092_v59 = vsub.f32 %v2074_v21, %v2088_v35 }
0x14da   :  { %v2097_v12 = vmul.f32 1.442695, %v2091_v33  ;;  %v2099_v53 = vmul.f32 1.442695, %v2092_v59 }
0x14dc   :  { %5152 = vpow2.f32 %v2097_v12 }
0x14dd   :  { %5154 = vpow2.f32 %v2099_v53 }
0x14e1   :  { %v5149_v28 = vpop.eup %5148 }
0x14e2   :  { %v5151_v29 = vpop.eup %5150  ;;  %v2104_v7 = vsel %vm20_vm0, %v5149_v28, 0.0 }
0x14e3   :  { %2105 = vadd.xlane.f32.xlu1 %v2104_v7  ;;  %v2101_v31 = vsel %vm20_vm0, %v5151_v29, 0.0 }
0x14e4   :  { %2102 = vadd.xlane.f32.xlu0 %v2101_v31 }
0x14e6   :  { %v5153_v36 = vpop.eup %5152 }
0x14e7   :  { %v2107_v37 = vsel %vm20_vm0, %v5153_v36, 0.0  ;;  %v5155_v46 = vpop.eup %5154 }
0x14e8   :  { %v2110_v47 = vsel %vm20_vm0, %v5155_v46, 0.0 }
0x14f4   :  { %4988 = vrot.lane.b32.xlu1 %v5783_v3, %s5244_s8 }
0x14f8   :  { %4993 = vrot.lane.b32.xlu1 %v5773_v56, %s5245_s9 }
0x14fa   :  { %4983 = vrot.lane.b32.xlu0 %v5773_v56, %s5244_s8 }
0x14fc   :  { %4998 = vrot.lane.b32.xlu1 %v5783_v3, %s5245_s9 }
0x1519   :  { %2108 = vadd.xlane.f32.xlu0 %v2107_v37 }
0x1520   :  { %2111 = vadd.xlane.f32.xlu1 %v2110_v47 }
0x152f   :  { %2230 = vrot.lane.b32.xlu0 %v5767_v55, %s5246_s10 }
0x1531   :  { %2232 = vrot.lane.b32.xlu1 %v5765_v26, %s5246_s10 }
0x1533   :  { %2234 = vrot.lane.b32.xlu0 %v5779_v62, %s5246_s10 }
0x1535   :  { %2236 = vrot.lane.b32.xlu1 %v5777_v58, %s5246_s10 }
0x1570   :  { %v2106_v48 = vpop.xlane.xlu1 %2105 }
0x1571   :  { %v2103_v49 = vpop.xlane.xlu0 %2102 }
0x1572   :  { %5156 = vrcp.f32 %v2103_v49 }
0x1573   :  { %5158 = vrcp.f32 %v2106_v48 }
0x1574   :  { %v4989_v61 = vpop.permute.xlu1 %4988 }
0x1575   :  { %v4984_v50 = vpop.permute.xlu0 %4983  ;;  %v4991_v52 = vunpack.i.h.bf16 %v4989_v61  ;;  %v4990_v54 = vunpack.i.l.bf16 %v4989_v61 }
0x1576   :  { %v4986_v9 = vunpack.i.h.bf16 %v4984_v50  ;;  %v4985_v57 = vunpack.i.l.bf16 %v4984_v50 }
0x1577   :  { %v4761_v34 = vpack.c.bf16 %v4991_v52, %v4990_v54 }
0x1578   :  { %v4757_v60 = vpack.c.bf16 %v4986_v9, %v4985_v57  ;;  %v4994_v8 = vpop.permute.xlu1 %4993 }
0x1579   :  { %v4996_v32 = vunpack.i.h.bf16 %v4994_v8  ;;  %v4995_v4 = vunpack.i.l.bf16 %v4994_v8 }
0x157a   :  { %4758 = vmatprep.subr.bf16.mxu1 %v4757_v60 }
0x157b   :  { %4760 = vmatpush3.bf16.msra.mxu1 %v4757_v60  ;;  %v4765_v43 = vpack.c.bf16 %v4996_v32, %v4995_v4 }
0x157c   :  { %v5157_v16 = vpop.eup %5156  ;;  %4762 = vmatprep.subr.bf16.mxu1 %v4761_v34  ;;  %v4999_v13 = vpop.permute.xlu1 %4998 }
0x157d   :  { %v5159_v38 = vpop.eup %5158  ;;  %v2117_v6 = vmul.f32 %v5157_v16, %v5151_v29  ;;  %v5001_v11 = vunpack.i.h.bf16 %v4999_v13  ;;  %v5000_v19 = vunpack.i.l.bf16 %v4999_v13 }
0x157e   :  { %v2118_v17 = vmul.f32 %v5159_v38, %v5149_v28 }
0x157f   :  { %4764 = vmatpush3.bf16.msra.mxu1 %v4761_v34  ;;  %4444 = vmatprep.mubr.msk.f32.mxu1 %vm20_vm0, %v2117_v6  ;;  %v4771_v1 = vpack.c.bf16 %v5001_v11, %v5000_v19 }
0x1580   :  { %4767 = vmatprep.subr.msk.bf16.mxu1 %vm5385_vm2, %v4765_v43 }
0x1582   :  { %4445 = vmatmul.mubr.msk.f32.vlgmr.msra.gmra.mrb[24].mxu1 %vm20_vm0, %v2118_v17 }
0x1588   :  { %4770 = vmatpush3.bf16.xpose.msk.msra.mxu1 %vm5385_vm2, %v4765_v43 }
0x1589   :  { %4773 = vmatprep.subr.msk.bf16.mxu1 %vm5385_vm2, %v4771_v1 }
0x1590   :  { %4776 = vmatpush3.bf16.xpose.msk.msra.mxu1 %vm5385_vm2, %v4771_v1 }
0x15a6   :  { %v2109_v40 = vpop.xlane.xlu0 %2108 }
0x15a7   :  { %5160 = vrcp.f32 %v2109_v40 }
0x15aa   :  { %v2231_v22 = vpop.permute.xlu0 %2230 }
0x15ad   :  { %v2112_v20 = vpop.xlane.xlu1 %2111 }
0x15ae   :  { %5162 = vrcp.f32 %v2112_v20  ;;  %v2235_v14 = vpop.permute.xlu0 %2234 }
0x15b1   :  { %v5161_v21 = vpop.eup %5160  ;;  %v2233_v24 = vpop.permute.xlu1 %2232 }
0x15b2   :  { %v2119_v39 = vmul.f32 %v5161_v21, %v5153_v36 }
0x15b4   :  { %4447 = vmatprep.mubr.msk.f32.mxu1 %vm20_vm0, %v2119_v39 }
0x15b5   :  { %v2237_v42 = vpop.permute.xlu1 %2236 }
0x15b8   :  { %v5163_v0 = vpop.eup %5162 }
0x15b9   :  { %v2120_v23 = vmul.f32 %v5163_v0, %v5155_v46 }
0x15bb   :  { %4448 = vmatmul.mubr.msk.f32.gmra.mrb[26].mxu1 %vm20_vm0, %v2120_v23 }
0x15bc   :  { %4458 = vmatprep.mubr.msk.f32.mxu1 %vm224_vm1, %v2231_v22 }
0x15bf   :  { %4459 = vmatmul.mubr.msk.f32.vlgmr.msra.gmra.mrb[28].mxu1 %vm224_vm1, %v2233_v24 }
0x15c0   :  { %4461 = vmatprep.mubr.msk.f32.mxu1 %vm224_vm1, %v2235_v14 }
0x15c3   :  { %4462 = vmatmul.mubr.msk.f32.gmra.mrb[30].mxu1 %vm224_vm1, %v2237_v42 }
0x1655   :  { %v5845_v10 = vpop.f32.mrb[24].mxu1 }
0x1656   :  { %v5847_v25 = vpop.f32.mrb[25].mxu1 }
0x168e   :  { %v5849_v41 = vpop.f32.mrb[26].mxu1 }
0x168f   :  { %v5851_v28 = vpop.f32.mrb[27].mxu1 }
0x1692   :  { %v4460_v29 = vpop.f32.mrb[28].mxu1 }
0x1693   :  { %v2334_v7 = vadd.f32 %v4460_v29, %v5405_v5  ;;  %v2328_v31 = vpop.f32.mrb[29].mxu1 }
0x1694   :  { %v2329_v15 = vadd.f32 %v2328_v31, %v5403_v2 }
0x1695   :  { %v2350_v33 = vsel %vm20_vm0, %v2334_v7, -inf }
0x1696   :  { %2351 = vmax.xlane.f32.xlu1 %v2350_v33  ;;  %v4463_v12 = vpop.f32.mrb[30].mxu1  ;;  %v2347_v35 = vsel %vm20_vm0, %v2329_v15, -inf }
0x1697   :  { %v2338_v59 = vpop.f32.mrb[31].mxu1  ;;  %2348 = vmax.xlane.f32.xlu0 %v2347_v35  ;;  %v2344_v36 = vadd.f32 %v4463_v12, %v5413_v30 }
0x1698   :  { %v2339_v53 = vadd.f32 %v2338_v59, %v5410_v27 }
0x1699   :  { %v2356_v46 = vsel %vm20_vm0, %v2344_v36, -inf }
0x169a   :  { %v2353_v37 = vsel %vm20_vm0, %v2339_v53, -inf }
0x169b   :  { %2354 = vmax.xlane.f32.xlu0 %v2353_v37 }
0x169f   :  { %2357 = vmax.xlane.f32.xlu0 %v2356_v46 }
0x1723   :  { %v2352_v47 = vpop.xlane.xlu1 %2351 }
0x1724   :  { %v2360_v48 = vsub.f32 %v2334_v7, %v2352_v47  ;;  %v2349_v49 = vpop.xlane.xlu0 %2348 }
0x1725   :  { %v2359_v61 = vsub.f32 %v2329_v15, %v2349_v49 }
0x1726   :  { %v2365_v50 = vmul.f32 1.442695, %v2360_v48 }
0x1727   :  { %v2363_v52 = vmul.f32 1.442695, %v2359_v61 }
0x1728   :  { %5164 = vpow2.f32 %v2365_v50  ;;  %v2355_v8 = vpop.xlane.xlu0 %2354 }
0x1729   :  { %5166 = vpow2.f32 %v2363_v52  ;;  %v2361_v34 = vsub.f32 %v2339_v53, %v2355_v8 }
0x172b   :  { %v2367_v32 = vmul.f32 1.442695, %v2361_v34 }
0x172c   :  { %v2358_v4 = vpop.xlane.xlu0 %2357 }
0x172d   :  { %v2362_v16 = vsub.f32 %v2344_v36, %v2358_v4  ;;  %5168 = vpow2.f32 %v2367_v32 }
0x172f   :  { %v2369_v38 = vmul.f32 1.442695, %v2362_v16 }
0x1731   :  { %5170 = vpow2.f32 %v2369_v38 }
0x1732   :  { %v5165_v54 = vpop.eup %5164 }
0x1733   :  { %v5167_v9 = vpop.eup %5166  ;;  %v2374_v57 = vsel %vm20_vm0, %v5165_v54, 0.0 }
0x1734   :  { %2375 = vadd.xlane.f32.xlu1 %v2374_v57  ;;  %v2371_v60 = vsel %vm20_vm0, %v5167_v9, 0.0 }
0x1735   :  { %2372 = vadd.xlane.f32.xlu0 %v2371_v60 }
0x1737   :  { %v5169_v6 = vpop.eup %5168 }
0x1738   :  { %v2377_v43 = vsel %vm20_vm0, %v5169_v6, 0.0 }
0x173b   :  { %v5171_v17 = vpop.eup %5170 }
0x173c   :  { %v2380_v13 = vsel %vm20_vm0, %v5171_v17, 0.0 }
0x1745   :  { %5008 = vrot.lane.b32.xlu1 %v5783_v3, %s5247_s11 }
0x1749   :  { %5013 = vrot.lane.b32.xlu1 %v5773_v56, %s5248_s12 }
0x174b   :  { %5003 = vrot.lane.b32.xlu0 %v5773_v56, %s5247_s11 }
0x174d   :  { %5018 = vrot.lane.b32.xlu1 %v5783_v3, %s5248_s12 }
0x176a   :  { %2378 = vadd.xlane.f32.xlu0 %v2377_v43 }
0x1771   :  { %2381 = vadd.xlane.f32.xlu1 %v2380_v13 }
0x1780   :  { %2500 = vrot.lane.b32.xlu0 %v5767_v55, %s5249_s13 }
0x1782   :  { %2502 = vrot.lane.b32.xlu1 %v5765_v26, %s5249_s13 }
0x1784   :  { %2504 = vrot.lane.b32.xlu0 %v5779_v62, %s5249_s13 }
0x1786   :  { %2506 = vrot.lane.b32.xlu1 %v5777_v58, %s5249_s13 }
0x17c1   :  { %v2376_v11 = vpop.xlane.xlu1 %2375 }
0x17c2   :  { %v2373_v19 = vpop.xlane.xlu0 %2372 }
0x17c3   :  { %5172 = vrcp.f32 %v2373_v19 }
0x17c4   :  { %5174 = vrcp.f32 %v2376_v11 }
0x17c5   :  { %v5009_v1 = vpop.permute.xlu1 %5008 }
0x17c6   :  { %v5004_v40 = vpop.permute.xlu0 %5003  ;;  %v5011_v20 = vunpack.i.h.bf16 %v5009_v1  ;;  %v5010_v21 = vunpack.i.l.bf16 %v5009_v1 }
0x17c7   :  { %v5006_v39 = vunpack.i.h.bf16 %v5004_v40  ;;  %v5005_v0 = vunpack.i.l.bf16 %v5004_v40 }
0x17c8   :  { %v4781_v24 = vpack.c.bf16 %v5011_v20, %v5010_v21 }
0x17c9   :  { %v4777_v22 = vpack.c.bf16 %v5006_v39, %v5005_v0  ;;  %v5014_v23 = vpop.permute.xlu1 %5013 }
0x17ca   :  { %v5016_v14 = vunpack.i.h.bf16 %v5014_v23  ;;  %v5015_v42 = vunpack.i.l.bf16 %v5014_v23 }
0x17cb   :  { %4778 = vmatprep.subr.bf16.mxu0 %v4777_v22 }
0x17cc   :  { %4780 = vmatpush3.bf16.msra.mxu0 %v4777_v22  ;;  %v4785_v15 = vpack.c.bf16 %v5016_v14, %v5015_v42 }
0x17cd   :  { %v5173_v29 = vpop.eup %5172  ;;  %4782 = vmatprep.subr.bf16.mxu0 %v4781_v24  ;;  %v5019_v12 = vpop.permute.xlu1 %5018 }
0x17ce   :  { %v5175_v7 = vpop.eup %5174  ;;  %v2387_v31 = vmul.f32 %v5173_v29, %v5167_v9  ;;  %v5021_v35 = vunpack.i.h.bf16 %v5019_v12  ;;  %v5020_v59 = vunpack.i.l.bf16 %v5019_v12 }
0x17cf   :  { %v2388_v33 = vmul.f32 %v5175_v7, %v5165_v54 }
0x17d0   :  { %4784 = vmatpush3.bf16.msra.mxu0 %v4781_v24  ;;  %4472 = vmatprep.mubr.msk.f32.mxu0 %vm20_vm0, %v2387_v31  ;;  %v4791_v53 = vpack.c.bf16 %v5021_v35, %v5020_v59 }
0x17d1   :  { %4787 = vmatprep.subr.msk.bf16.mxu0 %vm5385_vm2, %v4785_v15 }
0x17d3   :  { %4473 = vmatmul.mubr.msk.f32.vlgmr.msra.gmra.mrb[32].mxu0 %vm20_vm0, %v2388_v33 }
0x17d9   :  { %4790 = vmatpush3.bf16.xpose.msk.msra.mxu0 %vm5385_vm2, %v4785_v15 }
0x17da   :  { %4793 = vmatprep.subr.msk.bf16.mxu0 %vm5385_vm2, %v4791_v53 }
0x17e1   :  { %4796 = vmatpush3.bf16.xpose.msk.msra.mxu0 %vm5385_vm2, %v4791_v53 }
0x17f7   :  { %v2379_v36 = vpop.xlane.xlu0 %2378 }
0x17f8   :  { %5176 = vrcp.f32 %v2379_v36 }
0x17fb   :  { %v2501_v49 = vpop.permute.xlu0 %2500 }
0x17fe   :  { %v2382_v37 = vpop.xlane.xlu1 %2381 }
0x17ff   :  { %5178 = vrcp.f32 %v2382_v37  ;;  %v2505_v52 = vpop.permute.xlu0 %2504 }
0x1802   :  { %v5177_v46 = vpop.eup %5176  ;;  %v2503_v50 = vpop.permute.xlu1 %2502 }
0x1803   :  { %v2389_v47 = vmul.f32 %v5177_v46, %v5169_v6 }
0x1805   :  { %4475 = vmatprep.mubr.msk.f32.mxu0 %vm20_vm0, %v2389_v47 }
0x1806   :  { %v2507_v54 = vpop.permute.xlu1 %2506 }
0x1809   :  { %v5179_v48 = vpop.eup %5178 }
0x180a   :  { %v2390_v61 = vmul.f32 %v5179_v48, %v5171_v17 }
0x180c   :  { %4476 = vmatmul.mubr.msk.f32.gmra.mrb[34].mxu0 %vm20_vm0, %v2390_v61 }
0x180d   :  { %4486 = vmatprep.mubr.msk.f32.mxu0 %vm224_vm1, %v2501_v49 }
0x1810   :  { %4487 = vmatmul.mubr.msk.f32.vlgmr.msra.gmra.mrb[36].mxu0 %vm224_vm1, %v2503_v50 }
0x1811   :  { %4489 = vmatprep.mubr.msk.f32.mxu0 %vm224_vm1, %v2505_v52 }
0x1814   :  { %4490 = vmatmul.mubr.msk.f32.gmra.mrb[38].mxu0 %vm224_vm1, %v2507_v54 }
0x18a6   :  { %v5897_v9 = vpop.f32.mrb[32].mxu0 }
0x18a7   :  { %v5899_v57 = vpop.f32.mrb[33].mxu0 }
0x18df   :  { %v5901_v60 = vpop.f32.mrb[34].mxu0 }
0x18e0   :  { %v5903_v8 = vpop.f32.mrb[35].mxu0 }
0x18e3   :  { %v4488_v34 = vpop.f32.mrb[36].mxu0 }
0x18e4   :  { %v2604_v32 = vadd.f32 %v4488_v34, %v5405_v5  ;;  %v2598_v4 = vpop.f32.mrb[37].mxu0 }
0x18e5   :  { %v2599_v16 = vadd.f32 %v2598_v4, %v5403_v2 }
0x18e6   :  { %v2620_v38 = vsel %vm20_vm0, %v2604_v32, -inf }
0x18e7   :  { %2621 = vmax.xlane.f32.xlu1 %v2620_v38  ;;  %v4491_v6 = vpop.f32.mrb[38].mxu0  ;;  %v2617_v43 = vsel %vm20_vm0, %v2599_v16, -inf }
0x18e8   :  { %v2608_v17 = vpop.f32.mrb[39].mxu0  ;;  %2618 = vmax.xlane.f32.xlu0 %v2617_v43  ;;  %v2614_v11 = vadd.f32 %v4491_v6, %v5413_v30 }
0x18e9   :  { %v2609_v13 = vadd.f32 %v2608_v17, %v5410_v27 }
0x18ea   :  { %v2626_v1 = vsel %vm20_vm0, %v2614_v11, -inf }
0x18eb   :  { %v2623_v19 = vsel %vm20_vm0, %v2609_v13, -inf }
0x18ec   :  { %2624 = vmax.xlane.f32.xlu0 %v2623_v19 }
0x18f0   :  { %2627 = vmax.xlane.f32.xlu0 %v2626_v1 }
0x1974   :  { %v2622_v40 = vpop.xlane.xlu1 %2621 }
0x1975   :  { %v2630_v20 = vsub.f32 %v2604_v32, %v2622_v40  ;;  %v2619_v21 = vpop.xlane.xlu0 %2618 }
0x1976   :  { %v2629_v39 = vsub.f32 %v2599_v16, %v2619_v21 }
0x1977   :  { %v2635_v0 = vmul.f32 1.442695, %v2630_v20 }
0x1978   :  { %v2633_v22 = vmul.f32 1.442695, %v2629_v39 }
0x1979   :  { %5180 = vpow2.f32 %v2635_v0  ;;  %v2625_v29 = vpop.xlane.xlu0 %2624 }
0x197a   :  { %5182 = vpow2.f32 %v2633_v22  ;;  %v2631_v7 = vsub.f32 %v2609_v13, %v2625_v29 }
0x197c   :  { %v2637_v31 = vmul.f32 1.442695, %v2631_v7 }
0x197d   :  { %v2628_v15 = vpop.xlane.xlu0 %2627 }
0x197e   :  { %v2632_v33 = vsub.f32 %v2614_v11, %v2628_v15  ;;  %5184 = vpow2.f32 %v2637_v31 }
0x1980   :  { %v2639_v12 = vmul.f32 1.442695, %v2632_v33 }
0x1982   :  { %5186 = vpow2.f32 %v2639_v12 }
0x1983   :  { %v5181_v23 = vpop.eup %5180 }
0x1984   :  { %v5183_v24 = vpop.eup %5182  ;;  %v2644_v14 = vsel %vm20_vm0, %v5181_v23, 0.0 }
0x1985   :  { %2645 = vadd.xlane.f32.xlu1 %v2644_v14  ;;  %v2641_v42 = vsel %vm20_vm0, %v5183_v24, 0.0 }
0x1986   :  { %2642 = vadd.xlane.f32.xlu0 %v2641_v42 }
0x1988   :  { %v5185_v35 = vpop.eup %5184 }
0x1989   :  { %v2647_v59 = vsel %vm20_vm0, %v5185_v35, 0.0 }
0x198c   :  { %v5187_v53 = vpop.eup %5186 }
0x198d   :  { %v2650_v36 = vsel %vm20_vm0, %v5187_v53, 0.0 }
0x1996   :  { %5028 = vrot.lane.b32.xlu1 %v5783_v3, %s5250_s14 }
0x199a   :  { %5033 = vrot.lane.b32.xlu1 %v5773_v56, %s5251_s15 }
0x199c   :  { %5023 = vrot.lane.b32.xlu0 %v5773_v56, %s5250_s14 }
0x199e   :  { %5038 = vrot.lane.b32.xlu1 %v5783_v3, %s5251_s15 }
0x19bb   :  { %2648 = vadd.xlane.f32.xlu0 %v2647_v59 }
0x19c2   :  { %2651 = vadd.xlane.f32.xlu1 %v2650_v36 }
0x19d1   :  { %2770 = vrot.lane.b32.xlu0 %v5767_v55, %s5252_s16 }
0x19d3   :  { %2772 = vrot.lane.b32.xlu1 %v5765_v26, %s5252_s16 }
0x19d5   :  { %2774 = vrot.lane.b32.xlu0 %v5779_v62, %s5252_s16 }
0x19d7   :  { %2776 = vrot.lane.b32.xlu1 %v5777_v58, %s5252_s16 }
0x1a12   :  { %v2646_v37 = vpop.xlane.xlu1 %2645 }
0x1a13   :  { %v2643_v46 = vpop.xlane.xlu0 %2642 }
0x1a14   :  { %5188 = vrcp.f32 %v2643_v46 }
0x1a15   :  { %5190 = vrcp.f32 %v2646_v37 }
0x1a16   :  { %v5029_v47 = vpop.permute.xlu1 %5028 }
0x1a17   :  { %v5024_v48 = vpop.permute.xlu0 %5023  ;;  %v5031_v49 = vunpack.i.h.bf16 %v5029_v47  ;;  %v5030_v61 = vunpack.i.l.bf16 %v5029_v47 }
0x1a18   :  { %v5026_v50 = vunpack.i.h.bf16 %v5024_v48  ;;  %v5025_v52 = vunpack.i.l.bf16 %v5024_v48 }
0x1a19   :  { %v4801_v34 = vpack.c.bf16 %v5031_v49, %v5030_v61 }
0x1a1a   :  { %v4797_v55 = vpack.c.bf16 %v5026_v50, %v5025_v52  ;;  %v5034_v54 = vpop.permute.xlu1 %5033 }
0x1a1b   :  { %v5036_v26 = vunpack.i.h.bf16 %v5034_v54  ;;  %v5035_v32 = vunpack.i.l.bf16 %v5034_v54 }
0x1a1c   :  { %4798 = vmatprep.subr.bf16.mxu1 %v4797_v55 }
0x1a1d   :  { %4800 = vmatpush3.bf16.msra.mxu1 %v4797_v55  ;;  %v4805_v16 = vpack.c.bf16 %v5036_v26, %v5035_v32 }
0x1a1e   :  { %v5189_v62 = vpop.eup %5188  ;;  %4802 = vmatprep.subr.bf16.mxu1 %v4801_v34  ;;  %v5039_v6 = vpop.permute.xlu1 %5038 }
0x1a1f   :  { %v5191_v58 = vpop.eup %5190  ;;  %v2657_v4 = vmul.f32 %v5189_v62, %v5183_v24  ;;  %v5041_v43 = vunpack.i.h.bf16 %v5039_v6  ;;  %v5040_v17 = vunpack.i.l.bf16 %v5039_v6 }
0x1a20   :  { %v2658_v38 = vmul.f32 %v5191_v58, %v5181_v23 }
0x1a21   :  { %4804 = vmatpush3.bf16.msra.mxu1 %v4801_v34  ;;  %4500 = vmatprep.mubr.msk.f32.mxu1 %vm20_vm0, %v2657_v4  ;;  %v4811_v13 = vpack.c.bf16 %v5041_v43, %v5040_v17 }
0x1a22   :  { %4807 = vmatprep.subr.msk.bf16.mxu1 %vm5385_vm2, %v4805_v16 }
0x1a24   :  { %4501 = vmatmul.mubr.msk.f32.vlgmr.msra.gmra.mrb[32].mxu1 %vm20_vm0, %v2658_v38 }
0x1a2a   :  { %4810 = vmatpush3.bf16.xpose.msk.msra.mxu1 %vm5385_vm2, %v4805_v16 }
0x1a2b   :  { %4813 = vmatprep.subr.msk.bf16.mxu1 %vm5385_vm2, %v4811_v13 }
0x1a32   :  { %4816 = vmatpush3.bf16.xpose.msk.msra.mxu1 %vm5385_vm2, %v4811_v13 }
0x1a48   :  { %v2649_v11 = vpop.xlane.xlu0 %2648 }
0x1a49   :  { %5192 = vrcp.f32 %v2649_v11 }
0x1a4c   :  { %v2771_v21 = vpop.permute.xlu0 %2770 }
0x1a4f   :  { %v2652_v19 = vpop.xlane.xlu1 %2651 }
0x1a50   :  { %5194 = vrcp.f32 %v2652_v19  ;;  %v2775_v22 = vpop.permute.xlu0 %2774 }
0x1a53   :  { %v5193_v1 = vpop.eup %5192  ;;  %v2773_v0 = vpop.permute.xlu1 %2772 }
0x1a54   :  { %v2659_v40 = vmul.f32 %v5193_v1, %v5185_v35 }
0x1a56   :  { %4503 = vmatprep.mubr.msk.f32.mxu1 %vm20_vm0, %v2659_v40 }
0x1a57   :  { %v2777_v18 = vpop.permute.xlu1 %2776 }
0x1a5a   :  { %v5195_v20 = vpop.eup %5194 }
0x1a5b   :  { %v2660_v39 = vmul.f32 %v5195_v20, %v5187_v53 }
0x1a5d   :  { %4504 = vmatmul.mubr.msk.f32.gmra.mrb[34].mxu1 %vm20_vm0, %v2660_v39 }
0x1a5e   :  { %4514 = vmatprep.mubr.msk.f32.mxu1 %vm224_vm1, %v2771_v21 }
0x1a61   :  { %4515 = vmatmul.mubr.msk.f32.vlgmr.msra.gmra.mrb[36].mxu1 %vm224_vm1, %v2773_v0 }
0x1a62   :  { %4517 = vmatprep.mubr.msk.f32.mxu1 %vm224_vm1, %v2775_v22 }
0x1a65   :  { %4518 = vmatmul.mubr.msk.f32.gmra.mrb[38].mxu1 %vm224_vm1, %v2777_v18 }
0x1af7   :  { %v4502_v23 = vpop.f32.mrb[32].mxu1 }
0x1af8   :  { %v2751_v24 = vpop.f32.mrb[33].mxu1 }
0x1b30   :  { %v4505_v14 = vpop.f32.mrb[34].mxu1 }
0x1b31   :  { %v2761_v42 = vpop.f32.mrb[35].mxu1 }
0x1b34   :  { %v4516_v29 = vpop.f32.mrb[36].mxu1 }
0x1b35   :  { %v2874_v7 = vadd.f32 %v4516_v29, %v5405_v5  ;;  %v2868_v31 = vpop.f32.mrb[37].mxu1  ;;  %v3103_v29 = vld [vmem:[%s6171_s1 + $0xd8] sm:$0xff] }
0x1b36   :  { %v2869_v15 = vadd.f32 %v2868_v31, %v5403_v2 }
0x1b37   :  { %v2890_v33 = vsel %vm20_vm0, %v2874_v7, -inf }
0x1b38   :  { %2891 = vmax.xlane.f32.xlu1 %v2890_v33  ;;  %v4519_v12 = vpop.f32.mrb[38].mxu1  ;;  %v2887_v35 = vsel %vm20_vm0, %v2869_v15, -inf }
0x1b39   :  { %v2878_v59 = vpop.f32.mrb[39].mxu1  ;;  %2888 = vmax.xlane.f32.xlu0 %v2887_v35  ;;  %v2884_v36 = vadd.f32 %v4519_v12, %v5413_v30 }
0x1b3a   :  { %v2879_v53 = vadd.f32 %v2878_v59, %v5410_v27 }
0x1b3b   :  { %v2896_v5 = vsel %vm20_vm0, %v2884_v36, -inf }
0x1b3c   :  { %v2893_v37 = vsel %vm20_vm0, %v2879_v53, -inf }
0x1b3d   :  { %2894 = vmax.xlane.f32.xlu0 %v2893_v37 }
0x1b41   :  { %2897 = vmax.xlane.f32.xlu0 %v2896_v5 }
0x1bc5   :  { %v2892_v46 = vpop.xlane.xlu1 %2891 }
0x1bc6   :  { %v2900_v2 = vsub.f32 %v2874_v7, %v2892_v46  ;;  %v2889_v47 = vpop.xlane.xlu0 %2888 }
0x1bc7   :  { %v2899_v48 = vsub.f32 %v2869_v15, %v2889_v47 }
0x1bc8   :  { %v2905_v49 = vmul.f32 1.442695, %v2900_v2 }
0x1bc9   :  { %v2903_v61 = vmul.f32 1.442695, %v2899_v48 }
0x1bca   :  { %5196 = vpow2.f32 %v2905_v49  ;;  %v2895_v50 = vpop.xlane.xlu0 %2894 }
0x1bcb   :  { %5198 = vpow2.f32 %v2903_v61  ;;  %v2901_v52 = vsub.f32 %v2879_v53, %v2895_v50 }
0x1bcd   :  { %v2907_v55 = vmul.f32 1.442695, %v2901_v52 }
0x1bce   :  { %v2898_v27 = vpop.xlane.xlu0 %2897 }
0x1bcf   :  { %5200 = vpow2.f32 %v2907_v55  ;;  %v2902_v30 = vsub.f32 %v2884_v36, %v2898_v27 }
0x1bd1   :  { %v2909_v54 = vmul.f32 1.442695, %v2902_v30 }
0x1bd3   :  { %5202 = vpow2.f32 %v2909_v54 }
0x1bd4   :  { %v5197_v34 = vpop.eup %5196 }
0x1bd5   :  { %v5199_v26 = vpop.eup %5198  ;;  %v2914_v32 = vsel %vm20_vm0, %v5197_v34, 0.0 }
0x1bd6   :  { %2915 = vadd.xlane.f32.xlu1 %v2914_v32  ;;  %v2911_v62 = vsel %vm20_vm0, %v5199_v26, 0.0 }
0x1bd7   :  { %2912 = vadd.xlane.f32.xlu0 %v2911_v62 }
0x1bd9   :  { %v5201_v58 = vpop.eup %5200 }
0x1bda   :  { %v2917_v4 = vsel %vm20_vm0, %v5201_v58, 0.0 }
0x1bdb   :  { %2918 = vadd.xlane.f32.xlu0 %v2917_v4 }
0x1bdd   :  { %v5203_v16 = vpop.eup %5202 }
0x1bde   :  { %v2920_v38 = vsel %vm20_vm0, %v5203_v16, 0.0 }
0x1bdf   :  { %2921 = vadd.xlane.f32.xlu1 %v2920_v38 }
0x1bf0   :  { %5048 = vrot.lane.b32.xlu1 %v5783_v3, %s5253_s17 }
0x1bf1   :  { %5043 = vrot.lane.b32.xlu0 %v5773_v56, %s5253_s17 }
0x1bf4   :  { %3044 = vrot.lane.b32.xlu1 %v5899_v57, %s5254_s18 }
0x1bf5   :  { %3060 = vrot.lane.b32.xlu0 %v2751_v24, %s5255_s19  ;;  %v3101_v24 = vld [vmem:[%s6171_s1 + $0xc8] sm:$0xff] }
0x1bf8   :  { %3046 = vrot.lane.b32.xlu1 %v5897_v9, %s5254_s18 }
0x1bf9   :  { %3048 = vrot.lane.b32.xlu0 %v5903_v8, %s5254_s18 }
0x1bfc   :  { %3062 = vrot.lane.b32.xlu1 %v4502_v23, %s5255_s19  ;;  %v3100_v23 = vld [vmem:[%s6171_s1 + $0xc0] sm:$0xff] }
0x1bfd   :  { %3064 = vrot.lane.b32.xlu0 %v2761_v42, %s5255_s19  ;;  %v4825_v42 = vpack.c.bf16 %v3101_v24, %v3100_v23 }
0x1c00   :  { %3050 = vrot.lane.b32.xlu1 %v5901_v60, %s5254_s18 }
0x1c04   :  { %3066 = vrot.lane.b32.xlu1 %v4505_v14, %s5255_s19  ;;  %v3102_v14 = vld [vmem:[%s6171_s1 + $0xd0] sm:$0xff] }
0x1c05   :  { %v4829_v7 = vpack.c.bf16 %v3103_v29, %v3102_v14 }
0x1c63   :  { %v2916_v3 = vpop.xlane.xlu1 %2915 }
0x1c64   :  { %v2913_v56 = vpop.xlane.xlu0 %2912 }
0x1c65   :  { %5204 = vrcp.f32 %v2913_v56 }
0x1c66   :  { %5206 = vrcp.f32 %v2916_v3 }
0x1c68   :  { %v2919_v57 = vpop.xlane.xlu0 %2918 }
0x1c69   :  { %5208 = vrcp.f32 %v2919_v57 }
0x1c6c   :  { %v2922_v6 = vpop.xlane.xlu1 %2921  ;;  %v5044_v9 = vpop.permute.xlu0 %5043 }
0x1c6d   :  { %v5046_v43 = vunpack.i.h.bf16 %v5044_v9  ;;  %v5045_v17 = vunpack.i.l.bf16 %v5044_v9  ;;  %5210 = vrcp.f32 %v2922_v6 }
0x1c6f   :  { %v5205_v8 = vpop.eup %5204  ;;  %v4817_v13 = vpack.c.bf16 %v5046_v43, %v5045_v17 }
0x1c70   :  { %v5049_v11 = vpop.permute.xlu1 %5048  ;;  %v2927_v19 = vmul.f32 %v5205_v8, %v5199_v26  ;;  %v5207_v20 = vpop.eup %5206 }
0x1c71   :  { %v5051_v1 = vunpack.i.h.bf16 %v5049_v11  ;;  %v5050_v40 = vunpack.i.l.bf16 %v5049_v11  ;;  %4818 = vmatprep.subr.bf16.mxu0 %v4817_v13  ;;  %v2928_v39 = vmul.f32 %v5207_v20, %v5197_v34  ;;  %v3061_v36 = vpop.permute.xlu0 %3060 }
0x1c72   :  { %4820 = vmatpush3.bf16.msra.mxu0 %v4817_v13  ;;  %4528 = vmatprep.mubr.msk.f32.mxu0 %vm20_vm0, %v2927_v19 }
0x1c73   :  { %v4821_v60 = vpack.c.bf16 %v5051_v1, %v5050_v40  ;;  %v5209_v21 = vpop.eup %5208 }
0x1c74   :  { %v2929_v22 = vmul.f32 %v5209_v21, %v5201_v58  ;;  %v3045_v35 = vpop.permute.xlu1 %3044 }
0x1c75   :  { %4822 = vmatprep.subr.bf16.mxu0 %v4821_v60  ;;  %v3049_v5 = vpop.permute.xlu0 %3048  ;;  %v3088_v47 = vsel %vm224_vm1, %v5847_v25, %v3045_v35  ;;  %v3282_v35 = vld [vmem:[%s6171_s1 + $0xf0] sm:$0xff] }
0x1c76   :  { %4824 = vmatpush3.bf16.msra.mxu0 %v4821_v60  ;;  %v3092_v61 = vsel %vm1341_vm3, %v3088_v47, %v3061_v36  ;;  %v3090_v30 = vsel %vm224_vm1, %v5851_v28, %v3049_v5  ;;  %v3993_v28 = vld [vmem:[%s6172_s2 + $0xb] ss:$0 sm:$0xff] }
0x1c77   :  { %v5211_v0 = vpop.eup %5210  ;;  %4826 = vmatprep.subr.bf16.mxu0 %v4825_v42 }
0x1c78   :  { %v2930_v18 = vmul.f32 %v5211_v0, %v5203_v16  ;;  %v3047_v59 = vpop.permute.xlu1 %3046 }
0x1c79   :  { %4529 = vmatmul.mubr.msk.f32.vlgmr.msra.gmra.mrb[40].mxu0 %vm20_vm0, %v2928_v39  ;;  %v3065_v2 = vpop.permute.xlu0 %3064  ;;  %v3089_v49 = vsel %vm224_vm1, %v5845_v10, %v3047_v59  ;;  %v3283_v59 = vld [vmem:[%s6171_s1 + $0xf8] sm:$0xff] }
0x1c7a   :  { %4531 = vmatprep.mubr.msk.f32.mxu0 %vm20_vm0, %v2929_v22  ;;  %4828 = vmatpush3.bf16.msra.mxu0 %v4825_v42  ;;  %v3094_v54 = vsel %vm1341_vm3, %v3090_v30, %v3065_v2  ;;  %v3998_v30 = vld [vmem:[%s6172_s2 + $0xc] ss:$0 sm:$0xff] }
0x1c7b   :  { %4830 = vmatprep.subr.bf16.mxu0 %v4829_v7 }
0x1c7c   :  { %v3063_v53 = vpop.permute.xlu1 %3062 }
0x1c7d   :  { %4532 = vmatmul.mubr.msk.f32.gmra.mrb[42].mxu0 %vm20_vm0, %v2930_v18  ;;  %v3093_v52 = vsel %vm1341_vm3, %v3089_v49, %v3063_v53  ;;  %v4837_v53 = vpack.c.bf16 %v3283_v59, %v3282_v35 }
0x1c7e   :  { %4832 = vmatpush3.bf16.msra.mxu0 %v4829_v7 }
0x1c80   :  { %v3051_v37 = vpop.permute.xlu1 %3050 }
0x1c81   :  { %v3091_v10 = vsel %vm224_vm1, %v5849_v41, %v3051_v37 }
0x1c84   :  { %v3067_v46 = vpop.permute.xlu1 %3066 }
0x1c85   :  { %v3095_v26 = vsel %vm1341_vm3, %v3091_v10, %v3067_v46 }
0x1d4c   :  { %v4530_v31 = vpop.f32.mrb[40].mxu0 }
0x1d4d   :  { %3078 = vrot.lane.b32.xlu1 %v4530_v31, %s5256_s28  ;;  %v3021_v15 = vpop.f32.mrb[41].mxu0 }
0x1d4e   :  { %3076 = vrot.lane.b32.xlu0 %v3021_v15, %s5256_s28  ;;  %v3280_v15 = vld [vmem:[%s6171_s1 + $0xe0] sm:$0xff] }
0x1d50   :  { %v4533_v33 = vpop.f32.mrb[42].mxu0 }
0x1d51   :  { %3082 = vrot.lane.b32.xlu1 %v4533_v33, %s5256_s28  ;;  %v3031_v12 = vpop.f32.mrb[43].mxu0  ;;  %v3281_v33 = vld [vmem:[%s6171_s1 + $0xe8] sm:$0xff] }
0x1d52   :  { %3080 = vrot.lane.b32.xlu0 %v3031_v12, %s5256_s28  ;;  %v4833_v12 = vpack.c.bf16 %v3281_v33, %v3280_v15 }
0x1d54   :  { %4834 = vmatprep.subr.bf16.mxu1 %v4833_v12 }
0x1d55   :  { %4836 = vmatpush3.bf16.msra.mxu1 %v4833_v12 }
0x1d56   :  { %4838 = vmatprep.subr.bf16.mxu1 %v4837_v53 }
0x1d59   :  { %4840 = vmatpush3.bf16.msra.mxu1 %v4837_v53 }
0x1dbf   :  { %v3079_v48 = vpop.permute.xlu1 %3078 }
0x1dc0   :  { %v3077_v50 = vpop.permute.xlu0 %3076  ;;  %v3097_v27 = vsel %vm1346_vm4, %v3093_v52, %v3079_v48 }
0x1dc1   :  { %v3096_v55 = vsel %vm1346_vm4, %v3092_v61, %v3077_v50 }
0x1dc2   :  { %4542 = vmatprep.mubr.msk.f32.mxu0 %vm20_vm0, %v3096_v55 }
0x1dc3   :  { %4543 = vmatmul.mubr.msk.f32.vlgmr.msra.gmra.mrb[44].mxu0 %vm20_vm0, %v3097_v27  ;;  %v3083_v25 = vpop.permute.xlu1 %3082 }
0x1dc4   :  { %v3081_v34 = vpop.permute.xlu0 %3080  ;;  %v3099_v62 = vsel %vm1346_vm4, %v3095_v26, %v3083_v25 }
0x1dc5   :  { %v3098_v32 = vsel %vm1346_vm4, %v3094_v54, %v3081_v34  ;;  %v3999_v34 = vld [vmem:[%s6172_s2 + $0xd] ss:$0 sm:$0xff] }
0x1dc6   :  { %4545 = vmatprep.mubr.msk.f32.mxu0 %vm20_vm0, %v3098_v32 }
0x1dc7   :  { %4546 = vmatmul.mubr.msk.f32.gmra.mrb[46].mxu0 %vm20_vm0, %v3099_v62 }
0x1e96   :  { %v4544_v58 = vpop.f32.mrb[44].mxu0 }
0x1e97   :  { %v3193_v4 = vadd.f32 %v4544_v58, %v3993_v28  ;;  %v3187_v16 = vpop.f32.mrb[45].mxu0 }
0x1e98   :  { %v3188_v38 = vadd.f32 %v3993_v28, %v3187_v16 }
0x1e99   :  { %v3207_v41 = vadd.f32 %v3193_v4, %v5748_v45 }
0x1e9a   :  { %v3206_v56 = vadd.f32 %v3188_v38, %v5746_v44  ;;  %v4547_v3 = vpop.f32.mrb[46].mxu0 }
0x1e9b   :  { %v3197_v57 = vpop.f32.mrb[47].mxu0  ;;  %v3215_v6 = vsel %vm20_vm0, %v3207_v41, 0.0  ;;  %v3203_v9 = vadd.f32 %v4547_v3, %v3993_v28 }
0x1e9c   :  { %v3198_v43 = vadd.f32 %v3993_v28, %v3197_v57  ;;  %3216 = vadd.xlane.f32.xlu1 %v3215_v6  ;;  %v3212_v17 = vsel %vm20_vm0, %v3206_v56, 0.0  ;;  %v3422_v6 = vld [vmem:[%s6171_s1 + $0x100] sm:$0xff] }
0x1e9d   :  { %3213 = vadd.xlane.f32.xlu0 %v3212_v17  ;;  %v3209_v13 = vadd.f32 %v3203_v9, %v5756_v51  ;;  %v3423_v9 = vld [vmem:[%s6171_s1 + $0x108] sm:$0xff]  ;;  %v3424_v17 = vld [vmem:[%s6171_s1 + $0x110] sm:$0xff] }
0x1e9e   :  { %v3208_v8 = vadd.f32 %v3198_v43, %v5754_v63  ;;  %v4841_v43 = vpack.c.bf16 %v3423_v9, %v3422_v6 }
0x1e9f   :  { %v3221_v45 = vsel %vm20_vm0, %v3209_v13, 0.0 }
0x1ea0   :  { %v3218_v11 = vsel %vm20_vm0, %v3208_v8, 0.0  ;;  %4842 = vmatprep.subr.bf16.mxu0 %v4841_v43 }
0x1ea1   :  { %3219 = vadd.xlane.f32.xlu0 %v3218_v11  ;;  %4844 = vmatpush3.bf16.msra.mxu0 %v4841_v43  ;;  %v3426_v11 = vld [vmem:[%s6171_s1 + $0x120] sm:$0xff] }
0x1ea5   :  { %3222 = vadd.xlane.f32.xlu0 %v3221_v45  ;;  %v3427_v45 = vld [vmem:[%s6171_s1 + $0x128] sm:$0xff] }
0x1f29   :  { %v3217_v44 = vpop.xlane.xlu1 %3216 }
0x1f2a   :  { %v3225_v19 = vmul.f32 0.03125, %v3217_v44  ;;  %v3214_v1 = vpop.xlane.xlu0 %3213  ;;  %v4849_v44 = vpack.c.bf16 %v3427_v45, %v3426_v11 }
0x1f2b   :  { %v3224_v40 = vmul.f32 0.03125, %v3214_v1  ;;  %v3429_v1 = vld [vmem:[%s6171_s1 + $0x138] sm:$0xff] }
0x1f2c   :  { %v3229_v60 = vsub.f32 %v3207_v41, %v3225_v19  ;;  %v3428_v19 = vld [vmem:[%s6171_s1 + $0x130] sm:$0xff] }
0x1f2d   :  { %v3228_v20 = vsub.f32 %v3206_v56, %v3224_v40  ;;  %v4853_v40 = vpack.c.bf16 %v3429_v1, %v3428_v19 }
0x1f2e   :  { %v3220_v21 = vpop.xlane.xlu0 %3219  ;;  %v3233_v39 = vmul.f32 %v3229_v60, %v3229_v60 }
0x1f2f   :  { %v3226_v0 = vmul.f32 0.03125, %v3220_v21  ;;  %v3232_v22 = vmul.f32 %v3228_v20, %v3228_v20 }
0x1f30   :  { %v3239_v63 = vsel %vm20_vm0, %v3233_v39, 0.0 }
0x1f31   :  { %v3230_v18 = vsub.f32 %v3208_v8, %v3226_v0  ;;  %3240 = vadd.xlane.f32.xlu1 %v3239_v63  ;;  %v3236_v51 = vsel %vm20_vm0, %v3232_v22, 0.0  ;;  %v3425_v8 = vld [vmem:[%s6171_s1 + $0x118] sm:$0xff] }
0x1f32   :  { %3237 = vadd.xlane.f32.xlu0 %v3236_v51  ;;  %v3223_v23 = vpop.xlane.xlu0 %3222 }
0x1f33   :  { %v3227_v24 = vmul.f32 0.03125, %v3223_v23  ;;  %v3234_v14 = vmul.f32 %v3230_v18, %v3230_v18 }
0x1f35   :  { %v3231_v42 = vsub.f32 %v3209_v13, %v3227_v24  ;;  %v3242_v29 = vsel %vm20_vm0, %v3234_v14, 0.0  ;;  %v4845_v13 = vpack.c.bf16 %v3425_v8, %v3424_v17 }
0x1f36   :  { %3243 = vadd.xlane.f32.xlu0 %v3242_v29 }
0x1f37   :  { %v3235_v7 = vmul.f32 %v3231_v42, %v3231_v42  ;;  %4846 = vmatprep.subr.bf16.mxu0 %v4845_v13 }
0x1f38   :  { %4848 = vmatpush3.bf16.msra.mxu0 %v4845_v13 }
0x1f39   :  { %v3245_v31 = vsel %vm20_vm0, %v3235_v7, 0.0  ;;  %4850 = vmatprep.subr.bf16.mxu0 %v4849_v44 }
0x1f3a   :  { %3246 = vadd.xlane.f32.xlu1 %v3245_v31 }
0x1f3c   :  { %4852 = vmatpush3.bf16.msra.mxu0 %v4849_v44 }
0x1f3d   :  { %4854 = vmatprep.subr.bf16.mxu0 %v4853_v40 }
0x1f40   :  { %4856 = vmatpush3.bf16.msra.mxu0 %v4853_v40 }
0x1fbe   :  { %v3241_v36 = vpop.xlane.xlu1 %3240 }
0x1fbf   :  { %v3249_v37 = vmul.f32 0.03125, %v3241_v36  ;;  %v3238_v5 = vpop.xlane.xlu0 %3237 }
0x1fc0   :  { %v3248_v46 = vmul.f32 0.03125, %v3238_v5 }
0x1fc1   :  { %v3253_v2 = vadd.f32 1e-05, %v3249_v37 }
0x1fc2   :  { %v3252_v47 = vadd.f32 1e-05, %v3248_v46 }
0x1fc3   :  { %5212 = vrsqrt.f32 %v3253_v2  ;;  %v3244_v48 = vpop.xlane.xlu0 %3243 }
0x1fc4   :  { %5214 = vrsqrt.f32 %v3252_v47  ;;  %v3250_v49 = vmul.f32 0.03125, %v3244_v48 }
0x1fc6   :  { %v3254_v61 = vadd.f32 1e-05, %v3250_v49 }
0x1fc7   :  { %v3247_v50 = vpop.xlane.xlu1 %3246 }
0x1fc8   :  { %5216 = vrsqrt.f32 %v3254_v61  ;;  %v3251_v52 = vmul.f32 0.03125, %v3247_v50 }
0x1fca   :  { %v3255_v55 = vadd.f32 1e-05, %v3251_v52 }
0x1fcc   :  { %5218 = vrsqrt.f32 %v3255_v55 }
0x1fcd   :  { %v5213_v27 = vpop.eup %5212 }
0x1fce   :  { %v5215_v25 = vpop.eup %5214  ;;  %v3261_v54 = vmul.f32 %v5213_v27, %v3229_v60  ;;  %v4000_v60 = vld [vmem:[%s6172_s2 + $0xe] ss:$0 sm:$0xff] }
0x1fcf   :  { %v3260_v10 = vmul.f32 %v5215_v25, %v3228_v20 }
0x1fd0   :  { %v3269_v26 = vmul.f32 %v3998_v30, %v3261_v54 }
0x1fd1   :  { %v3268_v32 = vmul.f32 %v3998_v30, %v3260_v10 }
0x1fd2   :  { %v5217_v62 = vpop.eup %5216  ;;  %v6052_v4 = vadd.f32 %v3999_v34, %v3269_v26 }
0x1fd3   :  { %v6050_v28 = vadd.f32 %v3999_v34, %v3268_v32  ;;  %v3262_v58 = vmul.f32 %v5217_v62, %v3230_v18 }
0x1fd5   :  { %4556 = vmatprep.mubr.msk.f32.mxu1 %vm20_vm0, %v6050_v28  ;;  %v3270_v16 = vmul.f32 %v3998_v30, %v3262_v58 }
0x1fd6   :  { %v5219_v38 = vpop.eup %5218  ;;  %4557 = vmatmul.mubr.msk.f32.vlgmr.msra.gmra.mrb[40].mxu1 %vm20_vm0, %v6052_v4 }
0x1fd7   :  { %v6058_v41 = vadd.f32 %v3999_v34, %v3270_v16  ;;  %v3263_v56 = vmul.f32 %v5219_v38, %v3231_v42  ;;  %v4005_v38 = vld [vmem:[%s6172_s2 + $0xf] ss:$0 sm:$0xff] }
0x1fd9   :  { %4559 = vmatprep.mubr.msk.f32.mxu1 %vm20_vm0, %v6058_v41  ;;  %v3271_v3 = vmul.f32 %v3998_v30, %v3263_v56 }
0x1fdb   :  { %v6062_v57 = vadd.f32 %v3999_v34, %v3271_v3 }
0x1fdd   :  { %4560 = vmatmul.mubr.msk.f32.gmra.mrb[42].mxu1 %vm20_vm0, %v6062_v57 }
0x20a9   :  { %v4558_v20 = vpop.f32.mrb[40].mxu1 }
0x20aa   :  { %v3373_v21 = vadd.f32 %v4558_v20, %v4000_v60  ;;  %v3367_v39 = vpop.f32.mrb[41].mxu1 }
0x20ab   :  { %v3368_v0 = vadd.f32 %v4000_v60, %v3367_v39 }
0x20ac   :  { %v3391_v22 = vmul.f32 0.044715, %v3373_v21  ;;  %v3387_v27 = vmul.f32 0.5, %v3373_v21 }
0x20ad   :  { %v3390_v63 = vmul.f32 0.044715, %v3368_v0  ;;  %v3386_v52 = vmul.f32 0.5, %v3368_v0 }
0x20ae   :  { %v3395_v18 = vmul.f32 %v3391_v22, %v3373_v21 }
0x20af   :  { %v3394_v51 = vmul.f32 %v3390_v63, %v3368_v0 }
0x20b0   :  { %v3399_v23 = vmul.f32 %v3395_v18, %v3373_v21  ;;  %v4561_v24 = vpop.f32.mrb[42].mxu1 }
0x20b1   :  { %v3398_v14 = vmul.f32 %v3394_v51, %v3368_v0  ;;  %v3383_v42 = vadd.f32 %v4561_v24, %v4000_v60  ;;  %v3377_v29 = vpop.f32.mrb[43].mxu1 }
0x20b2   :  { %v3403_v7 = vadd.f32 %v3399_v23, %v3373_v21  ;;  %v3378_v31 = vadd.f32 %v4000_v60, %v3377_v29 }
0x20b3   :  { %v3402_v15 = vadd.f32 %v3398_v14, %v3368_v0  ;;  %v3393_v33 = vmul.f32 0.044715, %v3383_v42  ;;  %v3389_v62 = vmul.f32 0.5, %v3383_v42 }
0x20b4   :  { %v3407_v12 = vmul.f32 0.7978846, %v3403_v7  ;;  %v3392_v35 = vmul.f32 0.044715, %v3378_v31  ;;  %v3388_v26 = vmul.f32 0.5, %v3378_v31 }
0x20b5   :  { %v3397_v59 = vmul.f32 %v3393_v33, %v3383_v42  ;;  %v3406_v53 = vmul.f32 0.7978846, %v3402_v15 }
0x20b6   :  { %5220 = vtanh.f32 %v3407_v12  ;;  %v3396_v36 = vmul.f32 %v3392_v35, %v3378_v31  ;;  %v5242_v12 = vld [vmem:[%s6170_s0] sm:$0xff]  ;;  %v5257_v35 = vmov 0.0|0.0  }
0x20b7   :  { %v3401_v37 = vmul.f32 %v3397_v59, %v3383_v42  ;;  %5222 = vtanh.f32 %v3406_v53  ;;  %4857 = vmatprep.subr.bf16.mxu1 %v5257_v35  ;;  %4869 = vmatprep.subr.bf16.mxu0 %v5257_v35  ;;  %v5259_v59 = vmov 0.0  }
0x20b8   :  { %v3400_v5 = vmul.f32 %v3396_v36, %v3378_v31  ;;  %4592 = vmatprep.mubr.msk.f32.mxu1 %vm5258_vm6, %v5259_v59 }
0x20b9   :  { %v3405_v46 = vadd.f32 %v3401_v37, %v3383_v42 }
0x20ba   :  { %v3404_v2 = vadd.f32 %v3400_v5, %v3378_v31 }
0x20bb   :  { %v3409_v47 = vmul.f32 0.7978846, %v3405_v46 }
0x20bc   :  { %v3408_v48 = vmul.f32 0.7978846, %v3404_v2 }
0x20bd   :  { %5224 = vtanh.f32 %v3409_v47 }
0x20be   :  { %5226 = vtanh.f32 %v3408_v48 }
0x20c0   :  { %v5221_v49 = vpop.eup %5220 }
0x20c1   :  { %v5223_v61 = vpop.eup %5222  ;;  %v3415_v50 = vadd.f32 1.0, %v5221_v49 }
0x20c2   :  { %v3414_v55 = vadd.f32 1.0, %v5223_v61 }
0x20c3   :  { %v3419_v25 = vmul.f32 %v3415_v50, %v3387_v27  ;;  %v4010_v27 = vld [vmem:[%s6172_s2 + $0x10] ss:$0 sm:$0xff] }
0x20c4   :  { %v3418_v30 = vmul.f32 %v3414_v55, %v3386_v52 }
0x20c6   :  { %4578 = vmatprep.mubr.msk.f32.mxu0 %vm1686_vm5, %v3418_v30 }
0x20c7   :  { %v5225_v54 = vpop.eup %5224  ;;  %4579 = vmatmul.mubr.msk.f32.vlgmr.msra.gmra.mrb[48].mxu0 %vm1686_vm5, %v3419_v25 }
0x20c8   :  { %v5227_v10 = vpop.eup %5226  ;;  %v3417_v34 = vadd.f32 1.0, %v5225_v54 }
0x20c9   :  { %v3416_v32 = vadd.f32 1.0, %v5227_v10  ;;  %v4011_v10 = vld [vmem:[%s6172_s2 + $0x11] ss:$0 sm:$0xff] }
0x20ca   :  { %v3421_v16 = vmul.f32 %v3417_v34, %v3389_v62 }
0x20cb   :  { %v3420_v58 = vmul.f32 %v3416_v32, %v3388_v26 }
0x20cd   :  { %4581 = vmatprep.mubr.msk.f32.mxu0 %vm1686_vm5, %v3420_v58 }
0x20ce   :  { %4582 = vmatmul.mubr.msk.f32.gmra.mrb[50].mxu0 %vm1686_vm5, %v3421_v16 }
0x20cf   :  { %4614 = vmatprep.mubr.msk.f32.mxu0 %vm5258_vm6, %v5259_v59 }
0x219a   :  { %v4580_v56 = vpop.f32.mrb[48].mxu0 }
0x219b   :  { %v3519_v3 = vadd.f32 %v4580_v56, %v4005_v38  ;;  %v3513_v6 = vpop.f32.mrb[49].mxu0 }
0x219c   :  { %v3514_v9 = vadd.f32 %v4005_v38, %v3513_v6 }
0x219d   :  { %v3533_v43 = vadd.f32 %v3519_v3, %v6052_v4 }
0x219e   :  { %v3532_v17 = vadd.f32 %v3514_v9, %v6050_v28 }
0x219f   :  { %v3541_v8 = vsel %vm20_vm0, %v3533_v43, 0.0 }
0x21a0   :  { %3542 = vadd.xlane.f32.xlu1 %v3541_v8  ;;  %v3538_v13 = vsel %vm20_vm0, %v3532_v17, 0.0  ;;  %v3680_v8 = vld [vmem:[%s6171_s1 + $0x140] sm:$0xff] }
0x21a1   :  { %3539 = vadd.xlane.f32.xlu0 %v3538_v13  ;;  %v4583_v11 = vpop.f32.mrb[50].mxu0  ;;  %v3681_v13 = vld [vmem:[%s6171_s1 + $0x148] sm:$0xff] }
0x21a2   :  { %v3529_v45 = vadd.f32 %v4583_v11, %v4005_v38  ;;  %v3523_v44 = vpop.f32.mrb[51].mxu0 }
0x21a3   :  { %v3524_v19 = vadd.f32 %v4005_v38, %v3523_v44  ;;  %v4864_v44 = vpack.c.bf16 %v3681_v13, %v3680_v8 }
0x21a4   :  { %v3535_v1 = vadd.f32 %v3529_v45, %v6062_v57 }
0x21a5   :  { %v3534_v40 = vadd.f32 %v3524_v19, %v6058_v41  ;;  %v3682_v19 = vld [vmem:[%s6171_s1 + $0x150] sm:$0xff] }
0x21a6   :  { %v3547_v60 = vsel %vm20_vm0, %v3535_v1, 0.0 }
0x21a7   :  { %3548 = vadd.xlane.f32.xlu1 %v3547_v60  ;;  %v3544_v4 = vsel %vm20_vm0, %v3534_v40, 0.0 }
0x21a8   :  { %3545 = vadd.xlane.f32.xlu0 %v3544_v4 }
0x222d   :  { %v3543_v28 = vpop.xlane.xlu1 %3542 }
0x222e   :  { %v3551_v20 = vmul.f32 0.03125, %v3543_v28  ;;  %v3540_v21 = vpop.xlane.xlu0 %3539  ;;  %v3763_v28 = vld [vmem:[%s6171_s1 + $0x160] sm:$0xff] }
0x222f   :  { %v3550_v39 = vmul.f32 0.03125, %v3540_v21  ;;  %v3765_v21 = vld [vmem:[%s6171_s1 + $0x170] sm:$0xff] }
0x2230   :  { %v3555_v0 = vsub.f32 %v3533_v43, %v3551_v20  ;;  %v3764_v20 = vld [vmem:[%s6171_s1 + $0x168] sm:$0xff] }
0x2231   :  { %v3554_v22 = vsub.f32 %v3532_v17, %v3550_v39  ;;  %v4870_v39 = vpack.c.bf16 %v3764_v20, %v3763_v28 }
0x2232   :  { %v3559_v63 = vmul.f32 %v3555_v0, %v3555_v0 }
0x2233   :  { %v3558_v18 = vmul.f32 %v3554_v22, %v3554_v22  ;;  %4871 = vmatpush3.bf16.msra.mxu0 %v4870_v39 }
0x2234   :  { %v3549_v51 = vpop.xlane.xlu1 %3548  ;;  %v3565_v23 = vsel %vm20_vm0, %v3559_v63, 0.0  ;;  %4872 = vmatprep.subr.bf16.mxu0 %v5257_v35  ;;  %v4013_v63 = vld [vmem:[%s6172_s2 + $0x12] ss:$0 sm:$0xff] }
0x2235   :  { %v3553_v57 = vmul.f32 0.03125, %v3549_v51  ;;  %3566 = vadd.xlane.f32.xlu1 %v3565_v23  ;;  %v3546_v41 = vpop.xlane.xlu0 %3545  ;;  %v3562_v24 = vsel %vm20_vm0, %v3558_v18, 0.0 }
0x2236   :  { %v3552_v14 = vmul.f32 0.03125, %v3546_v41  ;;  %3563 = vadd.xlane.f32.xlu0 %v3562_v24  ;;  %v4015_v41 = vld [vmem:[%s6172_s2 + $0x13] ss:$0 sm:$0xff] }
0x2237   :  { %v3557_v42 = vsub.f32 %v3535_v1, %v3553_v57  ;;  %v3683_v1 = vld [vmem:[%s6171_s1 + $0x158] sm:$0xff] }
0x2238   :  { %v3556_v29 = vsub.f32 %v3534_v40, %v3552_v14  ;;  %v4867_v40 = vpack.c.bf16 %v3683_v1, %v3682_v19 }
0x2239   :  { %v3561_v7 = vmul.f32 %v3557_v42, %v3557_v42 }
0x223a   :  { %v3560_v31 = vmul.f32 %v3556_v29, %v3556_v29 }
0x223b   :  { %v3571_v15 = vsel %vm20_vm0, %v3561_v7, 0.0 }
0x223c   :  { %3572 = vadd.xlane.f32.xlu1 %v3571_v15  ;;  %v3568_v33 = vsel %vm20_vm0, %v3560_v31, 0.0 }
0x223d   :  { %3569 = vadd.xlane.f32.xlu0 %v3568_v33 }
0x2253   :  { %3606 = vrot.lane.b32.xlu0 %v5242_v12, %s5244_s8 }
0x22c2   :  { %v3567_v53 = vpop.xlane.xlu1 %3566 }
0x22c3   :  { %v3575_v36 = vmul.f32 0.03125, %v3567_v53  ;;  %v3564_v37 = vpop.xlane.xlu0 %3563 }
0x22c4   :  { %v3574_v5 = vmul.f32 0.03125, %v3564_v37 }
0x22c5   :  { %v3579_v46 = vadd.f32 1e-05, %v3575_v36 }
0x22c6   :  { %v3578_v2 = vadd.f32 1e-05, %v3574_v5 }
0x22c7   :  { %5228 = vrsqrt.f32 %v3579_v46 }
0x22c8   :  { %5230 = vrsqrt.f32 %v3578_v2 }
0x22c9   :  { %v3573_v47 = vpop.xlane.xlu1 %3572 }
0x22ca   :  { %v3577_v48 = vmul.f32 0.03125, %v3573_v47  ;;  %v3570_v49 = vpop.xlane.xlu0 %3569 }
0x22cb   :  { %v3576_v61 = vmul.f32 0.03125, %v3570_v49 }
0x22cc   :  { %v3581_v50 = vadd.f32 1e-05, %v3577_v48 }
0x22cd   :  { %v3580_v52 = vadd.f32 1e-05, %v3576_v61 }
0x22ce   :  { %5232 = vrsqrt.f32 %v3581_v50  ;;  %v3607_v45 = vpop.permute.xlu0 %3606 }
0x22cf   :  { %5234 = vrsqrt.f32 %v3580_v52 }
0x22d1   :  { %v5229_v55 = vpop.eup %5228 }
0x22d2   :  { %v5231_v30 = vpop.eup %5230  ;;  %v3587_v25 = vmul.f32 %v5229_v55, %v3555_v0  ;;  %v3766_v0 = vld [vmem:[%s6171_s1 + $0x178] sm:$0xff] }
0x22d3   :  { %v3586_v54 = vmul.f32 %v5231_v30, %v3554_v22  ;;  %v4873_v22 = vpack.c.bf16 %v3766_v0, %v3765_v21 }
0x22d4   :  { %v3595_v34 = vmul.f32 %v4010_v27, %v3587_v25 }
0x22d5   :  { %v3594_v26 = vmul.f32 %v4010_v27, %v3586_v54  ;;  %4874 = vmatpush3.bf16.msra.mxu0 %v4873_v22 }
0x22d6   :  { %v3603_v32 = vadd.f32 %v4011_v10, %v3595_v34 }
0x22d7   :  { %v3602_v62 = vadd.f32 %v4011_v10, %v3594_v26 }
0x22d8   :  { %v5233_v58 = vpop.eup %5232 }
0x22d9   :  { %v5235_v16 = vpop.eup %5234  ;;  %v3589_v38 = vmul.f32 %v5233_v58, %v3557_v42  ;;  %v4858_v56 = vpack.c.bf16 %v3603_v32, %v3602_v62 }
0x22da   :  { %v3588_v3 = vmul.f32 %v5235_v16, %v3556_v29 }
0x22db   :  { %4859 = vmatpush3.bf16.msra.mxu1 %v4858_v56  ;;  %v3597_v6 = vmul.f32 %v4010_v27, %v3589_v38 }
0x22dc   :  { %4860 = vmatprep.subr.bf16.mxu1 %v5257_v35  ;;  %v3596_v9 = vmul.f32 %v4010_v27, %v3588_v3 }
0x22dd   :  { %v3605_v43 = vadd.f32 %v4011_v10, %v3597_v6 }
0x22de   :  { %v3604_v17 = vadd.f32 %v4011_v10, %v3596_v9 }
0x22e0   :  { %v4861_v11 = vpack.c.bf16 %v3605_v43, %v3604_v17 }
0x22e2   :  { %4862 = vmatpush3.bf16.msra.mxu1 %v4861_v11 }
0x22e3   :  { %4863 = vmatprep.subr.bf16.mxu1 %v5257_v35 }
0x22e5   :  { %4593 = vmatmul.mubr.msk.f32.vlgmr.msra.gmra.mrb[44].mxu1 %vm20_vm0, %v3607_v45 }
0x22e6   :  { %4865 = vmatpush3.bf16.msra.mxu1 %v4864_v44  ;;  %4603 = vmatprep.mubr.msk.f32.mxu1 %vm5258_vm6, %v5259_v59 }
0x22e7   :  { %4866 = vmatprep.subr.bf16.mxu1 %v5257_v35 }
0x22ea   :  { %4868 = vmatpush3.bf16.msra.mxu1 %v4867_v40 }
0x23b8   :  { %v3676_v60 = vpop.f32.mrb[44].mxu1 }
0x23b9   :  { %v4594_v4 = vpop.f32.mrb[45].mxu1  ;;  %4604 = vmatmul.mubr.msk.f32.vlgmr.msra.gmra.mrb[46].mxu1 %vm20_vm0, %v3676_v60 }
0x248c   :  { %v3758_v18 = vpop.f32.mrb[46].mxu1 }
0x248d   :  { %v3759_v51 = vadd.f32 %v4013_v63, %v3758_v18  ;;  %v4605_v23 = vpop.f32.mrb[47].mxu1 }
0x248f   :  { %5236 = vtanh.f32 %v3759_v51 }
0x2499   :  { %v5237_v57 = vpop.eup %5236 }
0x249a   :  { %4615 = vmatmul.mubr.msk.f32.vlgmr.msra.gmra.mrb[52].mxu0 %vm20_vm0, %v5237_v57 }
0x256d   :  { %v3841_v24 = vpop.f32.mrb[52].mxu0 }
0x256e   :  { %v3842_v14 = vadd.f32 %v4015_v41, %v3841_v24  ;;  %v4616_v42 = vpop.f32.mrb[53].mxu0 }
0x2570   :  { %v3846_v29 = vsel %vm3845_vm7, %v3842_v14, -inf }
0x2571   :  { %3847 = vmax.xlane.f32.xlu1 %v3846_v29 }
0x25fe   :  { %v3848_v7 = vpop.xlane.xlu1 %3847 }
0x25ff   :  { %v3849_v31 = vsub.f32 %v3842_v14, %v3848_v7 }
0x2601   :  { %v3850_v15 = vmul.f32 1.442695, %v3849_v31 }
0x2603   :  { %5238 = vpow2.f32 %v3850_v15 }
0x260d   :  { %v5239_v33 = vpop.eup %5238 }
0x260e   :  { %v3852_v12 = vsel %vm3845_vm7, %v5239_v33, 0.0 }
0x260f   :  { %3853 = vadd.xlane.f32.xlu1 %v3852_v12 }
0x269c   :  { %v3854_v35 = vpop.xlane.xlu1 %3853 }
0x269d   :  { %5240 = vrcp.f32 %v3854_v35 }
0x26a7   :  { %v5241_v59 = vpop.eup %5240 }
0x26a8   :  { %v3856_v53 = vmul.f32 %v5241_v59, %v5239_v33 }
0x26aa   :  { %v3858_v36 = vrot.slane %v3856_v53, 6 }
0x26ac   :  { %v3860_v37 = vsel %vm3845_vm7, %v3842_v14, %v3858_v36 }
0x26ad   :  { %3861 = vst [vmem:[%s6173_s3] sm:$0xf] %v3860_v37 }

</bundles_post_ra>
